<compile_context>
chip_gen: v7x
topology: tpu7x:2x2x1
jax: 0.10.0
libtpu: 0.0.40
codegen_flags: <defaults>
</compile_context>

<pallas_src>
import functools

import jax
import jax.numpy as jnp
from jax import lax
from jax.experimental import pallas as pl
from jax.experimental.pallas import tpu as pltpu

EMBED_DIM = 16
HIDDEN_DIM = 32
VOCAB_SIZE = 32
NUM_LAYERS = 3
NUM_DIRS = 2            # bidirectional
T = 8
B = 2
IN_WIDTH = NUM_DIRS * HIDDEN_DIM   # 64: padded input width, uniform per layer


# ---------------------------------------------------------------------------
# Single fused kernel: 3 x bidirectional LSTM layers + Linear + log_softmax.
# ---------------------------------------------------------------------------
def lm_kernel(x_ref, w_ih_ref, w_hh_ref, b_ref, wout_ref, bout_ref,
              out_ref, xs_ref, *, hidden, seq_len, batch, num_layers):
    H, Tn, Bn = hidden, seq_len, batch
    G = 4 * H   # per-direction gate width (128 lanes)

    # ---- hoisted per-kernel constants (emitted once, closed over below) ----
    lanes = lax.broadcasted_iota(jnp.int32, (2 * Bn, G), 1)
    is_g = (lanes >= 2 * H) & (lanes < 3 * H)
    gate_scale = jnp.where(is_g, 1.0, 0.5).astype(jnp.float32)   # tanh-arg scale
    gate_shift = jnp.where(is_g, 0.0, 0.5).astype(jnp.float32)   # sigmoid fixup
    rows = lax.broadcasted_iota(jnp.int32, (2 * Bn, G), 0)
    row_is_fwd = rows < Bn

    # Layer-0 input (zero-padded embeddings) lives in the activation scratch;
    # each layer fully reads it (for the hoisted input projection) before
    # overwriting it with its own output.
    xs_ref[...] = x_ref[...]

    for layer in range(num_layers):
        # Hoisted input projection + bias: one wide MXU matmul per layer.
        p_all = (jnp.dot(xs_ref[...], w_ih_ref[layer],
                         preferred_element_type=jnp.float32)
                 + b_ref[layer])                                   # (T*B, 8H)

        h = jnp.zeros((2 * Bn, H), jnp.float32)   # rows 0:B fwd, B:2B bwd
        c = jnp.zeros((2 * Bn, H), jnp.float32)
        for t in range(Tn):                        # fully unrolled recurrence
            # x-projection slice for this step (fwd time t, bwd time T-1-t);
            # independent of h, so it sits off the serial critical path.
            p_t = jnp.concatenate(
                [p_all[t * Bn:(t + 1) * Bn, 0:G],
                 p_all[(Tn - 1 - t) * Bn:(Tn - t) * Bn, G:2 * G]], axis=0)

            # Recurrent matmul: contraction = 32; RHS re-read from VMEM each
            # step (vld slots free; keeps W_hh out of the vreg live set).
            # TODO(synk): could pin W_hh in MXU staging regs via
            # pltpu.matmul_push_rhs/acc_lhs/pop to skip per-step RHS reload.
            rec = jnp.dot(h, w_hh_ref[layer],
                          preferred_element_type=jnp.float32)      # (2B, 8H)
            gates = jnp.where(row_is_fwd, rec[:, 0:G], rec[:, G:2 * G]) + p_t

            # Single EUP pass: tanh on g lanes, sigmoid via tanh elsewhere.
            act = jnp.tanh(gates * gate_scale) * gate_scale + gate_shift
            i_g = act[:, 0:H]
            f_g = act[:, H:2 * H]
            g_g = act[:, 2 * H:3 * H]
            o_g = act[:, 3 * H:4 * H]
            c = f_g * c + i_g * g_g
            h = o_g * jnp.tanh(c)

            # Write layer output (t-major rows; fwd cols 0:H, bwd cols H:2H).
            # Stores don't feed the recurrence, so they hide under later steps.
            xs_ref[t * Bn:(t + 1) * Bn, 0:H] = h[0:Bn]
            xs_ref[(Tn - 1 - t) * Bn:(Tn - t) * Bn, H:2 * H] = h[Bn:2 * Bn]
        # TODO(synk): inter-layer nn.Dropout(0.5) is identity in eval mode.

    # Final Linear + log_softmax on (T*B, 2H) activations (row order matches
    # PyTorch's X.view(-1, vocab_size) on a (T, B, 2H) tensor).
    logits = (jnp.dot(xs_ref[...], wout_ref[...],
                      preferred_element_type=jnp.float32) + bout_ref[...])
    m = jnp.max(logits, axis=1, keepdims=True)
    z = logits - m
    lse = jnp.log(jnp.sum(jnp.exp(z), axis=1, keepdims=True))
    out_ref[...] = z - lse


def _full_spec(shape):
    nd = len(shape)
    return pl.BlockSpec(shape, lambda i, _nd=nd: (0,) * _nd)


def lm_forward(params, seq):
    # Embedding gather: a single tiny XLA op (kept outside the kernel).
    x = jnp.take(params["embedding"], seq, axis=0).astype(jnp.float32)  # (T,B,E)
    # TODO(synk): nn.Dropout(0.5) on the embedding is identity in eval mode.
    Tn, Bn, E = x.shape
    x2d = x.reshape(Tn * Bn, E)
    x2d = jnp.pad(x2d, ((0, 0), (0, IN_WIDTH - E)))                 # (T*B, 64)

    kernel = functools.partial(lm_kernel, hidden=HIDDEN_DIM, seq_len=Tn,
                               batch=Bn, num_layers=NUM_LAYERS)
    return pl.pallas_call(
        kernel,
        out_shape=jax.ShapeDtypeStruct((Tn * Bn, VOCAB_SIZE), jnp.float32),
        grid=(1,),
        in_specs=[_full_spec(x2d.shape),
                  _full_spec(params["w_ih"].shape),
                  _full_spec(params["w_hh"].shape),
                  _full_spec(params["b"].shape),
                  _full_spec(params["w_out_t"].shape),
                  _full_spec(params["b_out"].shape)],
        out_specs=_full_spec((Tn * Bn, VOCAB_SIZE)),
        scratch_shapes=[pltpu.VMEM((Tn * Bn, IN_WIDTH), jnp.float32)],
        compiler_params=pltpu.CompilerParams(
            dimension_semantics=("arbitrary",)),
    )(x2d, params["w_ih"], params["w_hh"], params["b"],
      params["w_out_t"], params["b_out"])


# ---------------------------------------------------------------------------
# Parameters (deterministic, PyTorch-like shapes / init bounds), packed:
#   w_ih (3, 64, 8H): per layer [W_ih_fwd^T | W_ih_bwd^T], layer-0 rows 16:64
#                     zero-padded (layer-0 input is zero-padded to 64 cols).
#   w_hh (3, H, 8H):  per layer [W_hh_fwd^T | W_hh_bwd^T]
#   b    (3, 1, 8H):  per layer [b_ih_fwd+b_hh_fwd | b_ih_bwd+b_hh_bwd]
# ---------------------------------------------------------------------------
def init_params(key):
    n_keys = 1 + NUM_LAYERS * NUM_DIRS * 4 + 2
    keys = jax.random.split(key, n_keys)
    ki = iter(keys)
    params = {"embedding": jax.random.normal(
        next(ki), (VOCAB_SIZE, EMBED_DIM), jnp.float32)}

    bound = 1.0 / (HIDDEN_DIM ** 0.5)
    w_ih_all, w_hh_all, b_all = [], [], []
    for layer in range(NUM_LAYERS):
        in_dim = EMBED_DIM if layer == 0 else HIDDEN_DIM * NUM_DIRS
        w_ih_dirs, w_hh_dirs, b_dirs = [], [], []
        for _ in range(NUM_DIRS):
            w_ih = jax.random.uniform(next(ki), (4 * HIDDEN_DIM, in_dim),
                                      jnp.float32, -bound, bound)
            w_hh = jax.random.uniform(next(ki), (4 * HIDDEN_DIM, HIDDEN_DIM),
                                      jnp.float32, -bound, bound)
            b_ih = jax.random.uniform(next(ki), (4 * HIDDEN_DIM,),
                                      jnp.float32, -bound, bound)
            b_hh = jax.random.uniform(next(ki), (4 * HIDDEN_DIM,),
                                      jnp.float32, -bound, bound)
            w_ih_dirs.append(w_ih.T)                               # (in_dim,4H)
            w_hh_dirs.append(w_hh.T)                               # (H, 4H)
            b_dirs.append(b_ih + b_hh)                             # (4H,)
        w_ih_l = jnp.concatenate(w_ih_dirs, axis=1)                # (in_dim,8H)
        if in_dim < IN_WIDTH:
            w_ih_l = jnp.pad(w_ih_l, ((0, IN_WIDTH - in_dim), (0, 0)))
        w_ih_all.append(w_ih_l)
        w_hh_all.append(jnp.concatenate(w_hh_dirs, axis=1))        # (H, 8H)
        b_all.append(jnp.concatenate(b_dirs)[None, :])             # (1, 8H)
    params["w_ih"] = jnp.stack(w_ih_all)                           # (3,64,8H)
    params["w_hh"] = jnp.stack(w_hh_all)                           # (3,H,8H)
    params["b"] = jnp.stack(b_all)                                 # (3,1,8H)

    out_in = HIDDEN_DIM * NUM_DIRS
    obound = 1.0 / (out_in ** 0.5)
    w_out = jax.random.uniform(next(ki), (VOCAB_SIZE, out_in),
                               jnp.float32, -obound, obound)
    b_out = jax.random.uniform(next(ki), (VOCAB_SIZE,),
                               jnp.float32, -obound, obound)
    params["w_out_t"] = w_out.T                                    # (2H, V)
    params["b_out"] = b_out[None, :]                               # (1, V)
    return params


# ---------------------------------------------------------------------------
# Pure-JAX reference (same math) for a correctness sanity check.
# ---------------------------------------------------------------------------
def _lstm_dir_ref(x, w_ih_t, w_hh_t, b):
    Bn = x.shape[1]
    H = HIDDEN_DIM

    def step(carry, x_t):
        h, c = carry
        gates = x_t @ w_ih_t + h @ w_hh_t + b
        i = jax.nn.sigmoid(gates[:, :H])
        f = jax.nn.sigmoid(gates[:, H:2 * H])
        g = jnp.tanh(gates[:, 2 * H:3 * H])
        o = jax.nn.sigmoid(gates[:, 3 * H:])
        c = f * c + i * g
        h = o * jnp.tanh(c)
        return (h, c), h

    init = (jnp.zeros((Bn, H), jnp.float32), jnp.zeros((Bn, H), jnp.float32))
    _, hs = lax.scan(step, init, x)
    return hs


def lm_forward_ref(params, seq):
    x = jnp.take(params["embedding"], seq, axis=0)
    H = HIDDEN_DIM
    for layer in range(NUM_LAYERS):
        in_dim = EMBED_DIM if layer == 0 else HIDDEN_DIM * NUM_DIRS
        w_ih = params["w_ih"][layer][:in_dim]       # (in_dim, 8H)
        w_hh = params["w_hh"][layer]                # (H, 8H)
        b = params["b"][layer]                      # (1, 8H)
        outs = []
        for d in range(NUM_DIRS):
            cols = slice(d * 4 * H, (d + 1) * 4 * H)
            xin = x if d == 0 else x[::-1]
            out = _lstm_dir_ref(xin, w_ih[:, cols], w_hh[:, cols], b[:, cols])
            if d == 1:
                out = out[::-1]
            outs.append(out)
        x = jnp.concatenate(outs, axis=-1)
    x2d = x.reshape(-1, x.shape[-1])
    logits = x2d @ params["w_out_t"] + params["b_out"]
    return jax.nn.log_softmax(logits, axis=1)


if __name__ == "__main__":
    key = jax.random.PRNGKey(0)
    pkey, skey = jax.random.split(key)
    params = init_params(pkey)
    seq = jax.random.randint(skey, (T, B), 0, VOCAB_SIZE, dtype=jnp.int32)

    out = jax.block_until_ready(jax.jit(lm_forward)(params, seq))
    ref = jax.block_until_ready(lm_forward_ref(params, seq))

    assert out.shape == (T * B, VOCAB_SIZE), out.shape
    assert bool(jnp.all(jnp.isfinite(out)))
    err = float(jnp.max(jnp.abs(out - ref)))
    assert err < 5e-4, err
    # log_softmax rows exponentiate-sum to 1
    assert bool(jnp.max(jnp.abs(jnp.sum(jnp.exp(out), axis=1) - 1.0)) < 1e-4)

    print("KERNEL_OK")
</pallas_src>

<mosaic_0001>
module attributes {stable_mosaic.version = 11 : i64} {
  func.func @lm_kernel(%arg0: i32, %arg1: memref<16x64xf32, #tpu.memory_space<vmem>>, %arg2: memref<3x64x256xf32, #tpu.memory_space<vmem>>, %arg3: memref<3x32x256xf32, #tpu.memory_space<vmem>>, %arg4: memref<3x1x256xf32, #tpu.memory_space<vmem>>, %arg5: memref<64x32xf32, #tpu.memory_space<vmem>>, %arg6: memref<1x32xf32, #tpu.memory_space<vmem>>, %arg7: memref<16x32xf32, #tpu.memory_space<vmem>>, %arg8: memref<16x64xf32, #tpu.memory_space<vmem>>) attributes {dimension_semantics = [#tpu.dimension_semantics<arbitrary>], iteration_bounds = array<i64: 1>, scalar_prefetch = 0 : i64, scratch_operands = 1 : i64, tpu.core_type = #tpu.core_type<tc>, window_params = [{pipeline_mode = #tpu.pipeline_mode<synchronous>, transform_indices = @transform_0, window_bounds = array<i64: 16, 64>}, {pipeline_mode = #tpu.pipeline_mode<synchronous>, transform_indices = @transform_1, window_bounds = array<i64: 3, 64, 256>}, {pipeline_mode = #tpu.pipeline_mode<synchronous>, transform_indices = @transform_2, window_bounds = array<i64: 3, 32, 256>}, {pipeline_mode = #tpu.pipeline_mode<synchronous>, transform_indices = @transform_3, window_bounds = array<i64: 3, 1, 256>}, {pipeline_mode = #tpu.pipeline_mode<synchronous>, transform_indices = @transform_4, window_bounds = array<i64: 64, 32>}, {pipeline_mode = #tpu.pipeline_mode<synchronous>, transform_indices = @transform_5, window_bounds = array<i64: 1, 32>}, {pipeline_mode = #tpu.pipeline_mode<synchronous>, transform_indices = @transform_6, window_bounds = array<i64: 16, 32>}]} {
    %0 = tpu.iota {dimensions = array<i32: 1>} : vector<4x128xi32>
    %c64_i32 = arith.constant 64 : i32
    %1 = vector.broadcast %c64_i32 : i32 to vector<4x128xi32>
    %2 = arith.cmpi sge, %0, %1 : vector<4x128xi32>
    %c96_i32 = arith.constant 96 : i32
    %3 = vector.broadcast %c96_i32 : i32 to vector<4x128xi32>
    %4 = arith.cmpi slt, %0, %3 : vector<4x128xi32>
    %5 = arith.andi %2, %4 : vector<4x128xi1>
    %cst = arith.constant 1.000000e+00 : f32
    %cst_0 = arith.constant 5.000000e-01 : f32
    %6 = vector.broadcast %cst : f32 to vector<4x128xf32>
    %7 = vector.broadcast %cst_0 : f32 to vector<4x128xf32>
    %8 = arith.select %5, %6, %7 : vector<4x128xi1>, vector<4x128xf32>
    %cst_1 = arith.constant 0.000000e+00 : f32
    %cst_2 = arith.constant 5.000000e-01 : f32
    %9 = vector.broadcast %cst_1 : f32 to vector<4x128xf32>
    %10 = vector.broadcast %cst_2 : f32 to vector<4x128xf32>
    %11 = arith.select %5, %9, %10 : vector<4x128xi1>, vector<4x128xf32>
    %12 = tpu.iota {dimensions = array<i32: 0>} : vector<4x128xi32>
    %c2_i32 = arith.constant 2 : i32
    %13 = vector.broadcast %c2_i32 : i32 to vector<4x128xi32>
    %14 = arith.cmpi slt, %12, %13 : vector<4x128xi32>
    %c0 = arith.constant 0 : index
    %c0_3 = arith.constant 0 : index
    %15 = vector.load %arg1[%c0, %c0_3] : memref<16x64xf32, #tpu.memory_space<vmem>>, vector<16x64xf32>
    %c0_4 = arith.constant 0 : index
    %c0_5 = arith.constant 0 : index
    %16 = vector.load %arg8[%c0_4, %c0_5] : memref<16x64xf32, #tpu.memory_space<vmem>>, vector<16x64xf32>
    tpu.vector_store %arg8[%c0_4, %c0_5], %15 {strides = array<i32>} : memref<16x64xf32, #tpu.memory_space<vmem>>, vector<16x64xf32>,
    %c0_6 = arith.constant 0 : index
    %c0_7 = arith.constant 0 : index
    %17 = vector.load %arg8[%c0_6, %c0_7] : memref<16x64xf32, #tpu.memory_space<vmem>>, vector<16x64xf32>
    %c0_8 = arith.constant 0 : index
    %c0_9 = arith.constant 0 : index
    %c0_10 = arith.constant 0 : index
    %18 = vector.load %arg2[%c0_8, %c0_9, %c0_10] : memref<3x64x256xf32, #tpu.memory_space<vmem>>, vector<1x64x256xf32>
    %19 = vector.shape_cast %18 : vector<1x64x256xf32> to vector<64x256xf32>
    %cst_11 = arith.constant dense<0.000000e+00> : vector<16x256xf32>
    %20 = tpu.matmul %17, %19, %cst_11 {dimension_numbers = #tpu.dot_dimension_numbers<[1], [0], [0], [1], [0, 0, 1, 1], [], []>} : vector<16x64xf32>, vector<64x256xf32>, vector<16x256xf32> -> vector<16x256xf32>
    %c0_12 = arith.constant 0 : index
    %c0_13 = arith.constant 0 : index
    %c0_14 = arith.constant 0 : index
    %21 = vector.load %arg4[%c0_12, %c0_13, %c0_14] : memref<3x1x256xf32, #tpu.memory_space<vmem>>, vector<1x1x256xf32>
    %22 = vector.shape_cast %21 : vector<1x1x256xf32> to vector<1x256xf32>
    %23 = vector.broadcast %22 : vector<1x256xf32> to vector<16x256xf32>
    %24 = arith.addf %20, %23 : vector<16x256xf32>
    %cst_15 = arith.constant 0.000000e+00 : f32
    %25 = vector.broadcast %cst_15 : f32 to vector<4x32xf32>
    %cst_16 = arith.constant 0.000000e+00 : f32
    %26 = vector.broadcast %cst_16 : f32 to vector<4x32xf32>
    %27 = vector.extract_strided_slice %24 {offsets = [0, 0], sizes = [2, 128], strides = [1, 1]} : vector<16x256xf32> to vector<2x128xf32>
    %28 = vector.extract_strided_slice %24 {offsets = [14, 128], sizes = [2, 128], strides = [1, 1]} : vector<16x256xf32> to vector<2x128xf32>
    %29 = tpu.concatenate %27, %28 in 0 : vector<2x128xf32>, vector<2x128xf32> -> vector<4x128xf32>
    %c0_17 = arith.constant 0 : index
    %c0_18 = arith.constant 0 : index
    %c0_19 = arith.constant 0 : index
    %30 = vector.load %arg3[%c0_17, %c0_18, %c0_19] : memref<3x32x256xf32, #tpu.memory_space<vmem>>, vector<1x32x256xf32>
    %31 = vector.shape_cast %30 : vector<1x32x256xf32> to vector<32x256xf32>
    %cst_20 = arith.constant dense<0.000000e+00> : vector<4x256xf32>
    %32 = tpu.matmul %25, %31, %cst_20 {dimension_numbers = #tpu.dot_dimension_numbers<[1], [0], [0], [1], [0, 0, 1, 1], [], []>} : vector<4x32xf32>, vector<32x256xf32>, vector<4x256xf32> -> vector<4x256xf32>
    %33 = vector.extract_strided_slice %32 {offsets = [0, 0], sizes = [4, 128], strides = [1, 1]} : vector<4x256xf32> to vector<4x128xf32>
    %34 = vector.extract_strided_slice %32 {offsets = [0, 128], sizes = [4, 128], strides = [1, 1]} : vector<4x256xf32> to vector<4x128xf32>
    %35 = arith.select %14, %33, %34 : vector<4x128xi1>, vector<4x128xf32>
    %36 = arith.addf %35, %29 : vector<4x128xf32>
    %37 = arith.mulf %36, %8 : vector<4x128xf32>
    %38 = math.tanh %37 : vector<4x128xf32>
    %39 = arith.mulf %38, %8 : vector<4x128xf32>
    %40 = arith.addf %39, %11 : vector<4x128xf32>
    %41 = vector.extract_strided_slice %40 {offsets = [0, 0], sizes = [4, 32], strides = [1, 1]} : vector<4x128xf32> to vector<4x32xf32>
    %42 = vector.extract_strided_slice %40 {offsets = [0, 32], sizes = [4, 32], strides = [1, 1]} : vector<4x128xf32> to vector<4x32xf32>
    %43 = vector.extract_strided_slice %40 {offsets = [0, 64], sizes = [4, 32], strides = [1, 1]} : vector<4x128xf32> to vector<4x32xf32>
    %44 = vector.extract_strided_slice %40 {offsets = [0, 96], sizes = [4, 32], strides = [1, 1]} : vector<4x128xf32> to vector<4x32xf32>
    %45 = arith.mulf %42, %26 : vector<4x32xf32>
    %46 = arith.mulf %41, %43 : vector<4x32xf32>
    %47 = arith.addf %45, %46 : vector<4x32xf32>
    %48 = math.tanh %47 : vector<4x32xf32>
    %49 = arith.mulf %44, %48 : vector<4x32xf32>
    %50 = vector.extract_strided_slice %49 {offsets = [0, 0], sizes = [2, 32], strides = [1, 1]} : vector<4x32xf32> to vector<2x32xf32>
    %c0_21 = arith.constant 0 : index
    %c0_22 = arith.constant 0 : index
    %51 = vector.load %arg8[%c0_21, %c0_22] : memref<16x64xf32, #tpu.memory_space<vmem>>, vector<2x32xf32>
    tpu.vector_store %arg8[%c0_21, %c0_22], %50 {strides = array<i32>} : memref<16x64xf32, #tpu.memory_space<vmem>>, vector<2x32xf32>,
    %52 = vector.extract_strided_slice %49 {offsets = [2, 0], sizes = [2, 32], strides = [1, 1]} : vector<4x32xf32> to vector<2x32xf32>
    %c14 = arith.constant 14 : index
    %c32 = arith.constant 32 : index
    %53 = vector.load %arg8[%c14, %c32] : memref<16x64xf32, #tpu.memory_space<vmem>>, vector<2x32xf32>
    tpu.vector_store %arg8[%c14, %c32], %52 {strides = array<i32>} : memref<16x64xf32, #tpu.memory_space<vmem>>, vector<2x32xf32>,
    %54 = vector.extract_strided_slice %24 {offsets = [2, 0], sizes = [2, 128], strides = [1, 1]} : vector<16x256xf32> to vector<2x128xf32>
    %55 = vector.extract_strided_slice %24 {offsets = [12, 128], sizes = [2, 128], strides = [1, 1]} : vector<16x256xf32> to vector<2x128xf32>
    %56 = tpu.concatenate %54, %55 in 0 : vector<2x128xf32>, vector<2x128xf32> -> vector<4x128xf32>
    %c0_23 = arith.constant 0 : index
    %c0_24 = arith.constant 0 : index
    %c0_25 = arith.constant 0 : index
    %57 = vector.load %arg3[%c0_23, %c0_24, %c0_25] : memref<3x32x256xf32, #tpu.memory_space<vmem>>, vector<1x32x256xf32>
    %58 = vector.shape_cast %57 : vector<1x32x256xf32> to vector<32x256xf32>
    %cst_26 = arith.constant dense<0.000000e+00> : vector<4x256xf32>
    %59 = tpu.matmul %49, %58, %cst_26 {dimension_numbers = #tpu.dot_dimension_numbers<[1], [0], [0], [1], [0, 0, 1, 1], [], []>} : vector<4x32xf32>, vector<32x256xf32>, vector<4x256xf32> -> vector<4x256xf32>
    %60 = vector.extract_strided_slice %59 {offsets = [0, 0], sizes = [4, 128], strides = [1, 1]} : vector<4x256xf32> to vector<4x128xf32>
    %61 = vector.extract_strided_slice %59 {offsets = [0, 128], sizes = [4, 128], strides = [1, 1]} : vector<4x256xf32> to vector<4x128xf32>
    %62 = arith.select %14, %60, %61 : vector<4x128xi1>, vector<4x128xf32>
    %63 = arith.addf %62, %56 : vector<4x128xf32>
    %64 = arith.mulf %63, %8 : vector<4x128xf32>
    %65 = math.tanh %64 : vector<4x128xf32>
    %66 = arith.mulf %65, %8 : vector<4x128xf32>
    %67 = arith.addf %66, %11 : vector<4x128xf32>
    %68 = vector.extract_strided_slice %67 {offsets = [0, 0], sizes = [4, 32], strides = [1, 1]} : vector<4x128xf32> to vector<4x32xf32>
    %69 = vector.extract_strided_slice %67 {offsets = [0, 32], sizes = [4, 32], strides = [1, 1]} : vector<4x128xf32> to vector<4x32xf32>
    %70 = vector.extract_strided_slice %67 {offsets = [0, 64], sizes = [4, 32], strides = [1, 1]} : vector<4x128xf32> to vector<4x32xf32>
    %71 = vector.extract_strided_slice %67 {offsets = [0, 96], sizes = [4, 32], strides = [1, 1]} : vector<4x128xf32> to vector<4x32xf32>
    %72 = arith.mulf %69, %47 : vector<4x32xf32>
    %73 = arith.mulf %68, %70 : vector<4x32xf32>
    %74 = arith.addf %72, %73 : vector<4x32xf32>
    %75 = math.tanh %74 : vector<4x32xf32>
    %76 = arith.mulf %71, %75 : vector<4x32xf32>
    %77 = vector.extract_strided_slice %76 {offsets = [0, 0], sizes = [2, 32], strides = [1, 1]} : vector<4x32xf32> to vector<2x32xf32>
    %c2 = arith.constant 2 : index
    %c0_27 = arith.constant 0 : index
    %78 = vector.load %arg8[%c2, %c0_27] : memref<16x64xf32, #tpu.memory_space<vmem>>, vector<2x32xf32>
    tpu.vector_store %arg8[%c2, %c0_27], %77 {strides = array<i32>} : memref<16x64xf32, #tpu.memory_space<vmem>>, vector<2x32xf32>,
    %79 = vector.extract_strided_slice %76 {offsets = [2, 0], sizes = [2, 32], strides = [1, 1]} : vector<4x32xf32> to vector<2x32xf32>
    %c12 = arith.constant 12 : index
    %c32_28 = arith.constant 32 : index
    %80 = vector.load %arg8[%c12, %c32_28] : memref<16x64xf32, #tpu.memory_space<vmem>>, vector<2x32xf32>
    tpu.vector_store %arg8[%c12, %c32_28], %79 {strides = array<i32>} : memref<16x64xf32, #tpu.memory_space<vmem>>, vector<2x32xf32>,
    %81 = vector.extract_strided_slice %24 {offsets = [4, 0], sizes = [2, 128], strides = [1, 1]} : vector<16x256xf32> to vector<2x128xf32>
    %82 = vector.extract_strided_slice %24 {offsets = [10, 128], sizes = [2, 128], strides = [1, 1]} : vector<16x256xf32> to vector<2x128xf32>
    %83 = tpu.concatenate %81, %82 in 0 : vector<2x128xf32>, vector<2x128xf32> -> vector<4x128xf32>
    %c0_29 = arith.constant 0 : index
    %c0_30 = arith.constant 0 : index
    %c0_31 = arith.constant 0 : index
    %84 = vector.load %arg3[%c0_29, %c0_30, %c0_31] : memref<3x32x256xf32, #tpu.memory_space<vmem>>, vector<1x32x256xf32>
    %85 = vector.shape_cast %84 : vector<1x32x256xf32> to vector<32x256xf32>
    %cst_32 = arith.constant dense<0.000000e+00> : vector<4x256xf32>
    %86 = tpu.matmul %76, %85, %cst_32 {dimension_numbers = #tpu.dot_dimension_numbers<[1], [0], [0], [1], [0, 0, 1, 1], [], []>} : vector<4x32xf32>, vector<32x256xf32>, vector<4x256xf32> -> vector<4x256xf32>
    %87 = vector.extract_strided_slice %86 {offsets = [0, 0], sizes = [4, 128], strides = [1, 1]} : vector<4x256xf32> to vector<4x128xf32>
    %88 = vector.extract_strided_slice %86 {offsets = [0, 128], sizes = [4, 128], strides = [1, 1]} : vector<4x256xf32> to vector<4x128xf32>
    %89 = arith.select %14, %87, %88 : vector<4x128xi1>, vector<4x128xf32>
    %90 = arith.addf %89, %83 : vector<4x128xf32>
    %91 = arith.mulf %90, %8 : vector<4x128xf32>
    %92 = math.tanh %91 : vector<4x128xf32>
    %93 = arith.mulf %92, %8 : vector<4x128xf32>
    %94 = arith.addf %93, %11 : vector<4x128xf32>
    %95 = vector.extract_strided_slice %94 {offsets = [0, 0], sizes = [4, 32], strides = [1, 1]} : vector<4x128xf32> to vector<4x32xf32>
    %96 = vector.extract_strided_slice %94 {offsets = [0, 32], sizes = [4, 32], strides = [1, 1]} : vector<4x128xf32> to vector<4x32xf32>
    %97 = vector.extract_strided_slice %94 {offsets = [0, 64], sizes = [4, 32], strides = [1, 1]} : vector<4x128xf32> to vector<4x32xf32>
    %98 = vector.extract_strided_slice %94 {offsets = [0, 96], sizes = [4, 32], strides = [1, 1]} : vector<4x128xf32> to vector<4x32xf32>
    %99 = arith.mulf %96, %74 : vector<4x32xf32>
    %100 = arith.mulf %95, %97 : vector<4x32xf32>
    %101 = arith.addf %99, %100 : vector<4x32xf32>
    %102 = math.tanh %101 : vector<4x32xf32>
    %103 = arith.mulf %98, %102 : vector<4x32xf32>
    %104 = vector.extract_strided_slice %103 {offsets = [0, 0], sizes = [2, 32], strides = [1, 1]} : vector<4x32xf32> to vector<2x32xf32>
    %c4 = arith.constant 4 : index
    %c0_33 = arith.constant 0 : index
    %105 = vector.load %arg8[%c4, %c0_33] : memref<16x64xf32, #tpu.memory_space<vmem>>, vector<2x32xf32>
    tpu.vector_store %arg8[%c4, %c0_33], %104 {strides = array<i32>} : memref<16x64xf32, #tpu.memory_space<vmem>>, vector<2x32xf32>,
    %106 = vector.extract_strided_slice %103 {offsets = [2, 0], sizes = [2, 32], strides = [1, 1]} : vector<4x32xf32> to vector<2x32xf32>
    %c10 = arith.constant 10 : index
    %c32_34 = arith.constant 32 : index
    %107 = vector.load %arg8[%c10, %c32_34] : memref<16x64xf32, #tpu.memory_space<vmem>>, vector<2x32xf32>
    tpu.vector_store %arg8[%c10, %c32_34], %106 {strides = array<i32>} : memref<16x64xf32, #tpu.memory_space<vmem>>, vector<2x32xf32>,
    %108 = vector.extract_strided_slice %24 {offsets = [6, 0], sizes = [2, 128], strides = [1, 1]} : vector<16x256xf32> to vector<2x128xf32>
    %109 = vector.extract_strided_slice %24 {offsets = [8, 128], sizes = [2, 128], strides = [1, 1]} : vector<16x256xf32> to vector<2x128xf32>
    %110 = tpu.concatenate %108, %109 in 0 : vector<2x128xf32>, vector<2x128xf32> -> vector<4x128xf32>
    %c0_35 = arith.constant 0 : index
    %c0_36 = arith.constant 0 : index
    %c0_37 = arith.constant 0 : index
    %111 = vector.load %arg3[%c0_35, %c0_36, %c0_37] : memref<3x32x256xf32, #tpu.memory_space<vmem>>, vector<1x32x256xf32>
    %112 = vector.shape_cast %111 : vector<1x32x256xf32> to vector<32x256xf32>
    %cst_38 = arith.constant dense<0.000000e+00> : vector<4x256xf32>
    %113 = tpu.matmul %103, %112, %cst_38 {dimension_numbers = #tpu.dot_dimension_numbers<[1], [0], [0], [1], [0, 0, 1, 1], [], []>} : vector<4x32xf32>, vector<32x256xf32>, vector<4x256xf32> -> vector<4x256xf32>
    %114 = vector.extract_strided_slice %113 {offsets = [0, 0], sizes = [4, 128], strides = [1, 1]} : vector<4x256xf32> to vector<4x128xf32>
    %115 = vector.extract_strided_slice %113 {offsets = [0, 128], sizes = [4, 128], strides = [1, 1]} : vector<4x256xf32> to vector<4x128xf32>
    %116 = arith.select %14, %114, %115 : vector<4x128xi1>, vector<4x128xf32>
    %117 = arith.addf %116, %110 : vector<4x128xf32>
    %118 = arith.mulf %117, %8 : vector<4x128xf32>
    %119 = math.tanh %118 : vector<4x128xf32>
    %120 = arith.mulf %119, %8 : vector<4x128xf32>
    %121 = arith.addf %120, %11 : vector<4x128xf32>
    %122 = vector.extract_strided_slice %121 {offsets = [0, 0], sizes = [4, 32], strides = [1, 1]} : vector<4x128xf32> to vector<4x32xf32>
    %123 = vector.extract_strided_slice %121 {offsets = [0, 32], sizes = [4, 32], strides = [1, 1]} : vector<4x128xf32> to vector<4x32xf32>
    %124 = vector.extract_strided_slice %121 {offsets = [0, 64], sizes = [4, 32], strides = [1, 1]} : vector<4x128xf32> to vector<4x32xf32>
    %125 = vector.extract_strided_slice %121 {offsets = [0, 96], sizes = [4, 32], strides = [1, 1]} : vector<4x128xf32> to vector<4x32xf32>
    %126 = arith.mulf %123, %101 : vector<4x32xf32>
    %127 = arith.mulf %122, %124 : vector<4x32xf32>
    %128 = arith.addf %126, %127 : vector<4x32xf32>
    %129 = math.tanh %128 : vector<4x32xf32>
    %130 = arith.mulf %125, %129 : vector<4x32xf32>
    %131 = vector.extract_strided_slice %130 {offsets = [0, 0], sizes = [2, 32], strides = [1, 1]} : vector<4x32xf32> to vector<2x32xf32>
    %c6 = arith.constant 6 : index
    %c0_39 = arith.constant 0 : index
    %132 = vector.load %arg8[%c6, %c0_39] : memref<16x64xf32, #tpu.memory_space<vmem>>, vector<2x32xf32>
    tpu.vector_store %arg8[%c6, %c0_39], %131 {strides = array<i32>} : memref<16x64xf32, #tpu.memory_space<vmem>>, vector<2x32xf32>,
    %133 = vector.extract_strided_slice %130 {offsets = [2, 0], sizes = [2, 32], strides = [1, 1]} : vector<4x32xf32> to vector<2x32xf32>
    %c8 = arith.constant 8 : index
    %c32_40 = arith.constant 32 : index
    %134 = vector.load %arg8[%c8, %c32_40] : memref<16x64xf32, #tpu.memory_space<vmem>>, vector<2x32xf32>
    tpu.vector_store %arg8[%c8, %c32_40], %133 {strides = array<i32>} : memref<16x64xf32, #tpu.memory_space<vmem>>, vector<2x32xf32>,
    %135 = vector.extract_strided_slice %24 {offsets = [8, 0], sizes = [2, 128], strides = [1, 1]} : vector<16x256xf32> to vector<2x128xf32>
    %136 = vector.extract_strided_slice %24 {offsets = [6, 128], sizes = [2, 128], strides = [1, 1]} : vector<16x256xf32> to vector<2x128xf32>
    %137 = tpu.concatenate %135, %136 in 0 : vector<2x128xf32>, vector<2x128xf32> -> vector<4x128xf32>
    %c0_41 = arith.constant 0 : index
    %c0_42 = arith.constant 0 : index
    %c0_43 = arith.constant 0 : index
    %138 = vector.load %arg3[%c0_41, %c0_42, %c0_43] : memref<3x32x256xf32, #tpu.memory_space<vmem>>, vector<1x32x256xf32>
    %139 = vector.shape_cast %138 : vector<1x32x256xf32> to vector<32x256xf32>
    %cst_44 = arith.constant dense<0.000000e+00> : vector<4x256xf32>
    %140 = tpu.matmul %130, %139, %cst_44 {dimension_numbers = #tpu.dot_dimension_numbers<[1], [0], [0], [1], [0, 0, 1, 1], [], []>} : vector<4x32xf32>, vector<32x256xf32>, vector<4x256xf32> -> vector<4x256xf32>
    %141 = vector.extract_strided_slice %140 {offsets = [0, 0], sizes = [4, 128], strides = [1, 1]} : vector<4x256xf32> to vector<4x128xf32>
    %142 = vector.extract_strided_slice %140 {offsets = [0, 128], sizes = [4, 128], strides = [1, 1]} : vector<4x256xf32> to vector<4x128xf32>
    %143 = arith.select %14, %141, %142 : vector<4x128xi1>, vector<4x128xf32>
    %144 = arith.addf %143, %137 : vector<4x128xf32>
    %145 = arith.mulf %144, %8 : vector<4x128xf32>
    %146 = math.tanh %145 : vector<4x128xf32>
    %147 = arith.mulf %146, %8 : vector<4x128xf32>
    %148 = arith.addf %147, %11 : vector<4x128xf32>
    %149 = vector.extract_strided_slice %148 {offsets = [0, 0], sizes = [4, 32], strides = [1, 1]} : vector<4x128xf32> to vector<4x32xf32>
    %150 = vector.extract_strided_slice %148 {offsets = [0, 32], sizes = [4, 32], strides = [1, 1]} : vector<4x128xf32> to vector<4x32xf32>
    %151 = vector.extract_strided_slice %148 {offsets = [0, 64], sizes = [4, 32], strides = [1, 1]} : vector<4x128xf32> to vector<4x32xf32>
    %152 = vector.extract_strided_slice %148 {offsets = [0, 96], sizes = [4, 32], strides = [1, 1]} : vector<4x128xf32> to vector<4x32xf32>
    %153 = arith.mulf %150, %128 : vector<4x32xf32>
    %154 = arith.mulf %149, %151 : vector<4x32xf32>
    %155 = arith.addf %153, %154 : vector<4x32xf32>
    %156 = math.tanh %155 : vector<4x32xf32>
    %157 = arith.mulf %152, %156 : vector<4x32xf32>
    %158 = vector.extract_strided_slice %157 {offsets = [0, 0], sizes = [2, 32], strides = [1, 1]} : vector<4x32xf32> to vector<2x32xf32>
    %c8_45 = arith.constant 8 : index
    %c0_46 = arith.constant 0 : index
    %159 = vector.load %arg8[%c8_45, %c0_46] : memref<16x64xf32, #tpu.memory_space<vmem>>, vector<2x32xf32>
    tpu.vector_store %arg8[%c8_45, %c0_46], %158 {strides = array<i32>} : memref<16x64xf32, #tpu.memory_space<vmem>>, vector<2x32xf32>,
    %160 = vector.extract_strided_slice %157 {offsets = [2, 0], sizes = [2, 32], strides = [1, 1]} : vector<4x32xf32> to vector<2x32xf32>
    %c6_47 = arith.constant 6 : index
    %c32_48 = arith.constant 32 : index
    %161 = vector.load %arg8[%c6_47, %c32_48] : memref<16x64xf32, #tpu.memory_space<vmem>>, vector<2x32xf32>
    tpu.vector_store %arg8[%c6_47, %c32_48], %160 {strides = array<i32>} : memref<16x64xf32, #tpu.memory_space<vmem>>, vector<2x32xf32>,
    %162 = vector.extract_strided_slice %24 {offsets = [10, 0], sizes = [2, 128], strides = [1, 1]} : vector<16x256xf32> to vector<2x128xf32>
    %163 = vector.extract_strided_slice %24 {offsets = [4, 128], sizes = [2, 128], strides = [1, 1]} : vector<16x256xf32> to vector<2x128xf32>
    %164 = tpu.concatenate %162, %163 in 0 : vector<2x128xf32>, vector<2x128xf32> -> vector<4x128xf32>
    %c0_49 = arith.constant 0 : index
    %c0_50 = arith.constant 0 : index
    %c0_51 = arith.constant 0 : index
    %165 = vector.load %arg3[%c0_49, %c0_50, %c0_51] : memref<3x32x256xf32, #tpu.memory_space<vmem>>, vector<1x32x256xf32>
    %166 = vector.shape_cast %165 : vector<1x32x256xf32> to vector<32x256xf32>
    %cst_52 = arith.constant dense<0.000000e+00> : vector<4x256xf32>
    %167 = tpu.matmul %157, %166, %cst_52 {dimension_numbers = #tpu.dot_dimension_numbers<[1], [0], [0], [1], [0, 0, 1, 1], [], []>} : vector<4x32xf32>, vector<32x256xf32>, vector<4x256xf32> -> vector<4x256xf32>
    %168 = vector.extract_strided_slice %167 {offsets = [0, 0], sizes = [4, 128], strides = [1, 1]} : vector<4x256xf32> to vector<4x128xf32>
    %169 = vector.extract_strided_slice %167 {offsets = [0, 128], sizes = [4, 128], strides = [1, 1]} : vector<4x256xf32> to vector<4x128xf32>
    %170 = arith.select %14, %168, %169 : vector<4x128xi1>, vector<4x128xf32>
    %171 = arith.addf %170, %164 : vector<4x128xf32>
    %172 = arith.mulf %171, %8 : vector<4x128xf32>
    %173 = math.tanh %172 : vector<4x128xf32>
    %174 = arith.mulf %173, %8 : vector<4x128xf32>
    %175 = arith.addf %174, %11 : vector<4x128xf32>
    %176 = vector.extract_strided_slice %175 {offsets = [0, 0], sizes = [4, 32], strides = [1, 1]} : vector<4x128xf32> to vector<4x32xf32>
    %177 = vector.extract_strided_slice %175 {offsets = [0, 32], sizes = [4, 32], strides = [1, 1]} : vector<4x128xf32> to vector<4x32xf32>
    %178 = vector.extract_strided_slice %175 {offsets = [0, 64], sizes = [4, 32], strides = [1, 1]} : vector<4x128xf32> to vector<4x32xf32>
    %179 = vector.extract_strided_slice %175 {offsets = [0, 96], sizes = [4, 32], strides = [1, 1]} : vector<4x128xf32> to vector<4x32xf32>
    %180 = arith.mulf %177, %155 : vector<4x32xf32>
    %181 = arith.mulf %176, %178 : vector<4x32xf32>
    %182 = arith.addf %180, %181 : vector<4x32xf32>
    %183 = math.tanh %182 : vector<4x32xf32>
    %184 = arith.mulf %179, %183 : vector<4x32xf32>
    %185 = vector.extract_strided_slice %184 {offsets = [0, 0], sizes = [2, 32], strides = [1, 1]} : vector<4x32xf32> to vector<2x32xf32>
    %c10_53 = arith.constant 10 : index
    %c0_54 = arith.constant 0 : index
    %186 = vector.load %arg8[%c10_53, %c0_54] : memref<16x64xf32, #tpu.memory_space<vmem>>, vector<2x32xf32>
    tpu.vector_store %arg8[%c10_53, %c0_54], %185 {strides = array<i32>} : memref<16x64xf32, #tpu.memory_space<vmem>>, vector<2x32xf32>,
    %187 = vector.extract_strided_slice %184 {offsets = [2, 0], sizes = [2, 32], strides = [1, 1]} : vector<4x32xf32> to vector<2x32xf32>
    %c4_55 = arith.constant 4 : index
    %c32_56 = arith.constant 32 : index
    %188 = vector.load %arg8[%c4_55, %c32_56] : memref<16x64xf32, #tpu.memory_space<vmem>>, vector<2x32xf32>
    tpu.vector_store %arg8[%c4_55, %c32_56], %187 {strides = array<i32>} : memref<16x64xf32, #tpu.memory_space<vmem>>, vector<2x32xf32>,
    %189 = vector.extract_strided_slice %24 {offsets = [12, 0], sizes = [2, 128], strides = [1, 1]} : vector<16x256xf32> to vector<2x128xf32>
    %190 = vector.extract_strided_slice %24 {offsets = [2, 128], sizes = [2, 128], strides = [1, 1]} : vector<16x256xf32> to vector<2x128xf32>
    %191 = tpu.concatenate %189, %190 in 0 : vector<2x128xf32>, vector<2x128xf32> -> vector<4x128xf32>
    %c0_57 = arith.constant 0 : index
    %c0_58 = arith.constant 0 : index
    %c0_59 = arith.constant 0 : index
    %192 = vector.load %arg3[%c0_57, %c0_58, %c0_59] : memref<3x32x256xf32, #tpu.memory_space<vmem>>, vector<1x32x256xf32>
    %193 = vector.shape_cast %192 : vector<1x32x256xf32> to vector<32x256xf32>
    %cst_60 = arith.constant dense<0.000000e+00> : vector<4x256xf32>
    %194 = tpu.matmul %184, %193, %cst_60 {dimension_numbers = #tpu.dot_dimension_numbers<[1], [0], [0], [1], [0, 0, 1, 1], [], []>} : vector<4x32xf32>, vector<32x256xf32>, vector<4x256xf32> -> vector<4x256xf32>
    %195 = vector.extract_strided_slice %194 {offsets = [0, 0], sizes = [4, 128], strides = [1, 1]} : vector<4x256xf32> to vector<4x128xf32>
    %196 = vector.extract_strided_slice %194 {offsets = [0, 128], sizes = [4, 128], strides = [1, 1]} : vector<4x256xf32> to vector<4x128xf32>
    %197 = arith.select %14, %195, %196 : vector<4x128xi1>, vector<4x128xf32>
    %198 = arith.addf %197, %191 : vector<4x128xf32>
    %199 = arith.mulf %198, %8 : vector<4x128xf32>
    %200 = math.tanh %199 : vector<4x128xf32>
    %201 = arith.mulf %200, %8 : vector<4x128xf32>
    %202 = arith.addf %201, %11 : vector<4x128xf32>
    %203 = vector.extract_strided_slice %202 {offsets = [0, 0], sizes = [4, 32], strides = [1, 1]} : vector<4x128xf32> to vector<4x32xf32>
    %204 = vector.extract_strided_slice %202 {offsets = [0, 32], sizes = [4, 32], strides = [1, 1]} : vector<4x128xf32> to vector<4x32xf32>
    %205 = vector.extract_strided_slice %202 {offsets = [0, 64], sizes = [4, 32], strides = [1, 1]} : vector<4x128xf32> to vector<4x32xf32>
    %206 = vector.extract_strided_slice %202 {offsets = [0, 96], sizes = [4, 32], strides = [1, 1]} : vector<4x128xf32> to vector<4x32xf32>
    %207 = arith.mulf %204, %182 : vector<4x32xf32>
    %208 = arith.mulf %203, %205 : vector<4x32xf32>
    %209 = arith.addf %207, %208 : vector<4x32xf32>
    %210 = math.tanh %209 : vector<4x32xf32>
    %211 = arith.mulf %206, %210 : vector<4x32xf32>
    %212 = vector.extract_strided_slice %211 {offsets = [0, 0], sizes = [2, 32], strides = [1, 1]} : vector<4x32xf32> to vector<2x32xf32>
    %c12_61 = arith.constant 12 : index
    %c0_62 = arith.constant 0 : index
    %213 = vector.load %arg8[%c12_61, %c0_62] : memref<16x64xf32, #tpu.memory_space<vmem>>, vector<2x32xf32>
    tpu.vector_store %arg8[%c12_61, %c0_62], %212 {strides = array<i32>} : memref<16x64xf32, #tpu.memory_space<vmem>>, vector<2x32xf32>,
    %214 = vector.extract_strided_slice %211 {offsets = [2, 0], sizes = [2, 32], strides = [1, 1]} : vector<4x32xf32> to vector<2x32xf32>
    %c2_63 = arith.constant 2 : index
    %c32_64 = arith.constant 32 : index
    %215 = vector.load %arg8[%c2_63, %c32_64] : memref<16x64xf32, #tpu.memory_space<vmem>>, vector<2x32xf32>
    tpu.vector_store %arg8[%c2_63, %c32_64], %214 {strides = array<i32>} : memref<16x64xf32, #tpu.memory_space<vmem>>, vector<2x32xf32>,
    %216 = vector.extract_strided_slice %24 {offsets = [14, 0], sizes = [2, 128], strides = [1, 1]} : vector<16x256xf32> to vector<2x128xf32>
    %217 = vector.extract_strided_slice %24 {offsets = [0, 128], sizes = [2, 128], strides = [1, 1]} : vector<16x256xf32> to vector<2x128xf32>
    %218 = tpu.concatenate %216, %217 in 0 : vector<2x128xf32>, vector<2x128xf32> -> vector<4x128xf32>
    %c0_65 = arith.constant 0 : index
    %c0_66 = arith.constant 0 : index
    %c0_67 = arith.constant 0 : index
    %219 = vector.load %arg3[%c0_65, %c0_66, %c0_67] : memref<3x32x256xf32, #tpu.memory_space<vmem>>, vector<1x32x256xf32>
    %220 = vector.shape_cast %219 : vector<1x32x256xf32> to vector<32x256xf32>
    %cst_68 = arith.constant dense<0.000000e+00> : vector<4x256xf32>
    %221 = tpu.matmul %211, %220, %cst_68 {dimension_numbers = #tpu.dot_dimension_numbers<[1], [0], [0], [1], [0, 0, 1, 1], [], []>} : vector<4x32xf32>, vector<32x256xf32>, vector<4x256xf32> -> vector<4x256xf32>
    %222 = vector.extract_strided_slice %221 {offsets = [0, 0], sizes = [4, 128], strides = [1, 1]} : vector<4x256xf32> to vector<4x128xf32>
    %223 = vector.extract_strided_slice %221 {offsets = [0, 128], sizes = [4, 128], strides = [1, 1]} : vector<4x256xf32> to vector<4x128xf32>
    %224 = arith.select %14, %222, %223 : vector<4x128xi1>, vector<4x128xf32>
    %225 = arith.addf %224, %218 : vector<4x128xf32>
    %226 = arith.mulf %225, %8 : vector<4x128xf32>
    %227 = math.tanh %226 : vector<4x128xf32>
    %228 = arith.mulf %227, %8 : vector<4x128xf32>
    %229 = arith.addf %228, %11 : vector<4x128xf32>
    %230 = vector.extract_strided_slice %229 {offsets = [0, 0], sizes = [4, 32], strides = [1, 1]} : vector<4x128xf32> to vector<4x32xf32>
    %231 = vector.extract_strided_slice %229 {offsets = [0, 32], sizes = [4, 32], strides = [1, 1]} : vector<4x128xf32> to vector<4x32xf32>
    %232 = vector.extract_strided_slice %229 {offsets = [0, 64], sizes = [4, 32], strides = [1, 1]} : vector<4x128xf32> to vector<4x32xf32>
    %233 = vector.extract_strided_slice %229 {offsets = [0, 96], sizes = [4, 32], strides = [1, 1]} : vector<4x128xf32> to vector<4x32xf32>
    %234 = arith.mulf %231, %209 : vector<4x32xf32>
    %235 = arith.mulf %230, %232 : vector<4x32xf32>
    %236 = arith.addf %234, %235 : vector<4x32xf32>
    %237 = math.tanh %236 : vector<4x32xf32>
    %238 = arith.mulf %233, %237 : vector<4x32xf32>
    %239 = vector.extract_strided_slice %238 {offsets = [0, 0], sizes = [2, 32], strides = [1, 1]} : vector<4x32xf32> to vector<2x32xf32>
    %c14_69 = arith.constant 14 : index
    %c0_70 = arith.constant 0 : index
    %240 = vector.load %arg8[%c14_69, %c0_70] : memref<16x64xf32, #tpu.memory_space<vmem>>, vector<2x32xf32>
    tpu.vector_store %arg8[%c14_69, %c0_70], %239 {strides = array<i32>} : memref<16x64xf32, #tpu.memory_space<vmem>>, vector<2x32xf32>,
    %241 = vector.extract_strided_slice %238 {offsets = [2, 0], sizes = [2, 32], strides = [1, 1]} : vector<4x32xf32> to vector<2x32xf32>
    %c0_71 = arith.constant 0 : index
    %c32_72 = arith.constant 32 : index
    %242 = vector.load %arg8[%c0_71, %c32_72] : memref<16x64xf32, #tpu.memory_space<vmem>>, vector<2x32xf32>
    tpu.vector_store %arg8[%c0_71, %c32_72], %241 {strides = array<i32>} : memref<16x64xf32, #tpu.memory_space<vmem>>, vector<2x32xf32>,
    %c0_73 = arith.constant 0 : index
    %c0_74 = arith.constant 0 : index
    %243 = vector.load %arg8[%c0_73, %c0_74] : memref<16x64xf32, #tpu.memory_space<vmem>>, vector<16x64xf32>
    %c1 = arith.constant 1 : index
    %c0_75 = arith.constant 0 : index
    %c0_76 = arith.constant 0 : index
    %244 = vector.load %arg2[%c1, %c0_75, %c0_76] : memref<3x64x256xf32, #tpu.memory_space<vmem>>, vector<1x64x256xf32>
    %245 = vector.shape_cast %244 : vector<1x64x256xf32> to vector<64x256xf32>
    %cst_77 = arith.constant dense<0.000000e+00> : vector<16x256xf32>
    %246 = tpu.matmul %243, %245, %cst_77 {dimension_numbers = #tpu.dot_dimension_numbers<[1], [0], [0], [1], [0, 0, 1, 1], [], []>} : vector<16x64xf32>, vector<64x256xf32>, vector<16x256xf32> -> vector<16x256xf32>
    %c1_78 = arith.constant 1 : index
    %c0_79 = arith.constant 0 : index
    %c0_80 = arith.constant 0 : index
    %247 = vector.load %arg4[%c1_78, %c0_79, %c0_80] : memref<3x1x256xf32, #tpu.memory_space<vmem>>, vector<1x1x256xf32>
    %248 = vector.shape_cast %247 : vector<1x1x256xf32> to vector<1x256xf32>
    %249 = vector.broadcast %248 : vector<1x256xf32> to vector<16x256xf32>
    %250 = arith.addf %246, %249 : vector<16x256xf32>
    %cst_81 = arith.constant 0.000000e+00 : f32
    %251 = vector.broadcast %cst_81 : f32 to vector<4x32xf32>
    %cst_82 = arith.constant 0.000000e+00 : f32
    %252 = vector.broadcast %cst_82 : f32 to vector<4x32xf32>
    %253 = vector.extract_strided_slice %250 {offsets = [0, 0], sizes = [2, 128], strides = [1, 1]} : vector<16x256xf32> to vector<2x128xf32>
    %254 = vector.extract_strided_slice %250 {offsets = [14, 128], sizes = [2, 128], strides = [1, 1]} : vector<16x256xf32> to vector<2x128xf32>
    %255 = tpu.concatenate %253, %254 in 0 : vector<2x128xf32>, vector<2x128xf32> -> vector<4x128xf32>
    %c1_83 = arith.constant 1 : index
    %c0_84 = arith.constant 0 : index
    %c0_85 = arith.constant 0 : index
    %256 = vector.load %arg3[%c1_83, %c0_84, %c0_85] : memref<3x32x256xf32, #tpu.memory_space<vmem>>, vector<1x32x256xf32>
    %257 = vector.shape_cast %256 : vector<1x32x256xf32> to vector<32x256xf32>
    %cst_86 = arith.constant dense<0.000000e+00> : vector<4x256xf32>
    %258 = tpu.matmul %251, %257, %cst_86 {dimension_numbers = #tpu.dot_dimension_numbers<[1], [0], [0], [1], [0, 0, 1, 1], [], []>} : vector<4x32xf32>, vector<32x256xf32>, vector<4x256xf32> -> vector<4x256xf32>
    %259 = vector.extract_strided_slice %258 {offsets = [0, 0], sizes = [4, 128], strides = [1, 1]} : vector<4x256xf32> to vector<4x128xf32>
    %260 = vector.extract_strided_slice %258 {offsets = [0, 128], sizes = [4, 128], strides = [1, 1]} : vector<4x256xf32> to vector<4x128xf32>
    %261 = arith.select %14, %259, %260 : vector<4x128xi1>, vector<4x128xf32>
    %262 = arith.addf %261, %255 : vector<4x128xf32>
    %263 = arith.mulf %262, %8 : vector<4x128xf32>
    %264 = math.tanh %263 : vector<4x128xf32>
    %265 = arith.mulf %264, %8 : vector<4x128xf32>
    %266 = arith.addf %265, %11 : vector<4x128xf32>
    %267 = vector.extract_strided_slice %266 {offsets = [0, 0], sizes = [4, 32], strides = [1, 1]} : vector<4x128xf32> to vector<4x32xf32>
    %268 = vector.extract_strided_slice %266 {offsets = [0, 32], sizes = [4, 32], strides = [1, 1]} : vector<4x128xf32> to vector<4x32xf32>
    %269 = vector.extract_strided_slice %266 {offsets = [0, 64], sizes = [4, 32], strides = [1, 1]} : vector<4x128xf32> to vector<4x32xf32>
    %270 = vector.extract_strided_slice %266 {offsets = [0, 96], sizes = [4, 32], strides = [1, 1]} : vector<4x128xf32> to vector<4x32xf32>
    %271 = arith.mulf %268, %252 : vector<4x32xf32>
    %272 = arith.mulf %267, %269 : vector<4x32xf32>
    %273 = arith.addf %271, %272 : vector<4x32xf32>
    %274 = math.tanh %273 : vector<4x32xf32>
    %275 = arith.mulf %270, %274 : vector<4x32xf32>
    %276 = vector.extract_strided_slice %275 {offsets = [0, 0], sizes = [2, 32], strides = [1, 1]} : vector<4x32xf32> to vector<2x32xf32>
    %c0_87 = arith.constant 0 : index
    %c0_88 = arith.constant 0 : index
    %277 = vector.load %arg8[%c0_87, %c0_88] : memref<16x64xf32, #tpu.memory_space<vmem>>, vector<2x32xf32>
    tpu.vector_store %arg8[%c0_87, %c0_88], %276 {strides = array<i32>} : memref<16x64xf32, #tpu.memory_space<vmem>>, vector<2x32xf32>,
    %278 = vector.extract_strided_slice %275 {offsets = [2, 0], sizes = [2, 32], strides = [1, 1]} : vector<4x32xf32> to vector<2x32xf32>
    %c14_89 = arith.constant 14 : index
    %c32_90 = arith.constant 32 : index
    %279 = vector.load %arg8[%c14_89, %c32_90] : memref<16x64xf32, #tpu.memory_space<vmem>>, vector<2x32xf32>
    tpu.vector_store %arg8[%c14_89, %c32_90], %278 {strides = array<i32>} : memref<16x64xf32, #tpu.memory_space<vmem>>, vector<2x32xf32>,
    %280 = vector.extract_strided_slice %250 {offsets = [2, 0], sizes = [2, 128], strides = [1, 1]} : vector<16x256xf32> to vector<2x128xf32>
    %281 = vector.extract_strided_slice %250 {offsets = [12, 128], sizes = [2, 128], strides = [1, 1]} : vector<16x256xf32> to vector<2x128xf32>
    %282 = tpu.concatenate %280, %281 in 0 : vector<2x128xf32>, vector<2x128xf32> -> vector<4x128xf32>
    %c1_91 = arith.constant 1 : index
    %c0_92 = arith.constant 0 : index
    %c0_93 = arith.constant 0 : index
    %283 = vector.load %arg3[%c1_91, %c0_92, %c0_93] : memref<3x32x256xf32, #tpu.memory_space<vmem>>, vector<1x32x256xf32>
    %284 = vector.shape_cast %283 : vector<1x32x256xf32> to vector<32x256xf32>
    %cst_94 = arith.constant dense<0.000000e+00> : vector<4x256xf32>
    %285 = tpu.matmul %275, %284, %cst_94 {dimension_numbers = #tpu.dot_dimension_numbers<[1], [0], [0], [1], [0, 0, 1, 1], [], []>} : vector<4x32xf32>, vector<32x256xf32>, vector<4x256xf32> -> vector<4x256xf32>
    %286 = vector.extract_strided_slice %285 {offsets = [0, 0], sizes = [4, 128], strides = [1, 1]} : vector<4x256xf32> to vector<4x128xf32>
    %287 = vector.extract_strided_slice %285 {offsets = [0, 128], sizes = [4, 128], strides = [1, 1]} : vector<4x256xf32> to vector<4x128xf32>
    %288 = arith.select %14, %286, %287 : vector<4x128xi1>, vector<4x128xf32>
    %289 = arith.addf %288, %282 : vector<4x128xf32>
    %290 = arith.mulf %289, %8 : vector<4x128xf32>
    %291 = math.tanh %290 : vector<4x128xf32>
    %292 = arith.mulf %291, %8 : vector<4x128xf32>
    %293 = arith.addf %292, %11 : vector<4x128xf32>
    %294 = vector.extract_strided_slice %293 {offsets = [0, 0], sizes = [4, 32], strides = [1, 1]} : vector<4x128xf32> to vector<4x32xf32>
    %295 = vector.extract_strided_slice %293 {offsets = [0, 32], sizes = [4, 32], strides = [1, 1]} : vector<4x128xf32> to vector<4x32xf32>
    %296 = vector.extract_strided_slice %293 {offsets = [0, 64], sizes = [4, 32], strides = [1, 1]} : vector<4x128xf32> to vector<4x32xf32>
    %297 = vector.extract_strided_slice %293 {offsets = [0, 96], sizes = [4, 32], strides = [1, 1]} : vector<4x128xf32> to vector<4x32xf32>
    %298 = arith.mulf %295, %273 : vector<4x32xf32>
    %299 = arith.mulf %294, %296 : vector<4x32xf32>
    %300 = arith.addf %298, %299 : vector<4x32xf32>
    %301 = math.tanh %300 : vector<4x32xf32>
    %302 = arith.mulf %297, %301 : vector<4x32xf32>
    %303 = vector.extract_strided_slice %302 {offsets = [0, 0], sizes = [2, 32], strides = [1, 1]} : vector<4x32xf32> to vector<2x32xf32>
    %c2_95 = arith.constant 2 : index
    %c0_96 = arith.constant 0 : index
    %304 = vector.load %arg8[%c2_95, %c0_96] : memref<16x64xf32, #tpu.memory_space<vmem>>, vector<2x32xf32>
    tpu.vector_store %arg8[%c2_95, %c0_96], %303 {strides = array<i32>} : memref<16x64xf32, #tpu.memory_space<vmem>>, vector<2x32xf32>,
    %305 = vector.extract_strided_slice %302 {offsets = [2, 0], sizes = [2, 32], strides = [1, 1]} : vector<4x32xf32> to vector<2x32xf32>
    %c12_97 = arith.constant 12 : index
    %c32_98 = arith.constant 32 : index
    %306 = vector.load %arg8[%c12_97, %c32_98] : memref<16x64xf32, #tpu.memory_space<vmem>>, vector<2x32xf32>
    tpu.vector_store %arg8[%c12_97, %c32_98], %305 {strides = array<i32>} : memref<16x64xf32, #tpu.memory_space<vmem>>, vector<2x32xf32>,
    %307 = vector.extract_strided_slice %250 {offsets = [4, 0], sizes = [2, 128], strides = [1, 1]} : vector<16x256xf32> to vector<2x128xf32>
    %308 = vector.extract_strided_slice %250 {offsets = [10, 128], sizes = [2, 128], strides = [1, 1]} : vector<16x256xf32> to vector<2x128xf32>
    %309 = tpu.concatenate %307, %308 in 0 : vector<2x128xf32>, vector<2x128xf32> -> vector<4x128xf32>
    %c1_99 = arith.constant 1 : index
    %c0_100 = arith.constant 0 : index
    %c0_101 = arith.constant 0 : index
    %310 = vector.load %arg3[%c1_99, %c0_100, %c0_101] : memref<3x32x256xf32, #tpu.memory_space<vmem>>, vector<1x32x256xf32>
    %311 = vector.shape_cast %310 : vector<1x32x256xf32> to vector<32x256xf32>
    %cst_102 = arith.constant dense<0.000000e+00> : vector<4x256xf32>
    %312 = tpu.matmul %302, %311, %cst_102 {dimension_numbers = #tpu.dot_dimension_numbers<[1], [0], [0], [1], [0, 0, 1, 1], [], []>} : vector<4x32xf32>, vector<32x256xf32>, vector<4x256xf32> -> vector<4x256xf32>
    %313 = vector.extract_strided_slice %312 {offsets = [0, 0], sizes = [4, 128], strides = [1, 1]} : vector<4x256xf32> to vector<4x128xf32>
    %314 = vector.extract_strided_slice %312 {offsets = [0, 128], sizes = [4, 128], strides = [1, 1]} : vector<4x256xf32> to vector<4x128xf32>
    %315 = arith.select %14, %313, %314 : vector<4x128xi1>, vector<4x128xf32>
    %316 = arith.addf %315, %309 : vector<4x128xf32>
    %317 = arith.mulf %316, %8 : vector<4x128xf32>
    %318 = math.tanh %317 : vector<4x128xf32>
    %319 = arith.mulf %318, %8 : vector<4x128xf32>
    %320 = arith.addf %319, %11 : vector<4x128xf32>
    %321 = vector.extract_strided_slice %320 {offsets = [0, 0], sizes = [4, 32], strides = [1, 1]} : vector<4x128xf32> to vector<4x32xf32>
    %322 = vector.extract_strided_slice %320 {offsets = [0, 32], sizes = [4, 32], strides = [1, 1]} : vector<4x128xf32> to vector<4x32xf32>
    %323 = vector.extract_strided_slice %320 {offsets = [0, 64], sizes = [4, 32], strides = [1, 1]} : vector<4x128xf32> to vector<4x32xf32>
    %324 = vector.extract_strided_slice %320 {offsets = [0, 96], sizes = [4, 32], strides = [1, 1]} : vector<4x128xf32> to vector<4x32xf32>
    %325 = arith.mulf %322, %300 : vector<4x32xf32>
    %326 = arith.mulf %321, %323 : vector<4x32xf32>
    %327 = arith.addf %325, %326 : vector<4x32xf32>
    %328 = math.tanh %327 : vector<4x32xf32>
    %329 = arith.mulf %324, %328 : vector<4x32xf32>
    %330 = vector.extract_strided_slice %329 {offsets = [0, 0], sizes = [2, 32], strides = [1, 1]} : vector<4x32xf32> to vector<2x32xf32>
    %c4_103 = arith.constant 4 : index
    %c0_104 = arith.constant 0 : index
    %331 = vector.load %arg8[%c4_103, %c0_104] : memref<16x64xf32, #tpu.memory_space<vmem>>, vector<2x32xf32>
    tpu.vector_store %arg8[%c4_103, %c0_104], %330 {strides = array<i32>} : memref<16x64xf32, #tpu.memory_space<vmem>>, vector<2x32xf32>,
    %332 = vector.extract_strided_slice %329 {offsets = [2, 0], sizes = [2, 32], strides = [1, 1]} : vector<4x32xf32> to vector<2x32xf32>
    %c10_105 = arith.constant 10 : index
    %c32_106 = arith.constant 32 : index
    %333 = vector.load %arg8[%c10_105, %c32_106] : memref<16x64xf32, #tpu.memory_space<vmem>>, vector<2x32xf32>
    tpu.vector_store %arg8[%c10_105, %c32_106], %332 {strides = array<i32>} : memref<16x64xf32, #tpu.memory_space<vmem>>, vector<2x32xf32>,
    %334 = vector.extract_strided_slice %250 {offsets = [6, 0], sizes = [2, 128], strides = [1, 1]} : vector<16x256xf32> to vector<2x128xf32>
    %335 = vector.extract_strided_slice %250 {offsets = [8, 128], sizes = [2, 128], strides = [1, 1]} : vector<16x256xf32> to vector<2x128xf32>
    %336 = tpu.concatenate %334, %335 in 0 : vector<2x128xf32>, vector<2x128xf32> -> vector<4x128xf32>
    %c1_107 = arith.constant 1 : index
    %c0_108 = arith.constant 0 : index
    %c0_109 = arith.constant 0 : index
    %337 = vector.load %arg3[%c1_107, %c0_108, %c0_109] : memref<3x32x256xf32, #tpu.memory_space<vmem>>, vector<1x32x256xf32>
    %338 = vector.shape_cast %337 : vector<1x32x256xf32> to vector<32x256xf32>
    %cst_110 = arith.constant dense<0.000000e+00> : vector<4x256xf32>
    %339 = tpu.matmul %329, %338, %cst_110 {dimension_numbers = #tpu.dot_dimension_numbers<[1], [0], [0], [1], [0, 0, 1, 1], [], []>} : vector<4x32xf32>, vector<32x256xf32>, vector<4x256xf32> -> vector<4x256xf32>
    %340 = vector.extract_strided_slice %339 {offsets = [0, 0], sizes = [4, 128], strides = [1, 1]} : vector<4x256xf32> to vector<4x128xf32>
    %341 = vector.extract_strided_slice %339 {offsets = [0, 128], sizes = [4, 128], strides = [1, 1]} : vector<4x256xf32> to vector<4x128xf32>
    %342 = arith.select %14, %340, %341 : vector<4x128xi1>, vector<4x128xf32>
    %343 = arith.addf %342, %336 : vector<4x128xf32>
    %344 = arith.mulf %343, %8 : vector<4x128xf32>
    %345 = math.tanh %344 : vector<4x128xf32>
    %346 = arith.mulf %345, %8 : vector<4x128xf32>
    %347 = arith.addf %346, %11 : vector<4x128xf32>
    %348 = vector.extract_strided_slice %347 {offsets = [0, 0], sizes = [4, 32], strides = [1, 1]} : vector<4x128xf32> to vector<4x32xf32>
    %349 = vector.extract_strided_slice %347 {offsets = [0, 32], sizes = [4, 32], strides = [1, 1]} : vector<4x128xf32> to vector<4x32xf32>
    %350 = vector.extract_strided_slice %347 {offsets = [0, 64], sizes = [4, 32], strides = [1, 1]} : vector<4x128xf32> to vector<4x32xf32>
    %351 = vector.extract_strided_slice %347 {offsets = [0, 96], sizes = [4, 32], strides = [1, 1]} : vector<4x128xf32> to vector<4x32xf32>
    %352 = arith.mulf %349, %327 : vector<4x32xf32>
    %353 = arith.mulf %348, %350 : vector<4x32xf32>
    %354 = arith.addf %352, %353 : vector<4x32xf32>
    %355 = math.tanh %354 : vector<4x32xf32>
    %356 = arith.mulf %351, %355 : vector<4x32xf32>
    %357 = vector.extract_strided_slice %356 {offsets = [0, 0], sizes = [2, 32], strides = [1, 1]} : vector<4x32xf32> to vector<2x32xf32>
    %c6_111 = arith.constant 6 : index
    %c0_112 = arith.constant 0 : index
    %358 = vector.load %arg8[%c6_111, %c0_112] : memref<16x64xf32, #tpu.memory_space<vmem>>, vector<2x32xf32>
    tpu.vector_store %arg8[%c6_111, %c0_112], %357 {strides = array<i32>} : memref<16x64xf32, #tpu.memory_space<vmem>>, vector<2x32xf32>,
    %359 = vector.extract_strided_slice %356 {offsets = [2, 0], sizes = [2, 32], strides = [1, 1]} : vector<4x32xf32> to vector<2x32xf32>
    %c8_113 = arith.constant 8 : index
    %c32_114 = arith.constant 32 : index
    %360 = vector.load %arg8[%c8_113, %c32_114] : memref<16x64xf32, #tpu.memory_space<vmem>>, vector<2x32xf32>
    tpu.vector_store %arg8[%c8_113, %c32_114], %359 {strides = array<i32>} : memref<16x64xf32, #tpu.memory_space<vmem>>, vector<2x32xf32>,
    %361 = vector.extract_strided_slice %250 {offsets = [8, 0], sizes = [2, 128], strides = [1, 1]} : vector<16x256xf32> to vector<2x128xf32>
    %362 = vector.extract_strided_slice %250 {offsets = [6, 128], sizes = [2, 128], strides = [1, 1]} : vector<16x256xf32> to vector<2x128xf32>
    %363 = tpu.concatenate %361, %362 in 0 : vector<2x128xf32>, vector<2x128xf32> -> vector<4x128xf32>
    %c1_115 = arith.constant 1 : index
    %c0_116 = arith.constant 0 : index
    %c0_117 = arith.constant 0 : index
    %364 = vector.load %arg3[%c1_115, %c0_116, %c0_117] : memref<3x32x256xf32, #tpu.memory_space<vmem>>, vector<1x32x256xf32>
    %365 = vector.shape_cast %364 : vector<1x32x256xf32> to vector<32x256xf32>
    %cst_118 = arith.constant dense<0.000000e+00> : vector<4x256xf32>
    %366 = tpu.matmul %356, %365, %cst_118 {dimension_numbers = #tpu.dot_dimension_numbers<[1], [0], [0], [1], [0, 0, 1, 1], [], []>} : vector<4x32xf32>, vector<32x256xf32>, vector<4x256xf32> -> vector<4x256xf32>
    %367 = vector.extract_strided_slice %366 {offsets = [0, 0], sizes = [4, 128], strides = [1, 1]} : vector<4x256xf32> to vector<4x128xf32>
    %368 = vector.extract_strided_slice %366 {offsets = [0, 128], sizes = [4, 128], strides = [1, 1]} : vector<4x256xf32> to vector<4x128xf32>
    %369 = arith.select %14, %367, %368 : vector<4x128xi1>, vector<4x128xf32>
    %370 = arith.addf %369, %363 : vector<4x128xf32>
    %371 = arith.mulf %370, %8 : vector<4x128xf32>
    %372 = math.tanh %371 : vector<4x128xf32>
    %373 = arith.mulf %372, %8 : vector<4x128xf32>
    %374 = arith.addf %373, %11 : vector<4x128xf32>
    %375 = vector.extract_strided_slice %374 {offsets = [0, 0], sizes = [4, 32], strides = [1, 1]} : vector<4x128xf32> to vector<4x32xf32>
    %376 = vector.extract_strided_slice %374 {offsets = [0, 32], sizes = [4, 32], strides = [1, 1]} : vector<4x128xf32> to vector<4x32xf32>
    %377 = vector.extract_strided_slice %374 {offsets = [0, 64], sizes = [4, 32], strides = [1, 1]} : vector<4x128xf32> to vector<4x32xf32>
    %378 = vector.extract_strided_slice %374 {offsets = [0, 96], sizes = [4, 32], strides = [1, 1]} : vector<4x128xf32> to vector<4x32xf32>
    %379 = arith.mulf %376, %354 : vector<4x32xf32>
    %380 = arith.mulf %375, %377 : vector<4x32xf32>
    %381 = arith.addf %379, %380 : vector<4x32xf32>
    %382 = math.tanh %381 : vector<4x32xf32>
    %383 = arith.mulf %378, %382 : vector<4x32xf32>
    %384 = vector.extract_strided_slice %383 {offsets = [0, 0], sizes = [2, 32], strides = [1, 1]} : vector<4x32xf32> to vector<2x32xf32>
    %c8_119 = arith.constant 8 : index
    %c0_120 = arith.constant 0 : index
    %385 = vector.load %arg8[%c8_119, %c0_120] : memref<16x64xf32, #tpu.memory_space<vmem>>, vector<2x32xf32>
    tpu.vector_store %arg8[%c8_119, %c0_120], %384 {strides = array<i32>} : memref<16x64xf32, #tpu.memory_space<vmem>>, vector<2x32xf32>,
    %386 = vector.extract_strided_slice %383 {offsets = [2, 0], sizes = [2, 32], strides = [1, 1]} : vector<4x32xf32> to vector<2x32xf32>
    %c6_121 = arith.constant 6 : index
    %c32_122 = arith.constant 32 : index
    %387 = vector.load %arg8[%c6_121, %c32_122] : memref<16x64xf32, #tpu.memory_space<vmem>>, vector<2x32xf32>
    tpu.vector_store %arg8[%c6_121, %c32_122], %386 {strides = array<i32>} : memref<16x64xf32, #tpu.memory_space<vmem>>, vector<2x32xf32>,
    %388 = vector.extract_strided_slice %250 {offsets = [10, 0], sizes = [2, 128], strides = [1, 1]} : vector<16x256xf32> to vector<2x128xf32>
    %389 = vector.extract_strided_slice %250 {offsets = [4, 128], sizes = [2, 128], strides = [1, 1]} : vector<16x256xf32> to vector<2x128xf32>
    %390 = tpu.concatenate %388, %389 in 0 : vector<2x128xf32>, vector<2x128xf32> -> vector<4x128xf32>
    %c1_123 = arith.constant 1 : index
    %c0_124 = arith.constant 0 : index
    %c0_125 = arith.constant 0 : index
    %391 = vector.load %arg3[%c1_123, %c0_124, %c0_125] : memref<3x32x256xf32, #tpu.memory_space<vmem>>, vector<1x32x256xf32>
    %392 = vector.shape_cast %391 : vector<1x32x256xf32> to vector<32x256xf32>
    %cst_126 = arith.constant dense<0.000000e+00> : vector<4x256xf32>
    %393 = tpu.matmul %383, %392, %cst_126 {dimension_numbers = #tpu.dot_dimension_numbers<[1], [0], [0], [1], [0, 0, 1, 1], [], []>} : vector<4x32xf32>, vector<32x256xf32>, vector<4x256xf32> -> vector<4x256xf32>
    %394 = vector.extract_strided_slice %393 {offsets = [0, 0], sizes = [4, 128], strides = [1, 1]} : vector<4x256xf32> to vector<4x128xf32>
    %395 = vector.extract_strided_slice %393 {offsets = [0, 128], sizes = [4, 128], strides = [1, 1]} : vector<4x256xf32> to vector<4x128xf32>
    %396 = arith.select %14, %394, %395 : vector<4x128xi1>, vector<4x128xf32>
    %397 = arith.addf %396, %390 : vector<4x128xf32>
    %398 = arith.mulf %397, %8 : vector<4x128xf32>
    %399 = math.tanh %398 : vector<4x128xf32>
    %400 = arith.mulf %399, %8 : vector<4x128xf32>
    %401 = arith.addf %400, %11 : vector<4x128xf32>
    %402 = vector.extract_strided_slice %401 {offsets = [0, 0], sizes = [4, 32], strides = [1, 1]} : vector<4x128xf32> to vector<4x32xf32>
    %403 = vector.extract_strided_slice %401 {offsets = [0, 32], sizes = [4, 32], strides = [1, 1]} : vector<4x128xf32> to vector<4x32xf32>
    %404 = vector.extract_strided_slice %401 {offsets = [0, 64], sizes = [4, 32], strides = [1, 1]} : vector<4x128xf32> to vector<4x32xf32>
    %405 = vector.extract_strided_slice %401 {offsets = [0, 96], sizes = [4, 32], strides = [1, 1]} : vector<4x128xf32> to vector<4x32xf32>
    %406 = arith.mulf %403, %381 : vector<4x32xf32>
    %407 = arith.mulf %402, %404 : vector<4x32xf32>
    %408 = arith.addf %406, %407 : vector<4x32xf32>
    %409 = math.tanh %408 : vector<4x32xf32>
    %410 = arith.mulf %405, %409 : vector<4x32xf32>
    %411 = vector.extract_strided_slice %410 {offsets = [0, 0], sizes = [2, 32], strides = [1, 1]} : vector<4x32xf32> to vector<2x32xf32>
    %c10_127 = arith.constant 10 : index
    %c0_128 = arith.constant 0 : index
    %412 = vector.load %arg8[%c10_127, %c0_128] : memref<16x64xf32, #tpu.memory_space<vmem>>, vector<2x32xf32>
    tpu.vector_store %arg8[%c10_127, %c0_128], %411 {strides = array<i32>} : memref<16x64xf32, #tpu.memory_space<vmem>>, vector<2x32xf32>,
    %413 = vector.extract_strided_slice %410 {offsets = [2, 0], sizes = [2, 32], strides = [1, 1]} : vector<4x32xf32> to vector<2x32xf32>
    %c4_129 = arith.constant 4 : index
    %c32_130 = arith.constant 32 : index
    %414 = vector.load %arg8[%c4_129, %c32_130] : memref<16x64xf32, #tpu.memory_space<vmem>>, vector<2x32xf32>
    tpu.vector_store %arg8[%c4_129, %c32_130], %413 {strides = array<i32>} : memref<16x64xf32, #tpu.memory_space<vmem>>, vector<2x32xf32>,
    %415 = vector.extract_strided_slice %250 {offsets = [12, 0], sizes = [2, 128], strides = [1, 1]} : vector<16x256xf32> to vector<2x128xf32>
    %416 = vector.extract_strided_slice %250 {offsets = [2, 128], sizes = [2, 128], strides = [1, 1]} : vector<16x256xf32> to vector<2x128xf32>
    %417 = tpu.concatenate %415, %416 in 0 : vector<2x128xf32>, vector<2x128xf32> -> vector<4x128xf32>
    %c1_131 = arith.constant 1 : index
    %c0_132 = arith.constant 0 : index
    %c0_133 = arith.constant 0 : index
    %418 = vector.load %arg3[%c1_131, %c0_132, %c0_133] : memref<3x32x256xf32, #tpu.memory_space<vmem>>, vector<1x32x256xf32>
    %419 = vector.shape_cast %418 : vector<1x32x256xf32> to vector<32x256xf32>
    %cst_134 = arith.constant dense<0.000000e+00> : vector<4x256xf32>
    %420 = tpu.matmul %410, %419, %cst_134 {dimension_numbers = #tpu.dot_dimension_numbers<[1], [0], [0], [1], [0, 0, 1, 1], [], []>} : vector<4x32xf32>, vector<32x256xf32>, vector<4x256xf32> -> vector<4x256xf32>
    %421 = vector.extract_strided_slice %420 {offsets = [0, 0], sizes = [4, 128], strides = [1, 1]} : vector<4x256xf32> to vector<4x128xf32>
    %422 = vector.extract_strided_slice %420 {offsets = [0, 128], sizes = [4, 128], strides = [1, 1]} : vector<4x256xf32> to vector<4x128xf32>
    %423 = arith.select %14, %421, %422 : vector<4x128xi1>, vector<4x128xf32>
    %424 = arith.addf %423, %417 : vector<4x128xf32>
    %425 = arith.mulf %424, %8 : vector<4x128xf32>
    %426 = math.tanh %425 : vector<4x128xf32>
    %427 = arith.mulf %426, %8 : vector<4x128xf32>
    %428 = arith.addf %427, %11 : vector<4x128xf32>
    %429 = vector.extract_strided_slice %428 {offsets = [0, 0], sizes = [4, 32], strides = [1, 1]} : vector<4x128xf32> to vector<4x32xf32>
    %430 = vector.extract_strided_slice %428 {offsets = [0, 32], sizes = [4, 32], strides = [1, 1]} : vector<4x128xf32> to vector<4x32xf32>
    %431 = vector.extract_strided_slice %428 {offsets = [0, 64], sizes = [4, 32], strides = [1, 1]} : vector<4x128xf32> to vector<4x32xf32>
    %432 = vector.extract_strided_slice %428 {offsets = [0, 96], sizes = [4, 32], strides = [1, 1]} : vector<4x128xf32> to vector<4x32xf32>
    %433 = arith.mulf %430, %408 : vector<4x32xf32>
    %434 = arith.mulf %429, %431 : vector<4x32xf32>
    %435 = arith.addf %433, %434 : vector<4x32xf32>
    %436 = math.tanh %435 : vector<4x32xf32>
    %437 = arith.mulf %432, %436 : vector<4x32xf32>
    %438 = vector.extract_strided_slice %437 {offsets = [0, 0], sizes = [2, 32], strides = [1, 1]} : vector<4x32xf32> to vector<2x32xf32>
    %c12_135 = arith.constant 12 : index
    %c0_136 = arith.constant 0 : index
    %439 = vector.load %arg8[%c12_135, %c0_136] : memref<16x64xf32, #tpu.memory_space<vmem>>, vector<2x32xf32>
    tpu.vector_store %arg8[%c12_135, %c0_136], %438 {strides = array<i32>} : memref<16x64xf32, #tpu.memory_space<vmem>>, vector<2x32xf32>,
    %440 = vector.extract_strided_slice %437 {offsets = [2, 0], sizes = [2, 32], strides = [1, 1]} : vector<4x32xf32> to vector<2x32xf32>
    %c2_137 = arith.constant 2 : index
    %c32_138 = arith.constant 32 : index
    %441 = vector.load %arg8[%c2_137, %c32_138] : memref<16x64xf32, #tpu.memory_space<vmem>>, vector<2x32xf32>
    tpu.vector_store %arg8[%c2_137, %c32_138], %440 {strides = array<i32>} : memref<16x64xf32, #tpu.memory_space<vmem>>, vector<2x32xf32>,
    %442 = vector.extract_strided_slice %250 {offsets = [14, 0], sizes = [2, 128], strides = [1, 1]} : vector<16x256xf32> to vector<2x128xf32>
    %443 = vector.extract_strided_slice %250 {offsets = [0, 128], sizes = [2, 128], strides = [1, 1]} : vector<16x256xf32> to vector<2x128xf32>
    %444 = tpu.concatenate %442, %443 in 0 : vector<2x128xf32>, vector<2x128xf32> -> vector<4x128xf32>
    %c1_139 = arith.constant 1 : index
    %c0_140 = arith.constant 0 : index
    %c0_141 = arith.constant 0 : index
    %445 = vector.load %arg3[%c1_139, %c0_140, %c0_141] : memref<3x32x256xf32, #tpu.memory_space<vmem>>, vector<1x32x256xf32>
    %446 = vector.shape_cast %445 : vector<1x32x256xf32> to vector<32x256xf32>
    %cst_142 = arith.constant dense<0.000000e+00> : vector<4x256xf32>
    %447 = tpu.matmul %437, %446, %cst_142 {dimension_numbers = #tpu.dot_dimension_numbers<[1], [0], [0], [1], [0, 0, 1, 1], [], []>} : vector<4x32xf32>, vector<32x256xf32>, vector<4x256xf32> -> vector<4x256xf32>
    %448 = vector.extract_strided_slice %447 {offsets = [0, 0], sizes = [4, 128], strides = [1, 1]} : vector<4x256xf32> to vector<4x128xf32>
    %449 = vector.extract_strided_slice %447 {offsets = [0, 128], sizes = [4, 128], strides = [1, 1]} : vector<4x256xf32> to vector<4x128xf32>
    %450 = arith.select %14, %448, %449 : vector<4x128xi1>, vector<4x128xf32>
    %451 = arith.addf %450, %444 : vector<4x128xf32>
    %452 = arith.mulf %451, %8 : vector<4x128xf32>
    %453 = math.tanh %452 : vector<4x128xf32>
    %454 = arith.mulf %453, %8 : vector<4x128xf32>
    %455 = arith.addf %454, %11 : vector<4x128xf32>
    %456 = vector.extract_strided_slice %455 {offsets = [0, 0], sizes = [4, 32], strides = [1, 1]} : vector<4x128xf32> to vector<4x32xf32>
    %457 = vector.extract_strided_slice %455 {offsets = [0, 32], sizes = [4, 32], strides = [1, 1]} : vector<4x128xf32> to vector<4x32xf32>
    %458 = vector.extract_strided_slice %455 {offsets = [0, 64], sizes = [4, 32], strides = [1, 1]} : vector<4x128xf32> to vector<4x32xf32>
    %459 = vector.extract_strided_slice %455 {offsets = [0, 96], sizes = [4, 32], strides = [1, 1]} : vector<4x128xf32> to vector<4x32xf32>
    %460 = arith.mulf %457, %435 : vector<4x32xf32>
    %461 = arith.mulf %456, %458 : vector<4x32xf32>
    %462 = arith.addf %460, %461 : vector<4x32xf32>
    %463 = math.tanh %462 : vector<4x32xf32>
    %464 = arith.mulf %459, %463 : vector<4x32xf32>
    %465 = vector.extract_strided_slice %464 {offsets = [0, 0], sizes = [2, 32], strides = [1, 1]} : vector<4x32xf32> to vector<2x32xf32>
    %c14_143 = arith.constant 14 : index
    %c0_144 = arith.constant 0 : index
    %466 = vector.load %arg8[%c14_143, %c0_144] : memref<16x64xf32, #tpu.memory_space<vmem>>, vector<2x32xf32>
    tpu.vector_store %arg8[%c14_143, %c0_144], %465 {strides = array<i32>} : memref<16x64xf32, #tpu.memory_space<vmem>>, vector<2x32xf32>,
    %467 = vector.extract_strided_slice %464 {offsets = [2, 0], sizes = [2, 32], strides = [1, 1]} : vector<4x32xf32> to vector<2x32xf32>
    %c0_145 = arith.constant 0 : index
    %c32_146 = arith.constant 32 : index
    %468 = vector.load %arg8[%c0_145, %c32_146] : memref<16x64xf32, #tpu.memory_space<vmem>>, vector<2x32xf32>
    tpu.vector_store %arg8[%c0_145, %c32_146], %467 {strides = array<i32>} : memref<16x64xf32, #tpu.memory_space<vmem>>, vector<2x32xf32>,
    %c0_147 = arith.constant 0 : index
    %c0_148 = arith.constant 0 : index
    %469 = vector.load %arg8[%c0_147, %c0_148] : memref<16x64xf32, #tpu.memory_space<vmem>>, vector<16x64xf32>
    %c2_149 = arith.constant 2 : index
    %c0_150 = arith.constant 0 : index
    %c0_151 = arith.constant 0 : index
    %470 = vector.load %arg2[%c2_149, %c0_150, %c0_151] : memref<3x64x256xf32, #tpu.memory_space<vmem>>, vector<1x64x256xf32>
    %471 = vector.shape_cast %470 : vector<1x64x256xf32> to vector<64x256xf32>
    %cst_152 = arith.constant dense<0.000000e+00> : vector<16x256xf32>
    %472 = tpu.matmul %469, %471, %cst_152 {dimension_numbers = #tpu.dot_dimension_numbers<[1], [0], [0], [1], [0, 0, 1, 1], [], []>} : vector<16x64xf32>, vector<64x256xf32>, vector<16x256xf32> -> vector<16x256xf32>
    %c2_153 = arith.constant 2 : index
    %c0_154 = arith.constant 0 : index
    %c0_155 = arith.constant 0 : index
    %473 = vector.load %arg4[%c2_153, %c0_154, %c0_155] : memref<3x1x256xf32, #tpu.memory_space<vmem>>, vector<1x1x256xf32>
    %474 = vector.shape_cast %473 : vector<1x1x256xf32> to vector<1x256xf32>
    %475 = vector.broadcast %474 : vector<1x256xf32> to vector<16x256xf32>
    %476 = arith.addf %472, %475 : vector<16x256xf32>
    %cst_156 = arith.constant 0.000000e+00 : f32
    %477 = vector.broadcast %cst_156 : f32 to vector<4x32xf32>
    %cst_157 = arith.constant 0.000000e+00 : f32
    %478 = vector.broadcast %cst_157 : f32 to vector<4x32xf32>
    %479 = vector.extract_strided_slice %476 {offsets = [0, 0], sizes = [2, 128], strides = [1, 1]} : vector<16x256xf32> to vector<2x128xf32>
    %480 = vector.extract_strided_slice %476 {offsets = [14, 128], sizes = [2, 128], strides = [1, 1]} : vector<16x256xf32> to vector<2x128xf32>
    %481 = tpu.concatenate %479, %480 in 0 : vector<2x128xf32>, vector<2x128xf32> -> vector<4x128xf32>
    %c2_158 = arith.constant 2 : index
    %c0_159 = arith.constant 0 : index
    %c0_160 = arith.constant 0 : index
    %482 = vector.load %arg3[%c2_158, %c0_159, %c0_160] : memref<3x32x256xf32, #tpu.memory_space<vmem>>, vector<1x32x256xf32>
    %483 = vector.shape_cast %482 : vector<1x32x256xf32> to vector<32x256xf32>
    %cst_161 = arith.constant dense<0.000000e+00> : vector<4x256xf32>
    %484 = tpu.matmul %477, %483, %cst_161 {dimension_numbers = #tpu.dot_dimension_numbers<[1], [0], [0], [1], [0, 0, 1, 1], [], []>} : vector<4x32xf32>, vector<32x256xf32>, vector<4x256xf32> -> vector<4x256xf32>
    %485 = vector.extract_strided_slice %484 {offsets = [0, 0], sizes = [4, 128], strides = [1, 1]} : vector<4x256xf32> to vector<4x128xf32>
    %486 = vector.extract_strided_slice %484 {offsets = [0, 128], sizes = [4, 128], strides = [1, 1]} : vector<4x256xf32> to vector<4x128xf32>
    %487 = arith.select %14, %485, %486 : vector<4x128xi1>, vector<4x128xf32>
    %488 = arith.addf %487, %481 : vector<4x128xf32>
    %489 = arith.mulf %488, %8 : vector<4x128xf32>
    %490 = math.tanh %489 : vector<4x128xf32>
    %491 = arith.mulf %490, %8 : vector<4x128xf32>
    %492 = arith.addf %491, %11 : vector<4x128xf32>
    %493 = vector.extract_strided_slice %492 {offsets = [0, 0], sizes = [4, 32], strides = [1, 1]} : vector<4x128xf32> to vector<4x32xf32>
    %494 = vector.extract_strided_slice %492 {offsets = [0, 32], sizes = [4, 32], strides = [1, 1]} : vector<4x128xf32> to vector<4x32xf32>
    %495 = vector.extract_strided_slice %492 {offsets = [0, 64], sizes = [4, 32], strides = [1, 1]} : vector<4x128xf32> to vector<4x32xf32>
    %496 = vector.extract_strided_slice %492 {offsets = [0, 96], sizes = [4, 32], strides = [1, 1]} : vector<4x128xf32> to vector<4x32xf32>
    %497 = arith.mulf %494, %478 : vector<4x32xf32>
    %498 = arith.mulf %493, %495 : vector<4x32xf32>
    %499 = arith.addf %497, %498 : vector<4x32xf32>
    %500 = math.tanh %499 : vector<4x32xf32>
    %501 = arith.mulf %496, %500 : vector<4x32xf32>
    %502 = vector.extract_strided_slice %501 {offsets = [0, 0], sizes = [2, 32], strides = [1, 1]} : vector<4x32xf32> to vector<2x32xf32>
    %c0_162 = arith.constant 0 : index
    %c0_163 = arith.constant 0 : index
    %503 = vector.load %arg8[%c0_162, %c0_163] : memref<16x64xf32, #tpu.memory_space<vmem>>, vector<2x32xf32>
    tpu.vector_store %arg8[%c0_162, %c0_163], %502 {strides = array<i32>} : memref<16x64xf32, #tpu.memory_space<vmem>>, vector<2x32xf32>,
    %504 = vector.extract_strided_slice %501 {offsets = [2, 0], sizes = [2, 32], strides = [1, 1]} : vector<4x32xf32> to vector<2x32xf32>
    %c14_164 = arith.constant 14 : index
    %c32_165 = arith.constant 32 : index
    %505 = vector.load %arg8[%c14_164, %c32_165] : memref<16x64xf32, #tpu.memory_space<vmem>>, vector<2x32xf32>
    tpu.vector_store %arg8[%c14_164, %c32_165], %504 {strides = array<i32>} : memref<16x64xf32, #tpu.memory_space<vmem>>, vector<2x32xf32>,
    %506 = vector.extract_strided_slice %476 {offsets = [2, 0], sizes = [2, 128], strides = [1, 1]} : vector<16x256xf32> to vector<2x128xf32>
    %507 = vector.extract_strided_slice %476 {offsets = [12, 128], sizes = [2, 128], strides = [1, 1]} : vector<16x256xf32> to vector<2x128xf32>
    %508 = tpu.concatenate %506, %507 in 0 : vector<2x128xf32>, vector<2x128xf32> -> vector<4x128xf32>
    %c2_166 = arith.constant 2 : index
    %c0_167 = arith.constant 0 : index
    %c0_168 = arith.constant 0 : index
    %509 = vector.load %arg3[%c2_166, %c0_167, %c0_168] : memref<3x32x256xf32, #tpu.memory_space<vmem>>, vector<1x32x256xf32>
    %510 = vector.shape_cast %509 : vector<1x32x256xf32> to vector<32x256xf32>
    %cst_169 = arith.constant dense<0.000000e+00> : vector<4x256xf32>
    %511 = tpu.matmul %501, %510, %cst_169 {dimension_numbers = #tpu.dot_dimension_numbers<[1], [0], [0], [1], [0, 0, 1, 1], [], []>} : vector<4x32xf32>, vector<32x256xf32>, vector<4x256xf32> -> vector<4x256xf32>
    %512 = vector.extract_strided_slice %511 {offsets = [0, 0], sizes = [4, 128], strides = [1, 1]} : vector<4x256xf32> to vector<4x128xf32>
    %513 = vector.extract_strided_slice %511 {offsets = [0, 128], sizes = [4, 128], strides = [1, 1]} : vector<4x256xf32> to vector<4x128xf32>
    %514 = arith.select %14, %512, %513 : vector<4x128xi1>, vector<4x128xf32>
    %515 = arith.addf %514, %508 : vector<4x128xf32>
    %516 = arith.mulf %515, %8 : vector<4x128xf32>
    %517 = math.tanh %516 : vector<4x128xf32>
    %518 = arith.mulf %517, %8 : vector<4x128xf32>
    %519 = arith.addf %518, %11 : vector<4x128xf32>
    %520 = vector.extract_strided_slice %519 {offsets = [0, 0], sizes = [4, 32], strides = [1, 1]} : vector<4x128xf32> to vector<4x32xf32>
    %521 = vector.extract_strided_slice %519 {offsets = [0, 32], sizes = [4, 32], strides = [1, 1]} : vector<4x128xf32> to vector<4x32xf32>
    %522 = vector.extract_strided_slice %519 {offsets = [0, 64], sizes = [4, 32], strides = [1, 1]} : vector<4x128xf32> to vector<4x32xf32>
    %523 = vector.extract_strided_slice %519 {offsets = [0, 96], sizes = [4, 32], strides = [1, 1]} : vector<4x128xf32> to vector<4x32xf32>
    %524 = arith.mulf %521, %499 : vector<4x32xf32>
    %525 = arith.mulf %520, %522 : vector<4x32xf32>
    %526 = arith.addf %524, %525 : vector<4x32xf32>
    %527 = math.tanh %526 : vector<4x32xf32>
    %528 = arith.mulf %523, %527 : vector<4x32xf32>
    %529 = vector.extract_strided_slice %528 {offsets = [0, 0], sizes = [2, 32], strides = [1, 1]} : vector<4x32xf32> to vector<2x32xf32>
    %c2_170 = arith.constant 2 : index
    %c0_171 = arith.constant 0 : index
    %530 = vector.load %arg8[%c2_170, %c0_171] : memref<16x64xf32, #tpu.memory_space<vmem>>, vector<2x32xf32>
    tpu.vector_store %arg8[%c2_170, %c0_171], %529 {strides = array<i32>} : memref<16x64xf32, #tpu.memory_space<vmem>>, vector<2x32xf32>,
    %531 = vector.extract_strided_slice %528 {offsets = [2, 0], sizes = [2, 32], strides = [1, 1]} : vector<4x32xf32> to vector<2x32xf32>
    %c12_172 = arith.constant 12 : index
    %c32_173 = arith.constant 32 : index
    %532 = vector.load %arg8[%c12_172, %c32_173] : memref<16x64xf32, #tpu.memory_space<vmem>>, vector<2x32xf32>
    tpu.vector_store %arg8[%c12_172, %c32_173], %531 {strides = array<i32>} : memref<16x64xf32, #tpu.memory_space<vmem>>, vector<2x32xf32>,
    %533 = vector.extract_strided_slice %476 {offsets = [4, 0], sizes = [2, 128], strides = [1, 1]} : vector<16x256xf32> to vector<2x128xf32>
    %534 = vector.extract_strided_slice %476 {offsets = [10, 128], sizes = [2, 128], strides = [1, 1]} : vector<16x256xf32> to vector<2x128xf32>
    %535 = tpu.concatenate %533, %534 in 0 : vector<2x128xf32>, vector<2x128xf32> -> vector<4x128xf32>
    %c2_174 = arith.constant 2 : index
    %c0_175 = arith.constant 0 : index
    %c0_176 = arith.constant 0 : index
    %536 = vector.load %arg3[%c2_174, %c0_175, %c0_176] : memref<3x32x256xf32, #tpu.memory_space<vmem>>, vector<1x32x256xf32>
    %537 = vector.shape_cast %536 : vector<1x32x256xf32> to vector<32x256xf32>
    %cst_177 = arith.constant dense<0.000000e+00> : vector<4x256xf32>
    %538 = tpu.matmul %528, %537, %cst_177 {dimension_numbers = #tpu.dot_dimension_numbers<[1], [0], [0], [1], [0, 0, 1, 1], [], []>} : vector<4x32xf32>, vector<32x256xf32>, vector<4x256xf32> -> vector<4x256xf32>
    %539 = vector.extract_strided_slice %538 {offsets = [0, 0], sizes = [4, 128], strides = [1, 1]} : vector<4x256xf32> to vector<4x128xf32>
    %540 = vector.extract_strided_slice %538 {offsets = [0, 128], sizes = [4, 128], strides = [1, 1]} : vector<4x256xf32> to vector<4x128xf32>
    %541 = arith.select %14, %539, %540 : vector<4x128xi1>, vector<4x128xf32>
    %542 = arith.addf %541, %535 : vector<4x128xf32>
    %543 = arith.mulf %542, %8 : vector<4x128xf32>
    %544 = math.tanh %543 : vector<4x128xf32>
    %545 = arith.mulf %544, %8 : vector<4x128xf32>
    %546 = arith.addf %545, %11 : vector<4x128xf32>
    %547 = vector.extract_strided_slice %546 {offsets = [0, 0], sizes = [4, 32], strides = [1, 1]} : vector<4x128xf32> to vector<4x32xf32>
    %548 = vector.extract_strided_slice %546 {offsets = [0, 32], sizes = [4, 32], strides = [1, 1]} : vector<4x128xf32> to vector<4x32xf32>
    %549 = vector.extract_strided_slice %546 {offsets = [0, 64], sizes = [4, 32], strides = [1, 1]} : vector<4x128xf32> to vector<4x32xf32>
    %550 = vector.extract_strided_slice %546 {offsets = [0, 96], sizes = [4, 32], strides = [1, 1]} : vector<4x128xf32> to vector<4x32xf32>
    %551 = arith.mulf %548, %526 : vector<4x32xf32>
    %552 = arith.mulf %547, %549 : vector<4x32xf32>
    %553 = arith.addf %551, %552 : vector<4x32xf32>
    %554 = math.tanh %553 : vector<4x32xf32>
    %555 = arith.mulf %550, %554 : vector<4x32xf32>
    %556 = vector.extract_strided_slice %555 {offsets = [0, 0], sizes = [2, 32], strides = [1, 1]} : vector<4x32xf32> to vector<2x32xf32>
    %c4_178 = arith.constant 4 : index
    %c0_179 = arith.constant 0 : index
    %557 = vector.load %arg8[%c4_178, %c0_179] : memref<16x64xf32, #tpu.memory_space<vmem>>, vector<2x32xf32>
    tpu.vector_store %arg8[%c4_178, %c0_179], %556 {strides = array<i32>} : memref<16x64xf32, #tpu.memory_space<vmem>>, vector<2x32xf32>,
    %558 = vector.extract_strided_slice %555 {offsets = [2, 0], sizes = [2, 32], strides = [1, 1]} : vector<4x32xf32> to vector<2x32xf32>
    %c10_180 = arith.constant 10 : index
    %c32_181 = arith.constant 32 : index
    %559 = vector.load %arg8[%c10_180, %c32_181] : memref<16x64xf32, #tpu.memory_space<vmem>>, vector<2x32xf32>
    tpu.vector_store %arg8[%c10_180, %c32_181], %558 {strides = array<i32>} : memref<16x64xf32, #tpu.memory_space<vmem>>, vector<2x32xf32>,
    %560 = vector.extract_strided_slice %476 {offsets = [6, 0], sizes = [2, 128], strides = [1, 1]} : vector<16x256xf32> to vector<2x128xf32>
    %561 = vector.extract_strided_slice %476 {offsets = [8, 128], sizes = [2, 128], strides = [1, 1]} : vector<16x256xf32> to vector<2x128xf32>
    %562 = tpu.concatenate %560, %561 in 0 : vector<2x128xf32>, vector<2x128xf32> -> vector<4x128xf32>
    %c2_182 = arith.constant 2 : index
    %c0_183 = arith.constant 0 : index
    %c0_184 = arith.constant 0 : index
    %563 = vector.load %arg3[%c2_182, %c0_183, %c0_184] : memref<3x32x256xf32, #tpu.memory_space<vmem>>, vector<1x32x256xf32>
    %564 = vector.shape_cast %563 : vector<1x32x256xf32> to vector<32x256xf32>
    %cst_185 = arith.constant dense<0.000000e+00> : vector<4x256xf32>
    %565 = tpu.matmul %555, %564, %cst_185 {dimension_numbers = #tpu.dot_dimension_numbers<[1], [0], [0], [1], [0, 0, 1, 1], [], []>} : vector<4x32xf32>, vector<32x256xf32>, vector<4x256xf32> -> vector<4x256xf32>
    %566 = vector.extract_strided_slice %565 {offsets = [0, 0], sizes = [4, 128], strides = [1, 1]} : vector<4x256xf32> to vector<4x128xf32>
    %567 = vector.extract_strided_slice %565 {offsets = [0, 128], sizes = [4, 128], strides = [1, 1]} : vector<4x256xf32> to vector<4x128xf32>
    %568 = arith.select %14, %566, %567 : vector<4x128xi1>, vector<4x128xf32>
    %569 = arith.addf %568, %562 : vector<4x128xf32>
    %570 = arith.mulf %569, %8 : vector<4x128xf32>
    %571 = math.tanh %570 : vector<4x128xf32>
    %572 = arith.mulf %571, %8 : vector<4x128xf32>
    %573 = arith.addf %572, %11 : vector<4x128xf32>
    %574 = vector.extract_strided_slice %573 {offsets = [0, 0], sizes = [4, 32], strides = [1, 1]} : vector<4x128xf32> to vector<4x32xf32>
    %575 = vector.extract_strided_slice %573 {offsets = [0, 32], sizes = [4, 32], strides = [1, 1]} : vector<4x128xf32> to vector<4x32xf32>
    %576 = vector.extract_strided_slice %573 {offsets = [0, 64], sizes = [4, 32], strides = [1, 1]} : vector<4x128xf32> to vector<4x32xf32>
    %577 = vector.extract_strided_slice %573 {offsets = [0, 96], sizes = [4, 32], strides = [1, 1]} : vector<4x128xf32> to vector<4x32xf32>
    %578 = arith.mulf %575, %553 : vector<4x32xf32>
    %579 = arith.mulf %574, %576 : vector<4x32xf32>
    %580 = arith.addf %578, %579 : vector<4x32xf32>
    %581 = math.tanh %580 : vector<4x32xf32>
    %582 = arith.mulf %577, %581 : vector<4x32xf32>
    %583 = vector.extract_strided_slice %582 {offsets = [0, 0], sizes = [2, 32], strides = [1, 1]} : vector<4x32xf32> to vector<2x32xf32>
    %c6_186 = arith.constant 6 : index
    %c0_187 = arith.constant 0 : index
    %584 = vector.load %arg8[%c6_186, %c0_187] : memref<16x64xf32, #tpu.memory_space<vmem>>, vector<2x32xf32>
    tpu.vector_store %arg8[%c6_186, %c0_187], %583 {strides = array<i32>} : memref<16x64xf32, #tpu.memory_space<vmem>>, vector<2x32xf32>,
    %585 = vector.extract_strided_slice %582 {offsets = [2, 0], sizes = [2, 32], strides = [1, 1]} : vector<4x32xf32> to vector<2x32xf32>
    %c8_188 = arith.constant 8 : index
    %c32_189 = arith.constant 32 : index
    %586 = vector.load %arg8[%c8_188, %c32_189] : memref<16x64xf32, #tpu.memory_space<vmem>>, vector<2x32xf32>
    tpu.vector_store %arg8[%c8_188, %c32_189], %585 {strides = array<i32>} : memref<16x64xf32, #tpu.memory_space<vmem>>, vector<2x32xf32>,
    %587 = vector.extract_strided_slice %476 {offsets = [8, 0], sizes = [2, 128], strides = [1, 1]} : vector<16x256xf32> to vector<2x128xf32>
    %588 = vector.extract_strided_slice %476 {offsets = [6, 128], sizes = [2, 128], strides = [1, 1]} : vector<16x256xf32> to vector<2x128xf32>
    %589 = tpu.concatenate %587, %588 in 0 : vector<2x128xf32>, vector<2x128xf32> -> vector<4x128xf32>
    %c2_190 = arith.constant 2 : index
    %c0_191 = arith.constant 0 : index
    %c0_192 = arith.constant 0 : index
    %590 = vector.load %arg3[%c2_190, %c0_191, %c0_192] : memref<3x32x256xf32, #tpu.memory_space<vmem>>, vector<1x32x256xf32>
    %591 = vector.shape_cast %590 : vector<1x32x256xf32> to vector<32x256xf32>
    %cst_193 = arith.constant dense<0.000000e+00> : vector<4x256xf32>
    %592 = tpu.matmul %582, %591, %cst_193 {dimension_numbers = #tpu.dot_dimension_numbers<[1], [0], [0], [1], [0, 0, 1, 1], [], []>} : vector<4x32xf32>, vector<32x256xf32>, vector<4x256xf32> -> vector<4x256xf32>
    %593 = vector.extract_strided_slice %592 {offsets = [0, 0], sizes = [4, 128], strides = [1, 1]} : vector<4x256xf32> to vector<4x128xf32>
    %594 = vector.extract_strided_slice %592 {offsets = [0, 128], sizes = [4, 128], strides = [1, 1]} : vector<4x256xf32> to vector<4x128xf32>
    %595 = arith.select %14, %593, %594 : vector<4x128xi1>, vector<4x128xf32>
    %596 = arith.addf %595, %589 : vector<4x128xf32>
    %597 = arith.mulf %596, %8 : vector<4x128xf32>
    %598 = math.tanh %597 : vector<4x128xf32>
    %599 = arith.mulf %598, %8 : vector<4x128xf32>
    %600 = arith.addf %599, %11 : vector<4x128xf32>
    %601 = vector.extract_strided_slice %600 {offsets = [0, 0], sizes = [4, 32], strides = [1, 1]} : vector<4x128xf32> to vector<4x32xf32>
    %602 = vector.extract_strided_slice %600 {offsets = [0, 32], sizes = [4, 32], strides = [1, 1]} : vector<4x128xf32> to vector<4x32xf32>
    %603 = vector.extract_strided_slice %600 {offsets = [0, 64], sizes = [4, 32], strides = [1, 1]} : vector<4x128xf32> to vector<4x32xf32>
    %604 = vector.extract_strided_slice %600 {offsets = [0, 96], sizes = [4, 32], strides = [1, 1]} : vector<4x128xf32> to vector<4x32xf32>
    %605 = arith.mulf %602, %580 : vector<4x32xf32>
    %606 = arith.mulf %601, %603 : vector<4x32xf32>
    %607 = arith.addf %605, %606 : vector<4x32xf32>
    %608 = math.tanh %607 : vector<4x32xf32>
    %609 = arith.mulf %604, %608 : vector<4x32xf32>
    %610 = vector.extract_strided_slice %609 {offsets = [0, 0], sizes = [2, 32], strides = [1, 1]} : vector<4x32xf32> to vector<2x32xf32>
    %c8_194 = arith.constant 8 : index
    %c0_195 = arith.constant 0 : index
    %611 = vector.load %arg8[%c8_194, %c0_195] : memref<16x64xf32, #tpu.memory_space<vmem>>, vector<2x32xf32>
    tpu.vector_store %arg8[%c8_194, %c0_195], %610 {strides = array<i32>} : memref<16x64xf32, #tpu.memory_space<vmem>>, vector<2x32xf32>,
    %612 = vector.extract_strided_slice %609 {offsets = [2, 0], sizes = [2, 32], strides = [1, 1]} : vector<4x32xf32> to vector<2x32xf32>
    %c6_196 = arith.constant 6 : index
    %c32_197 = arith.constant 32 : index
    %613 = vector.load %arg8[%c6_196, %c32_197] : memref<16x64xf32, #tpu.memory_space<vmem>>, vector<2x32xf32>
    tpu.vector_store %arg8[%c6_196, %c32_197], %612 {strides = array<i32>} : memref<16x64xf32, #tpu.memory_space<vmem>>, vector<2x32xf32>,
    %614 = vector.extract_strided_slice %476 {offsets = [10, 0], sizes = [2, 128], strides = [1, 1]} : vector<16x256xf32> to vector<2x128xf32>
    %615 = vector.extract_strided_slice %476 {offsets = [4, 128], sizes = [2, 128], strides = [1, 1]} : vector<16x256xf32> to vector<2x128xf32>
    %616 = tpu.concatenate %614, %615 in 0 : vector<2x128xf32>, vector<2x128xf32> -> vector<4x128xf32>
    %c2_198 = arith.constant 2 : index
    %c0_199 = arith.constant 0 : index
    %c0_200 = arith.constant 0 : index
    %617 = vector.load %arg3[%c2_198, %c0_199, %c0_200] : memref<3x32x256xf32, #tpu.memory_space<vmem>>, vector<1x32x256xf32>
    %618 = vector.shape_cast %617 : vector<1x32x256xf32> to vector<32x256xf32>
    %cst_201 = arith.constant dense<0.000000e+00> : vector<4x256xf32>
    %619 = tpu.matmul %609, %618, %cst_201 {dimension_numbers = #tpu.dot_dimension_numbers<[1], [0], [0], [1], [0, 0, 1, 1], [], []>} : vector<4x32xf32>, vector<32x256xf32>, vector<4x256xf32> -> vector<4x256xf32>
    %620 = vector.extract_strided_slice %619 {offsets = [0, 0], sizes = [4, 128], strides = [1, 1]} : vector<4x256xf32> to vector<4x128xf32>
    %621 = vector.extract_strided_slice %619 {offsets = [0, 128], sizes = [4, 128], strides = [1, 1]} : vector<4x256xf32> to vector<4x128xf32>
    %622 = arith.select %14, %620, %621 : vector<4x128xi1>, vector<4x128xf32>
    %623 = arith.addf %622, %616 : vector<4x128xf32>
    %624 = arith.mulf %623, %8 : vector<4x128xf32>
    %625 = math.tanh %624 : vector<4x128xf32>
    %626 = arith.mulf %625, %8 : vector<4x128xf32>
    %627 = arith.addf %626, %11 : vector<4x128xf32>
    %628 = vector.extract_strided_slice %627 {offsets = [0, 0], sizes = [4, 32], strides = [1, 1]} : vector<4x128xf32> to vector<4x32xf32>
    %629 = vector.extract_strided_slice %627 {offsets = [0, 32], sizes = [4, 32], strides = [1, 1]} : vector<4x128xf32> to vector<4x32xf32>
    %630 = vector.extract_strided_slice %627 {offsets = [0, 64], sizes = [4, 32], strides = [1, 1]} : vector<4x128xf32> to vector<4x32xf32>
    %631 = vector.extract_strided_slice %627 {offsets = [0, 96], sizes = [4, 32], strides = [1, 1]} : vector<4x128xf32> to vector<4x32xf32>
    %632 = arith.mulf %629, %607 : vector<4x32xf32>
    %633 = arith.mulf %628, %630 : vector<4x32xf32>
    %634 = arith.addf %632, %633 : vector<4x32xf32>
    %635 = math.tanh %634 : vector<4x32xf32>
    %636 = arith.mulf %631, %635 : vector<4x32xf32>
    %637 = vector.extract_strided_slice %636 {offsets = [0, 0], sizes = [2, 32], strides = [1, 1]} : vector<4x32xf32> to vector<2x32xf32>
    %c10_202 = arith.constant 10 : index
    %c0_203 = arith.constant 0 : index
    %638 = vector.load %arg8[%c10_202, %c0_203] : memref<16x64xf32, #tpu.memory_space<vmem>>, vector<2x32xf32>
    tpu.vector_store %arg8[%c10_202, %c0_203], %637 {strides = array<i32>} : memref<16x64xf32, #tpu.memory_space<vmem>>, vector<2x32xf32>,
    %639 = vector.extract_strided_slice %636 {offsets = [2, 0], sizes = [2, 32], strides = [1, 1]} : vector<4x32xf32> to vector<2x32xf32>
    %c4_204 = arith.constant 4 : index
    %c32_205 = arith.constant 32 : index
    %640 = vector.load %arg8[%c4_204, %c32_205] : memref<16x64xf32, #tpu.memory_space<vmem>>, vector<2x32xf32>
    tpu.vector_store %arg8[%c4_204, %c32_205], %639 {strides = array<i32>} : memref<16x64xf32, #tpu.memory_space<vmem>>, vector<2x32xf32>,
    %641 = vector.extract_strided_slice %476 {offsets = [12, 0], sizes = [2, 128], strides = [1, 1]} : vector<16x256xf32> to vector<2x128xf32>
    %642 = vector.extract_strided_slice %476 {offsets = [2, 128], sizes = [2, 128], strides = [1, 1]} : vector<16x256xf32> to vector<2x128xf32>
    %643 = tpu.concatenate %641, %642 in 0 : vector<2x128xf32>, vector<2x128xf32> -> vector<4x128xf32>
    %c2_206 = arith.constant 2 : index
    %c0_207 = arith.constant 0 : index
    %c0_208 = arith.constant 0 : index
    %644 = vector.load %arg3[%c2_206, %c0_207, %c0_208] : memref<3x32x256xf32, #tpu.memory_space<vmem>>, vector<1x32x256xf32>
    %645 = vector.shape_cast %644 : vector<1x32x256xf32> to vector<32x256xf32>
    %cst_209 = arith.constant dense<0.000000e+00> : vector<4x256xf32>
    %646 = tpu.matmul %636, %645, %cst_209 {dimension_numbers = #tpu.dot_dimension_numbers<[1], [0], [0], [1], [0, 0, 1, 1], [], []>} : vector<4x32xf32>, vector<32x256xf32>, vector<4x256xf32> -> vector<4x256xf32>
    %647 = vector.extract_strided_slice %646 {offsets = [0, 0], sizes = [4, 128], strides = [1, 1]} : vector<4x256xf32> to vector<4x128xf32>
    %648 = vector.extract_strided_slice %646 {offsets = [0, 128], sizes = [4, 128], strides = [1, 1]} : vector<4x256xf32> to vector<4x128xf32>
    %649 = arith.select %14, %647, %648 : vector<4x128xi1>, vector<4x128xf32>
    %650 = arith.addf %649, %643 : vector<4x128xf32>
    %651 = arith.mulf %650, %8 : vector<4x128xf32>
    %652 = math.tanh %651 : vector<4x128xf32>
    %653 = arith.mulf %652, %8 : vector<4x128xf32>
    %654 = arith.addf %653, %11 : vector<4x128xf32>
    %655 = vector.extract_strided_slice %654 {offsets = [0, 0], sizes = [4, 32], strides = [1, 1]} : vector<4x128xf32> to vector<4x32xf32>
    %656 = vector.extract_strided_slice %654 {offsets = [0, 32], sizes = [4, 32], strides = [1, 1]} : vector<4x128xf32> to vector<4x32xf32>
    %657 = vector.extract_strided_slice %654 {offsets = [0, 64], sizes = [4, 32], strides = [1, 1]} : vector<4x128xf32> to vector<4x32xf32>
    %658 = vector.extract_strided_slice %654 {offsets = [0, 96], sizes = [4, 32], strides = [1, 1]} : vector<4x128xf32> to vector<4x32xf32>
    %659 = arith.mulf %656, %634 : vector<4x32xf32>
    %660 = arith.mulf %655, %657 : vector<4x32xf32>
    %661 = arith.addf %659, %660 : vector<4x32xf32>
    %662 = math.tanh %661 : vector<4x32xf32>
    %663 = arith.mulf %658, %662 : vector<4x32xf32>
    %664 = vector.extract_strided_slice %663 {offsets = [0, 0], sizes = [2, 32], strides = [1, 1]} : vector<4x32xf32> to vector<2x32xf32>
    %c12_210 = arith.constant 12 : index
    %c0_211 = arith.constant 0 : index
    %665 = vector.load %arg8[%c12_210, %c0_211] : memref<16x64xf32, #tpu.memory_space<vmem>>, vector<2x32xf32>
    tpu.vector_store %arg8[%c12_210, %c0_211], %664 {strides = array<i32>} : memref<16x64xf32, #tpu.memory_space<vmem>>, vector<2x32xf32>,
    %666 = vector.extract_strided_slice %663 {offsets = [2, 0], sizes = [2, 32], strides = [1, 1]} : vector<4x32xf32> to vector<2x32xf32>
    %c2_212 = arith.constant 2 : index
    %c32_213 = arith.constant 32 : index
    %667 = vector.load %arg8[%c2_212, %c32_213] : memref<16x64xf32, #tpu.memory_space<vmem>>, vector<2x32xf32>
    tpu.vector_store %arg8[%c2_212, %c32_213], %666 {strides = array<i32>} : memref<16x64xf32, #tpu.memory_space<vmem>>, vector<2x32xf32>,
    %668 = vector.extract_strided_slice %476 {offsets = [14, 0], sizes = [2, 128], strides = [1, 1]} : vector<16x256xf32> to vector<2x128xf32>
    %669 = vector.extract_strided_slice %476 {offsets = [0, 128], sizes = [2, 128], strides = [1, 1]} : vector<16x256xf32> to vector<2x128xf32>
    %670 = tpu.concatenate %668, %669 in 0 : vector<2x128xf32>, vector<2x128xf32> -> vector<4x128xf32>
    %c2_214 = arith.constant 2 : index
    %c0_215 = arith.constant 0 : index
    %c0_216 = arith.constant 0 : index
    %671 = vector.load %arg3[%c2_214, %c0_215, %c0_216] : memref<3x32x256xf32, #tpu.memory_space<vmem>>, vector<1x32x256xf32>
    %672 = vector.shape_cast %671 : vector<1x32x256xf32> to vector<32x256xf32>
    %cst_217 = arith.constant dense<0.000000e+00> : vector<4x256xf32>
    %673 = tpu.matmul %663, %672, %cst_217 {dimension_numbers = #tpu.dot_dimension_numbers<[1], [0], [0], [1], [0, 0, 1, 1], [], []>} : vector<4x32xf32>, vector<32x256xf32>, vector<4x256xf32> -> vector<4x256xf32>
    %674 = vector.extract_strided_slice %673 {offsets = [0, 0], sizes = [4, 128], strides = [1, 1]} : vector<4x256xf32> to vector<4x128xf32>
    %675 = vector.extract_strided_slice %673 {offsets = [0, 128], sizes = [4, 128], strides = [1, 1]} : vector<4x256xf32> to vector<4x128xf32>
    %676 = arith.select %14, %674, %675 : vector<4x128xi1>, vector<4x128xf32>
    %677 = arith.addf %676, %670 : vector<4x128xf32>
    %678 = arith.mulf %677, %8 : vector<4x128xf32>
    %679 = math.tanh %678 : vector<4x128xf32>
    %680 = arith.mulf %679, %8 : vector<4x128xf32>
    %681 = arith.addf %680, %11 : vector<4x128xf32>
    %682 = vector.extract_strided_slice %681 {offsets = [0, 0], sizes = [4, 32], strides = [1, 1]} : vector<4x128xf32> to vector<4x32xf32>
    %683 = vector.extract_strided_slice %681 {offsets = [0, 32], sizes = [4, 32], strides = [1, 1]} : vector<4x128xf32> to vector<4x32xf32>
    %684 = vector.extract_strided_slice %681 {offsets = [0, 64], sizes = [4, 32], strides = [1, 1]} : vector<4x128xf32> to vector<4x32xf32>
    %685 = vector.extract_strided_slice %681 {offsets = [0, 96], sizes = [4, 32], strides = [1, 1]} : vector<4x128xf32> to vector<4x32xf32>
    %686 = arith.mulf %683, %661 : vector<4x32xf32>
    %687 = arith.mulf %682, %684 : vector<4x32xf32>
    %688 = arith.addf %686, %687 : vector<4x32xf32>
    %689 = math.tanh %688 : vector<4x32xf32>
    %690 = arith.mulf %685, %689 : vector<4x32xf32>
    %691 = vector.extract_strided_slice %690 {offsets = [0, 0], sizes = [2, 32], strides = [1, 1]} : vector<4x32xf32> to vector<2x32xf32>
    %c14_218 = arith.constant 14 : index
    %c0_219 = arith.constant 0 : index
    %692 = vector.load %arg8[%c14_218, %c0_219] : memref<16x64xf32, #tpu.memory_space<vmem>>, vector<2x32xf32>
    tpu.vector_store %arg8[%c14_218, %c0_219], %691 {strides = array<i32>} : memref<16x64xf32, #tpu.memory_space<vmem>>, vector<2x32xf32>,
    %693 = vector.extract_strided_slice %690 {offsets = [2, 0], sizes = [2, 32], strides = [1, 1]} : vector<4x32xf32> to vector<2x32xf32>
    %c0_220 = arith.constant 0 : index
    %c32_221 = arith.constant 32 : index
    %694 = vector.load %arg8[%c0_220, %c32_221] : memref<16x64xf32, #tpu.memory_space<vmem>>, vector<2x32xf32>
    tpu.vector_store %arg8[%c0_220, %c32_221], %693 {strides = array<i32>} : memref<16x64xf32, #tpu.memory_space<vmem>>, vector<2x32xf32>,
    %c0_222 = arith.constant 0 : index
    %c0_223 = arith.constant 0 : index
    %695 = vector.load %arg8[%c0_222, %c0_223] : memref<16x64xf32, #tpu.memory_space<vmem>>, vector<16x64xf32>
    %c0_224 = arith.constant 0 : index
    %c0_225 = arith.constant 0 : index
    %696 = vector.load %arg5[%c0_224, %c0_225] : memref<64x32xf32, #tpu.memory_space<vmem>>, vector<64x32xf32>
    %cst_226 = arith.constant dense<0.000000e+00> : vector<16x32xf32>
    %697 = tpu.matmul %695, %696, %cst_226 {dimension_numbers = #tpu.dot_dimension_numbers<[1], [0], [0], [1], [0, 0, 1, 1], [], []>} : vector<16x64xf32>, vector<64x32xf32>, vector<16x32xf32> -> vector<16x32xf32>
    %c0_227 = arith.constant 0 : index
    %c0_228 = arith.constant 0 : index
    %698 = vector.load %arg6[%c0_227, %c0_228] : memref<1x32xf32, #tpu.memory_space<vmem>>, vector<1x32xf32>
    %699 = vector.broadcast %698 : vector<1x32xf32> to vector<16x32xf32>
    %700 = arith.addf %697, %699 : vector<16x32xf32>
    %cst_229 = arith.constant dense<0xFF800000> : vector<16xf32>
    %701 = vector.multi_reduction <maximumf>, %700, %cst_229 [1] : vector<16x32xf32> to vector<16xf32>
    %702 = vector.shape_cast %701 : vector<16xf32> to vector<16x1xf32>
    %703 = vector.broadcast %702 : vector<16x1xf32> to vector<16x32xf32>
    %704 = arith.subf %700, %703 : vector<16x32xf32>
    %705 = math.exp %704 : vector<16x32xf32>
    %cst_230 = arith.constant dense<0.000000e+00> : vector<16xf32>
    %706 = vector.multi_reduction <add>, %705, %cst_230 [1] : vector<16x32xf32> to vector<16xf32>
    %707 = vector.shape_cast %706 : vector<16xf32> to vector<16x1xf32>
    %708 = math.log %707 : vector<16x1xf32>
    %709 = vector.broadcast %708 : vector<16x1xf32> to vector<16x32xf32>
    %710 = arith.subf %704, %709 : vector<16x32xf32>
    %c0_231 = arith.constant 0 : index
    %c0_232 = arith.constant 0 : index
    %711 = vector.load %arg7[%c0_231, %c0_232] : memref<16x32xf32, #tpu.memory_space<vmem>>, vector<16x32xf32>
    tpu.vector_store %arg7[%c0_231, %c0_232], %710 {strides = array<i32>} : memref<16x32xf32, #tpu.memory_space<vmem>>, vector<16x32xf32>,
    return
  }
  func.func @transform_0(%arg0: i32) -> (i32, i32) {
    %c0_i32 = arith.constant 0 : i32
    %c0_i32_0 = arith.constant 0 : i32
    %c0_i32_1 = arith.constant 0 : i32
    return %c0_i32, %c0_i32_0 : i32, i32
  }
  func.func @transform_1(%arg0: i32) -> (i32, i32, i32) {
    %c0_i32 = arith.constant 0 : i32
    %c0_i32_0 = arith.constant 0 : i32
    %c0_i32_1 = arith.constant 0 : i32
    %c0_i32_2 = arith.constant 0 : i32
    return %c0_i32, %c0_i32_0, %c0_i32_1 : i32, i32, i32
  }
  func.func @transform_2(%arg0: i32) -> (i32, i32, i32) {
    %c0_i32 = arith.constant 0 : i32
    %c0_i32_0 = arith.constant 0 : i32
    %c0_i32_1 = arith.constant 0 : i32
    %c0_i32_2 = arith.constant 0 : i32
    return %c0_i32, %c0_i32_0, %c0_i32_1 : i32, i32, i32
  }
  func.func @transform_3(%arg0: i32) -> (i32, i32, i32) {
    %c0_i32 = arith.constant 0 : i32
    %c0_i32_0 = arith.constant 0 : i32
    %c0_i32_1 = arith.constant 0 : i32
    %c0_i32_2 = arith.constant 0 : i32
    return %c0_i32, %c0_i32_0, %c0_i32_1 : i32, i32, i32
  }
  func.func @transform_4(%arg0: i32) -> (i32, i32) {
    %c0_i32 = arith.constant 0 : i32
    %c0_i32_0 = arith.constant 0 : i32
    %c0_i32_1 = arith.constant 0 : i32
    return %c0_i32, %c0_i32_0 : i32, i32
  }
  func.func @transform_5(%arg0: i32) -> (i32, i32) {
    %c0_i32 = arith.constant 0 : i32
    %c0_i32_0 = arith.constant 0 : i32
    %c0_i32_1 = arith.constant 0 : i32
    return %c0_i32, %c0_i32_0 : i32, i32
  }
  func.func @transform_6(%arg0: i32) -> (i32, i32) {
    %c0_i32 = arith.constant 0 : i32
    %c0_i32_0 = arith.constant 0 : i32
    %c0_i32_1 = arith.constant 0 : i32
    return %c0_i32, %c0_i32_0 : i32, i32
  }
}

</mosaic_0001>

<bundles_post_ra>
// kernel: lm_forward.1
= control target key start
LH: loop header
LB: loop body
LE: loop exit
PB: predicated region body
PF: predicated region fallthrough
CT: control target
= control target key end

     0   :  { %11 = vsyncpa [#allocation4], 0  ;;  %s4825_s0 = inlined_call_operand.vmem [shape: f32[16,64], index: 0, kind: input, shape index: {}]   ;;  %s4826_s1 = inlined_call_operand.vmem [shape: f32[3,64,256], index: 1, kind: input, shape index: {}]   ;;  %s4827_s2 = inlined_call_operand.hbm [shape: f32[3,32,256], index: 2, kind: input, shape index: {}]   ;;  %s4828_s3 = inlined_call_operand.vmem [shape: f32[3,1,256], index: 3, kind: input, shape index: {}]   ;;  %s4829_s4 = inlined_call_operand.vmem [shape: f32[64,32], index: 4, kind: input, shape index: {}]   ;;  %s4830_s5 = inlined_call_operand.vmem [shape: f32[1,32], index: 5, kind: input, shape index: {}]   ;;  %s4831_s6 = inlined_call_operand.hbm [shape: f32[16,32], index: 6, kind: output, shape index: {}]  }
   0x1   :  { %12 = vsyncpa [#allocation5], 0  ;;  %s3871_s21 = smov [#allocation3]   ;;  %s3823_s25 = scalar_lea.hbm %s4827_s2, 3072 }
   0x2   :  { %s22_s22 = sshll.u32 %s3871_s21, 4  ;;  %p3824_p0 = scmp.ne.s32.totalorder %s4827_s2, %s3823_s25  ;;  %s23_s22 = int_to_ptr.vmem [resolvable:$true] %s22_s22 }
   0x3   :  { %p3827_p1 = scmp.lt.u32.totalorder %s3823_s25, %s4827_s2 }
   0x5   :  { %p3829_p2 = pnand %p3827_p1, %p3824_p0 }
   0x7   :  { %3832 = shalt.err (!%p3829_p2)
}
   0x8   :  { %s3833_s30 = scalar_lea.vmem %s23_s22, 3072  ;;  %p3838_p4 = scmp.lt.s32.totalorder %s23_s22, %s23_s22 }
   0x9   :  { %p3834_p3 = scmp.ne.s32.totalorder %s23_s22, %s3833_s30  ;;  %p3839_p5 = scmp.lt.s32.totalorder %s3833_s30, %s3833_s30 }
   0xb   :  { %p3840_p6 = por %p3839_p5, %p3838_p4 }
   0xd   :  { %p3841_p7 = pnand %p3840_p6, %p3834_p3 }
   0xf   :  { %3844 = shalt.err (!%p3841_p7)
}
  0x10   :  { %s3872_s7 = smov 256   ;;  %s3873_s8 = smov 16  }
  0x11   :  { %28 = dma.hbm_to_vmem [thread:$0]  %s4827_s2, 3072, %s23_s22, [#allocation4], %s3872_s7, %s3872_s7, %s3873_s8  }
  0x12   :  { %3867 = dma.done.wait [#allocation4], 3072  }
  0x13   :  { %3868 = vsyncadd [#allocation4], 4294964224  ;;  %v3874_v0 = vmov 0.0   ;;  %v56_v1 = vld [vmem:[%s4826_s1 + $0x8] sm:$0xff]  ;;  %v58_v2 = vld [vmem:[%s4826_s1 + $0x18] sm:$0xff]  ;;  %vm50_vm0 = vcmask 523264   ;;  %v38_v41 = vlaneseq }
  0x14   :  { %153 = vmatprep.mubr.f32.mxu0 %v3874_v0  ;;  %247 = vmatprep.mubr.f32.mxu1 %v3874_v0  ;;  %v55_v3 = vld [vmem:[%s4826_s1] sm:$0xff]  ;;  %v3453_v4 = vpack.c.bf16 %v58_v2, %v56_v1  ;;  %v57_v5 = vld [vmem:[%s4826_s1 + $0x10] sm:$0xff]  ;;  %v60_v6 = vld [vmem:[%s4826_s1 + $0x28] sm:$0xff]  ;;  %vm169_vm4 = vcmask 1041408   ;;  %s3876_s22 = smov 64   ;;  %s3877_s23 = smov 32  }
  0x15   :  { %v62_v7 = vld [vmem:[%s4826_s1 + $0x38] sm:$0xff]  ;;  %v3455_v8 = vpack.c.bf16 %v57_v5, %v55_v3  ;;  %v59_v10 = vld [vmem:[%s4826_s1 + $0x20] sm:$0xff]  ;;  %v61_v11 = vld [vmem:[%s4826_s1 + $0x30] sm:$0xff]  ;;  %v4014_v42 = vshrl.u32 %v38_v41, 7  ;;  %v39_v50 = vand.u32 127, %v38_v41  ;;  %vm281_vm6 = vcmask 254976  }
  0x16   :  { %v3457_v9 = vpack.c.bf16 %v62_v7, %v60_v6  ;;  %v64_v12 = vld [vmem:[%s4826_s1 + $0x48] sm:$0xff]  ;;  %3454 = vmatprep.subr.bf16.mxu0 %v3453_v4  ;;  %v66_v13 = vld [vmem:[%s4826_s1 + $0x58] sm:$0xff]  ;;  %v3459_v14 = vpack.c.bf16 %v61_v11, %v59_v10  ;;  %v63_v15 = vld [vmem:[%s4826_s1 + $0x40] sm:$0xff]  ;;  %vm179_vm7 = vcmask 261120   ;;  %vm286_vm8 = vcmask 519426  }
  0x17   :  { %3456 = vmatpush1.bf16.msra.mxu0 %v3455_v8  ;;  %v65_v16 = vld [vmem:[%s4826_s1 + $0x50] sm:$0xff]  ;;  %v68_v17 = vld [vmem:[%s4826_s1 + $0x68] sm:$0xff]  ;;  %v3461_v18 = vpack.c.bf16 %v66_v13, %v64_v12  ;;  %v70_v19 = vld [vmem:[%s4826_s1 + $0x78] sm:$0xff]  ;;  %v4017_v43 = vsub.s32 0, %v4014_v42  ;;  %v4023_v45 = vsub.s32 1, %v4014_v42  ;;  %vm47_vm1 = vcmp.lt.s32.totalorder %v4014_v42, 2 }
  0x18   :  { %3458 = vmatprep.subr.bf16.mxu0 %v3457_v9  ;;  %v172_v20 = vld [vmem:[#allocation3 + $0x8] sm:$0xff]  ;;  %v174_v21 = vld [vmem:[#allocation3 + $0x18] sm:$0xff]  ;;  %v48_v23 = vld [vmem:[%s4825_s0] sm:$0xff]  ;;  %v3463_v29 = vpack.c.bf16 %v65_v16, %v63_v15  ;;  %v3465_v34 = vpack.c.bf16 %v70_v19, %v68_v17  ;;  %vm40_vm2 = vcmp.ge.s32.totalorder %v39_v50, 64  ;;  %vm41_vm3 = vcmp.lt.s32.totalorder %v39_v50, 96 }
  0x19   :  { %v3972_v22 = vpack.c.bf16 %v174_v21, %v172_v20  ;;  %v49_v24 = vld [vmem:[%s4825_s0 + $0x8] sm:$0xff]  ;;  %v171_v25 = vld [vmem:[#allocation3] sm:$0xff]  ;;  %51 = vst.msk [vmem:[#allocation2] sm:$0xff] %vm50_vm0, %v48_v23  ;;  %v173_v26 = vld [vmem:[#allocation3 + $0x10] sm:$0xff]  ;;  %v3875_v15 = vmov 0.5  }
  0x1a   :  { %52 = vst.msk [vmem:[#allocation2 + $0x8] sm:$0xff] %vm50_vm0, %v49_v24  ;;  %v176_v27 = vld [vmem:[#allocation3 + $0x28] sm:$0xff]  ;;  %v178_v28 = vld [vmem:[#allocation3 + $0x38] sm:$0xff]  ;;  %v3983_v30 = vpack.c.bf16 %v173_v26, %v171_v25  ;;  %v175_v32 = vld [vmem:[#allocation3 + $0x20] sm:$0xff] }
  0x1b   :  { %3460 = vmatpush1.bf16.msra.mxu0 %v3459_v14  ;;  %3470 = vmatprep.subr.bf16.mxu1 %v3972_v22  ;;  %v3985_v31 = vpack.c.bf16 %v178_v28, %v176_v27  ;;  %v177_v33 = vld [vmem:[#allocation3 + $0x30] sm:$0xff]  ;;  %v69_v36 = vld [vmem:[%s4826_s1 + $0x70] sm:$0xff]  ;;  %vm4030_vm5 = vmand %vm40_vm2, %vm41_vm3 }
  0x1c   :  { %3462 = vmatprep.subr.bf16.mxu0 %v3461_v18  ;;  %v67_v35 = vld [vmem:[%s4826_s1 + $0x60] sm:$0xff]  ;;  %3472 = vmatpush1.bf16.msra.mxu1 %v3983_v30  ;;  %v3994_v37 = vpack.c.bf16 %v177_v33, %v175_v32  ;;  %v4051_v16 = vsel %vm4030_vm5, 1.0, %v3875_v15  ;;  %v4061_v24 = vsel %vm4030_vm5, 0.0, %v3875_v15 }
  0x1d   :  { %3474 = vmatprep.subr.bf16.mxu1 %v3985_v31  ;;  %v3467_v38 = vpack.c.bf16 %v69_v36, %v67_v35  ;;  %v71_v44 = vld [vmem:[%s4828_s3] sm:$0x3] }
  0x1e   :  { %v76_v46 = vrot.slane %v71_v44, %v4017_v43  ;;  %v80_v47 = vrot.slane %v71_v44, %v4023_v45 }
  0x1f   :  { %3464 = vmatpush1.bf16.msra.mxu0 %v3463_v29 }
  0x20   :  { %3466 = vmatprep.subr.bf16.mxu0 %v3465_v34  ;;  %3476 = vmatpush1.bf16.msra.mxu1 %v3994_v37  ;;  %v53_v39 = vld [vmem:[#allocation2] sm:$0xff] }
  0x21   :  { %3478 = vmatprep.subr.bf16.mxu1 %v3972_v22  ;;  %v54_v40 = vld [vmem:[#allocation2 + $0x8] sm:$0xff] }
  0x23   :  { %3468 = vmatpush1.bf16.msra.mxu0 %v3467_v38  ;;  %248 = vmatmul.mubr.f32.vlgmr.msra.gmra.mrb[0].mxu1 %v3874_v0 }
  0x24   :  { %3502 = vmatprep.subr.bf16.mxu0 %v3972_v22  ;;  %3480 = vmatpush1.bf16.msra.mxu1 %v3983_v30 }
  0x25   :  { %368 = vmatprep.mubr.f32.mxu1 %v3874_v0  ;;  %3482 = vmatprep.subr.bf16.mxu1 %v3985_v31 }
  0x26   :  { %3360 = vmatmul.mubr.msk.f32.vlgmr.msra.gmra.mrb[0].mxu0 %vm50_vm0, %v53_v39 }
  0x27   :  { %159 = vmatprep.mubr.f32.mxu0 %v3874_v0  ;;  %3504 = vmatpush1.bf16.msra.mxu0 %v3983_v30 }
  0x28   :  { %3506 = vmatprep.subr.bf16.mxu0 %v3985_v31  ;;  %3484 = vmatpush1.bf16.msra.mxu1 %v3994_v37 }
  0x29   :  { %3486 = vmatprep.subr.bf16.mxu1 %v3972_v22 }
  0x2a   :  { %3361 = vmatmul.mubr.msk.f32.gmra.mrb[2].mxu0 %vm50_vm0, %v54_v40 }
  0x2b   :  { %3508 = vmatpush1.bf16.msra.mxu0 %v3994_v37  ;;  %719 = vmatprep.mubr.f32.mxu0 %v3874_v0 }
  0x2c   :  { %3518 = vmatprep.subr.bf16.mxu0 %v3972_v22 }
  0xf6   :  { %v249_v48 = vpop.f32.mrb[0].mxu1 }
  0xf7   :  { %v251_v49 = vpop.f32.mrb[1].mxu1 }
  0xf8   :  { %v254_v52 = vsel %vm47_vm1, %v249_v48, %v251_v49 }
  0xf9   :  { %v155_v51 = vpop.f32.mrb[0].mxu0 }
  0xfa   :  { %v156_v53 = vadd.f32 %v155_v51, %v76_v46  ;;  %v157_v54 = vpop.f32.mrb[1].mxu0 }
  0xfb   :  { %v158_v55 = vadd.f32 %v157_v54, %v80_v47 }
  0xfc   :  { %v289_v60 = vrot.slane %v156_v53, 2  ;;  %v407_v61 = vrot.slane %v156_v53, 4  ;;  %v523_v63 = vrot.slane %v156_v53, 6 }
  0xfd   :  { %v161_v56 = vpop.f32.mrb[2].mxu0  ;;  %v642_v57 = vrot.slane %v158_v55, 4  ;;  %v761_v1 = vrot.slane %v158_v55, 2  ;;  %v995_v2 = vrot.slane %v158_v55, 6 }
  0xfe   :  { %v162_v58 = vadd.f32 %v161_v56, %v76_v46  ;;  %v163_v59 = vpop.f32.mrb[3].mxu0 }
  0xff   :  { %v164_v62 = vadd.f32 %v163_v59, %v80_v47 }
 0x100   :  { %v4035_v4 = vsel %vm169_vm4, %v162_v58, %v642_v57  ;;  %v759_v5 = vrot.slane %v162_v58, 2  ;;  %v877_v6 = vrot.slane %v162_v58, 4  ;;  %v993_v7 = vrot.slane %v162_v58, 6 }
 0x101   :  { %v167_v8 = vrot.slane %v164_v62, 4  ;;  %v291_v9 = vrot.slane %v164_v62, 2  ;;  %v4038_v10 = vsel %vm169_vm4, %v407_v61, %v164_v62  ;;  %v525_v11 = vrot.slane %v164_v62, 6 }
 0x102   :  { %v4041_v12 = vsel %vm169_vm4, %v759_v5, %v761_v1  ;;  %v4044_v13 = vsel %vm169_vm4, %v877_v6, %v158_v55  ;;  %v4047_v14 = vsel %vm169_vm4, %v993_v7, %v995_v2 }
 0x103   :  { %v170_v17 = vsel %vm169_vm4, %v156_v53, %v167_v8  ;;  %v293_v18 = vsel %vm169_vm4, %v289_v60, %v291_v9  ;;  %v4056_v19 = vsel %vm169_vm4, %v523_v63, %v525_v11 }
 0x104   :  { %v255_v20 = vadd.f32 %v254_v52, %v170_v17 }
 0x106   :  { %v256_v21 = vmul.f32 %v255_v20, %v4051_v16 }
 0x108   :  { %3719 = vtanh.f32 %v256_v21 }
 0x112   :  { %v3720_v23 = vpop.eup %3719 }
 0x113   :  { %v258_v25 = vmul.f32 %v3720_v23, %v4051_v16 }
 0x115   :  { %v259_v26 = vadd.f32 %v258_v25, %v4061_v24 }
 0x117   :  { %262 = vrot.lane.b32.xlu0 %v259_v26, %s3876_s22  ;;  %v260_v29 = vmul.f32 0.0, %v259_v26 }
 0x189   :  { %v263_v27 = vpop.permute.xlu0 %262 }
 0x18a   :  { %v265_v28 = vmul.f32 %v263_v27, %v259_v26 }
 0x18c   :  { %267 = vrot.lane.b32.xlu0 %v265_v28, %s3877_s23 }
 0x1fe   :  { %v268_v32 = vpop.permute.xlu0 %267 }
 0x1ff   :  { %v270_v33 = vadd.f32 %v268_v32, %v260_v29 }
 0x201   :  { %3721 = vtanh.f32 %v270_v33 }
 0x20b   :  { %v3722_v34 = vpop.eup %3721 }
 0x20c   :  { %273 = vrot.lane.b32.xlu1 %v3722_v34, %s3876_s22 }
 0x27e   :  { %v274_v35 = vpop.permute.xlu1 %273 }
 0x27f   :  { %v4068_v36 = vmul.f32 %v274_v35, %v259_v26 }
 0x281   :  { %278 = vrot.lane.b32.xlu1 %v4068_v36, %s3877_s23 }
 0x2f3   :  { %v279_v38 = vpop.permute.xlu1 %278 }
 0x2f4   :  { %282 = vst.msk [vmem:[#allocation2] sm:$0x3] %vm281_vm6, %v279_v38  ;;  %3362 = vmatmul.mubr.msk.f32.vlgmr.msra.gmra.mrb[2].mxu1 %vm179_vm7, %v279_v38 }
 0x2f5   :  { %3488 = vmatpush1.bf16.msra.mxu1 %v3983_v30  ;;  %484 = vmatprep.mubr.f32.mxu1 %v3874_v0 }
 0x2f6   :  { %3490 = vmatprep.subr.bf16.mxu1 %v3985_v31 }
 0x2f9   :  { %3492 = vmatpush1.bf16.msra.mxu1 %v3994_v37 }
 0x2fa   :  { %3494 = vmatprep.subr.bf16.mxu1 %v3972_v22 }
 0x3c7   :  { %v370_v39 = vpop.f32.mrb[2].mxu1 }
 0x3c8   :  { %v372_v40 = vpop.f32.mrb[3].mxu1 }
 0x3c9   :  { %v375_v41 = vsel %vm47_vm1, %v370_v39, %v372_v40 }
 0x3ca   :  { %v376_v44 = vadd.f32 %v375_v41, %v293_v18 }
 0x3cc   :  { %v377_v46 = vmul.f32 %v376_v44, %v4051_v16 }
 0x3ce   :  { %3723 = vtanh.f32 %v377_v46 }
 0x3d8   :  { %v3724_v47 = vpop.eup %3723 }
 0x3d9   :  { %v379_v48 = vmul.f32 %v3724_v47, %v4051_v16 }
 0x3db   :  { %v380_v49 = vadd.f32 %v379_v48, %v4061_v24 }
 0x3dd   :  { %383 = vrot.lane.b32.xlu0 %v380_v49, %s3876_s22  ;;  %v381_v52 = vmul.f32 %v380_v49, %v270_v33 }
 0x44f   :  { %v384_v50 = vpop.permute.xlu0 %383 }
 0x450   :  { %v386_v51 = vmul.f32 %v384_v50, %v380_v49 }
 0x452   :  { %388 = vrot.lane.b32.xlu1 %v386_v51, %s3877_s23 }
 0x4c4   :  { %v389_v53 = vpop.permute.xlu1 %388 }
 0x4c5   :  { %v391_v54 = vadd.f32 %v389_v53, %v381_v52 }
 0x4c7   :  { %3725 = vtanh.f32 %v391_v54 }
 0x4d1   :  { %v3726_v55 = vpop.eup %3725 }
 0x4d2   :  { %394 = vrot.lane.b32.xlu0 %v3726_v55, %s3876_s22 }
 0x544   :  { %v395_v56 = vpop.permute.xlu0 %394 }
 0x545   :  { %v4087_v57 = vmul.f32 %v395_v56, %v380_v49 }
 0x547   :  { %399 = vrot.lane.b32.xlu1 %v4087_v57, %s3877_s23 }
 0x5b9   :  { %v400_v58 = vpop.permute.xlu1 %399 }
 0x5ba   :  { %402 = vst.msk [vmem:[#allocation2 + $0x2] sm:$0x3] %vm281_vm6, %v400_v58  ;;  %3363 = vmatmul.mubr.msk.f32.vlgmr.msra.gmra.mrb[4].mxu1 %vm179_vm7, %v400_v58 }
 0x5bb   :  { %3496 = vmatpush1.bf16.msra.mxu1 %v3983_v30  ;;  %602 = vmatprep.mubr.f32.mxu1 %v3874_v0 }
 0x5bc   :  { %3498 = vmatprep.subr.bf16.mxu1 %v3985_v31 }
 0x5bf   :  { %3500 = vmatpush1.bf16.msra.mxu1 %v3994_v37 }
 0x5c0   :  { %3510 = vmatprep.subr.bf16.mxu1 %v3972_v22 }
 0x68d   :  { %v486_v59 = vpop.f32.mrb[4].mxu1 }
 0x68e   :  { %v488_v60 = vpop.f32.mrb[5].mxu1 }
 0x68f   :  { %v491_v61 = vsel %vm47_vm1, %v486_v59, %v488_v60 }
 0x690   :  { %v492_v62 = vadd.f32 %v491_v61, %v4038_v10 }
 0x692   :  { %v493_v63 = vmul.f32 %v492_v62, %v4051_v16 }
 0x694   :  { %3727 = vtanh.f32 %v493_v63 }
 0x69e   :  { %v3728_v1 = vpop.eup %3727 }
 0x69f   :  { %v495_v2 = vmul.f32 %v3728_v1, %v4051_v16 }
 0x6a1   :  { %v496_v3 = vadd.f32 %v495_v2, %v4061_v24 }
 0x6a3   :  { %499 = vrot.lane.b32.xlu0 %v496_v3, %s3876_s22  ;;  %v497_v7 = vmul.f32 %v496_v3, %v391_v54 }
 0x715   :  { %v500_v5 = vpop.permute.xlu0 %499 }
 0x716   :  { %v502_v6 = vmul.f32 %v500_v5, %v496_v3 }
 0x718   :  { %504 = vrot.lane.b32.xlu1 %v502_v6, %s3877_s23 }
 0x78a   :  { %v505_v8 = vpop.permute.xlu1 %504 }
 0x78b   :  { %v507_v9 = vadd.f32 %v505_v8, %v497_v7 }
 0x78d   :  { %3729 = vtanh.f32 %v507_v9 }
 0x797   :  { %v3730_v11 = vpop.eup %3729 }
 0x798   :  { %510 = vrot.lane.b32.xlu0 %v3730_v11, %s3876_s22 }
 0x80a   :  { %v511_v10 = vpop.permute.xlu0 %510 }
 0x80b   :  { %v4107_v15 = vmul.f32 %v511_v10, %v496_v3 }
 0x80d   :  { %515 = vrot.lane.b32.xlu1 %v4107_v15, %s3877_s23 }
 0x87f   :  { %v516_v17 = vpop.permute.xlu1 %515 }
 0x880   :  { %518 = vst.msk [vmem:[#allocation2 + $0x4] sm:$0x3] %vm281_vm6, %v516_v17  ;;  %3364 = vmatmul.mubr.msk.f32.vlgmr.msra.gmra.mrb[6].mxu1 %vm179_vm7, %v516_v17 }
 0x881   :  { %3512 = vmatpush1.bf16.msra.mxu1 %v3983_v30  ;;  %838 = vmatprep.mubr.f32.mxu1 %v3874_v0 }
 0x882   :  { %3514 = vmatprep.subr.bf16.mxu1 %v3985_v31 }
 0x885   :  { %3516 = vmatpush1.bf16.msra.mxu1 %v3994_v37 }
 0x886   :  { %3526 = vmatprep.subr.bf16.mxu1 %v3972_v22 }
 0x953   :  { %v604_v18 = vpop.f32.mrb[6].mxu1 }
 0x954   :  { %v606_v20 = vpop.f32.mrb[7].mxu1 }
 0x955   :  { %v609_v21 = vsel %vm47_vm1, %v604_v18, %v606_v20 }
 0x956   :  { %v610_v23 = vadd.f32 %v609_v21, %v4056_v19 }
 0x958   :  { %v611_v25 = vmul.f32 %v610_v23, %v4051_v16 }
 0x95a   :  { %3731 = vtanh.f32 %v611_v25 }
 0x964   :  { %v3732_v26 = vpop.eup %3731 }
 0x965   :  { %v613_v27 = vmul.f32 %v3732_v26, %v4051_v16 }
 0x967   :  { %v614_v28 = vadd.f32 %v613_v27, %v4061_v24 }
 0x969   :  { %617 = vrot.lane.b32.xlu0 %v614_v28, %s3876_s22  ;;  %v615_v22 = vmul.f32 %v614_v28, %v507_v9 }
 0x9db   :  { %v618_v29 = vpop.permute.xlu0 %617 }
 0x9dc   :  { %v620_v32 = vmul.f32 %v618_v29, %v614_v28 }
 0x9de   :  { %622 = vrot.lane.b32.xlu1 %v620_v32, %s3877_s23 }
 0xa50   :  { %v623_v33 = vpop.permute.xlu1 %622 }
 0xa51   :  { %v625_v34 = vadd.f32 %v623_v33, %v615_v22 }
 0xa53   :  { %3733 = vtanh.f32 %v625_v34 }
 0xa5d   :  { %v3734_v35 = vpop.eup %3733 }
 0xa5e   :  { %628 = vrot.lane.b32.xlu0 %v3734_v35, %s3876_s22 }
 0xad0   :  { %v629_v19 = vpop.permute.xlu0 %628 }
 0xad1   :  { %v4127_v38 = vmul.f32 %v629_v19, %v614_v28 }
 0xad3   :  { %633 = vrot.lane.b32.xlu1 %v4127_v38, %s3877_s23 }
 0xb45   :  { %v634_v39 = vpop.permute.xlu1 %633 }
 0xb46   :  { %636 = vst.msk [vmem:[#allocation2 + $0x6] sm:$0x3] %vm281_vm6, %v634_v39  ;;  %3365 = vmatmul.mubr.msk.f32.vlgmr.msra.gmra.mrb[4].mxu0 %vm179_vm7, %v634_v39 }
 0xb47   :  { %3520 = vmatpush1.bf16.msra.mxu0 %v3983_v30  ;;  %954 = vmatprep.mubr.f32.mxu0 %v3874_v0 }
 0xb48   :  { %3522 = vmatprep.subr.bf16.mxu0 %v3985_v31 }
 0xb4b   :  { %3524 = vmatpush1.bf16.msra.mxu0 %v3994_v37 }
 0xc19   :  { %v721_v40 = vpop.f32.mrb[4].mxu0 }
 0xc1a   :  { %v723_v41 = vpop.f32.mrb[5].mxu0 }
 0xc1b   :  { %v726_v44 = vsel %vm47_vm1, %v721_v40, %v723_v41 }
 0xc1c   :  { %v727_v46 = vadd.f32 %v726_v44, %v4035_v4 }
 0xc1e   :  { %v728_v47 = vmul.f32 %v727_v46, %v4051_v16 }
 0xc20   :  { %3735 = vtanh.f32 %v728_v47 }
 0xc2a   :  { %v3736_v48 = vpop.eup %3735 }
 0xc2b   :  { %v730_v49 = vmul.f32 %v3736_v48, %v4051_v16 }
 0xc2d   :  { %v731_v50 = vadd.f32 %v730_v49, %v4061_v24 }
 0xc2f   :  { %734 = vrot.lane.b32.xlu0 %v731_v50, %s3876_s22  ;;  %v732_v53 = vmul.f32 %v731_v50, %v625_v34 }
 0xca1   :  { %v735_v51 = vpop.permute.xlu0 %734 }
 0xca2   :  { %v737_v52 = vmul.f32 %v735_v51, %v731_v50 }
 0xca4   :  { %739 = vrot.lane.b32.xlu1 %v737_v52, %s3877_s23 }
 0xd16   :  { %v740_v54 = vpop.permute.xlu1 %739 }
 0xd17   :  { %v742_v55 = vadd.f32 %v740_v54, %v732_v53 }
 0xd19   :  { %3737 = vtanh.f32 %v742_v55 }
 0xd23   :  { %v3738_v56 = vpop.eup %3737 }
 0xd24   :  { %745 = vrot.lane.b32.xlu0 %v3738_v56, %s3876_s22 }
 0xd96   :  { %v746_v4 = vpop.permute.xlu0 %745 }
 0xd97   :  { %v4146_v58 = vmul.f32 %v746_v4, %v731_v50  ;;  %v3371_v4 = vld [vmem:[%s4826_s1 + $0x90] sm:$0xff] }
 0xd99   :  { %750 = vrot.lane.b32.xlu1 %v4146_v58, %s3877_s23 }
 0xe0b   :  { %v4150_v59 = vpop.permute.xlu1 %750 }
 0xe0c   :  { %3366 = vmatmul.mubr.msk.f32.vlgmr.msra.gmra.mrb[8].mxu1 %vm179_vm7, %v4150_v59 }
 0xe0d   :  { %3528 = vmatpush1.bf16.msra.mxu1 %v3983_v30  ;;  %1072 = vmatprep.mubr.f32.mxu1 %v3874_v0 }
 0xe0e   :  { %3530 = vmatprep.subr.bf16.mxu1 %v3985_v31 }
 0xe11   :  { %3532 = vmatpush1.bf16.msra.mxu1 %v3994_v37 }
 0xedf   :  { %v840_v60 = vpop.f32.mrb[8].mxu1 }
 0xee0   :  { %v842_v61 = vpop.f32.mrb[9].mxu1 }
 0xee1   :  { %v845_v62 = vsel %vm47_vm1, %v840_v60, %v842_v61  ;;  %v3376_v60 = vld [vmem:[%s4826_s1 + $0xb8] sm:$0xff] }
 0xee2   :  { %v846_v63 = vadd.f32 %v845_v62, %v4041_v12 }
 0xee4   :  { %v847_v1 = vmul.f32 %v846_v63, %v4051_v16 }
 0xee6   :  { %3739 = vtanh.f32 %v847_v1  ;;  %v3373_v1 = vld [vmem:[%s4826_s1 + $0xa0] sm:$0xff] }
 0xef0   :  { %v3740_v2 = vpop.eup %3739 }
 0xef1   :  { %v849_v3 = vmul.f32 %v3740_v2, %v4051_v16  ;;  %v3375_v2 = vld [vmem:[%s4826_s1 + $0xb0] sm:$0xff] }
 0xef3   :  { %v850_v30 = vadd.f32 %v849_v3, %v4061_v24 }
 0xef5   :  { %853 = vrot.lane.b32.xlu0 %v850_v30, %s3876_s22  ;;  %v851_v37 = vmul.f32 %v850_v30, %v742_v55  ;;  %v3370_v55 = vld [vmem:[%s4826_s1 + $0x88] sm:$0xff] }
 0xf67   :  { %v854_v31 = vpop.permute.xlu0 %853 }
 0xf68   :  { %v856_v5 = vmul.f32 %v854_v31, %v850_v30 }
 0xf6a   :  { %858 = vrot.lane.b32.xlu1 %v856_v5, %s3877_s23  ;;  %v3378_v5 = vld [vmem:[%s4826_s1 + $0xc8] sm:$0xff] }
 0xfdc   :  { %v859_v6 = vpop.permute.xlu1 %858 }
 0xfdd   :  { %v861_v7 = vadd.f32 %v859_v6, %v851_v37  ;;  %v3380_v37 = vld [vmem:[%s4826_s1 + $0xd8] sm:$0xff] }
 0xfde   :  { %v3541_v6 = vpack.c.bf16 %v3380_v37, %v3378_v5 }
 0xfdf   :  { %3741 = vtanh.f32 %v861_v7 }
 0xfe9   :  { %v3742_v8 = vpop.eup %3741 }
 0xfea   :  { %864 = vrot.lane.b32.xlu0 %v3742_v8, %s3876_s22  ;;  %v3379_v8 = vld [vmem:[%s4826_s1 + $0xd0] sm:$0xff] }
0x105c   :  { %v865_v12 = vpop.permute.xlu0 %864 }
0x105d   :  { %v4167_v9 = vmul.f32 %v865_v12, %v850_v30  ;;  %v3539_v30 = vpack.c.bf16 %v3375_v2, %v3373_v1 }
0x105f   :  { %869 = vrot.lane.b32.xlu1 %v4167_v9, %s3877_s23 }
0x10d1   :  { %v4171_v11 = vpop.permute.xlu1 %869 }
0x10d2   :  { %3367 = vmatmul.mubr.msk.f32.vlgmr.msra.gmra.mrb[6].mxu0 %vm179_vm7, %v4171_v11 }
0x10d3   :  { %1213 = vmatprep.mubr.f32.mxu0 %v3874_v0 }
0x11a5   :  { %v956_v10 = vpop.f32.mrb[6].mxu0 }
0x11a6   :  { %v958_v17 = vpop.f32.mrb[7].mxu0 }
0x11a7   :  { %v961_v18 = vsel %vm47_vm1, %v956_v10, %v958_v17  ;;  %v3381_v10 = vld [vmem:[%s4826_s1 + $0xe0] sm:$0xff]  ;;  %v3383_v17 = vld [vmem:[%s4826_s1 + $0xf0] sm:$0xff] }
0x11a8   :  { %v962_v20 = vadd.f32 %v961_v18, %v4044_v13  ;;  %v3547_v18 = vpack.c.bf16 %v3383_v17, %v3381_v10 }
0x11aa   :  { %v963_v21 = vmul.f32 %v962_v20, %v4051_v16  ;;  %v1232_v20 = vld [vmem:[#allocation3 + $0x48] sm:$0xff] }
0x11ac   :  { %3743 = vtanh.f32 %v963_v21  ;;  %v1234_v21 = vld [vmem:[#allocation3 + $0x58] sm:$0xff] }
0x11b6   :  { %v3744_v23 = vpop.eup %3743 }
0x11b7   :  { %v965_v25 = vmul.f32 %v3744_v23, %v4051_v16  ;;  %v4270_v23 = vpack.c.bf16 %v1234_v21, %v1232_v20 }
0x11b9   :  { %v966_v26 = vadd.f32 %v965_v25, %v4061_v24  ;;  %v1231_v25 = vld [vmem:[#allocation3 + $0x40] sm:$0xff]  ;;  %3550 = vmatprep.subr.bf16.mxu1 %v4270_v23 }
0x11bb   :  { %969 = vrot.lane.b32.xlu0 %v966_v26, %s3876_s22  ;;  %v967_v29 = vmul.f32 %v966_v26, %v861_v7  ;;  %v3377_v7 = vld [vmem:[%s4826_s1 + $0xc0] sm:$0xff] }
0x11bc   :  { %v3543_v12 = vpack.c.bf16 %v3379_v8, %v3377_v7 }
0x122d   :  { %v970_v27 = vpop.permute.xlu0 %969 }
0x122e   :  { %v972_v28 = vmul.f32 %v970_v27, %v966_v26 }
0x1230   :  { %974 = vrot.lane.b32.xlu1 %v972_v28, %s3877_s23  ;;  %v1236_v28 = vld [vmem:[#allocation3 + $0x68] sm:$0xff] }
0x12a2   :  { %v975_v32 = vpop.permute.xlu1 %974 }
0x12a3   :  { %v977_v22 = vadd.f32 %v975_v32, %v967_v29  ;;  %v1238_v29 = vld [vmem:[#allocation3 + $0x78] sm:$0xff] }
0x12a5   :  { %3745 = vtanh.f32 %v977_v22 }
0x12af   :  { %v3746_v33 = vpop.eup %3745 }
0x12b0   :  { %980 = vrot.lane.b32.xlu0 %v3746_v33, %s3876_s22  ;;  %v1235_v33 = vld [vmem:[#allocation3 + $0x60] sm:$0xff] }
0x1322   :  { %v981_v13 = vpop.permute.xlu0 %980 }
0x1323   :  { %v983_v34 = vmul.f32 %v981_v13, %v966_v26  ;;  %v1233_v26 = vld [vmem:[#allocation3 + $0x50] sm:$0xff] }
0x1324   :  { %v4272_v27 = vpack.c.bf16 %v1233_v26, %v1231_v25  ;;  %v1237_v13 = vld [vmem:[#allocation3 + $0x70] sm:$0xff] }
0x1325   :  { %985 = vrot.lane.b32.xlu1 %v983_v34, %s3877_s23 }
0x1397   :  { %v4186_v35 = vpop.permute.xlu1 %985 }
0x1398   :  { %3368 = vmatmul.mubr.msk.f32.vlgmr.msra.gmra.mrb[10].mxu1 %vm179_vm7, %v4186_v35 }
0x1399   :  { %1303 = vmatprep.mubr.f32.mxu1 %v3874_v0  ;;  %3552 = vmatpush1.bf16.msra.mxu1 %v4272_v27 }
0x146b   :  { %v1074_v19 = vpop.f32.mrb[10].mxu1 }
0x146c   :  { %v1076_v39 = vpop.f32.mrb[11].mxu1 }
0x146d   :  { %v1079_v40 = vsel %vm47_vm1, %v1074_v19, %v1076_v39  ;;  %v4280_v19 = vpack.c.bf16 %v1237_v13, %v1235_v33 }
0x146e   :  { %v1080_v41 = vadd.f32 %v1079_v40, %v4047_v14 }
0x1470   :  { %v1081_v44 = vmul.f32 %v1080_v41, %v4051_v16 }
0x1472   :  { %3747 = vtanh.f32 %v1081_v44 }
0x147c   :  { %v3748_v46 = vpop.eup %3747 }
0x147d   :  { %v1083_v47 = vmul.f32 %v3748_v46, %v4051_v16 }
0x147f   :  { %v4197_v48 = vadd.f32 %v1083_v47, %v4061_v24 }
0x1481   :  { %1087 = vrot.lane.b32.xlu0 %v4197_v48, %s3876_s22  ;;  %v1085_v14 = vmul.f32 %v4197_v48, %v977_v22  ;;  %v4277_v22 = vpack.c.bf16 %v1238_v29, %v1236_v28 }
0x1483   :  { %3554 = vmatprep.subr.bf16.mxu1 %v4277_v22 }
0x1484   :  { %3556 = vmatpush1.bf16.msra.mxu1 %v4280_v19 }
0x1485   :  { %3558 = vmatprep.subr.bf16.mxu1 %v4270_v23 }
0x1487   :  { %1304 = vmatmul.mubr.f32.vlgmr.msra.gmra.mrb[12].mxu1 %v3874_v0 }
0x1488   :  { %3560 = vmatpush1.bf16.msra.mxu1 %v4272_v27  ;;  %1422 = vmatprep.mubr.f32.mxu1 %v3874_v0 }
0x1489   :  { %3562 = vmatprep.subr.bf16.mxu1 %v4277_v22 }
0x148c   :  { %3564 = vmatpush1.bf16.msra.mxu1 %v4280_v19 }
0x148d   :  { %3574 = vmatprep.subr.bf16.mxu1 %v4270_v23 }
0x14f3   :  { %v1088_v49 = vpop.permute.xlu0 %1087 }
0x14f4   :  { %v1090_v50 = vmul.f32 %v1088_v49, %v4197_v48  ;;  %v3385_v49 = vld [vmem:[%s4828_s3 + $0x2] sm:$0x3] }
0x14f6   :  { %1092 = vrot.lane.b32.xlu1 %v1090_v50, %s3877_s23  ;;  %v1136_v50 = vrot.slane %v3385_v49, %v4017_v43 }
0x14fa   :  { %754 = vrot.lane.b32.xlu1 %v4146_v58, %s3876_s22  ;;  %v3374_v58 = vld [vmem:[%s4826_s1 + $0xa8] sm:$0xff] }
0x14fb   :  { %v3537_v63 = vpack.c.bf16 %v3376_v60, %v3374_v58 }
0x14fe   :  { %989 = vrot.lane.b32.xlu1 %v983_v34, %s3876_s22 }
0x1502   :  { %283 = vrot.lane.b32.xlu1 %v4068_v36, %s3876_s22  ;;  %v3372_v36 = vld [vmem:[%s4826_s1 + $0x98] sm:$0xff] }
0x1503   :  { %v3533_v56 = vpack.c.bf16 %v3372_v36, %v3370_v55 }
0x1505   :  { %3534 = vmatprep.subr.bf16.mxu0 %v3533_v56 }
0x1506   :  { %519 = vrot.lane.b32.xlu1 %v4107_v15, %s3876_s22  ;;  %v3369_v15 = vld [vmem:[%s4826_s1 + $0x80] sm:$0xff] }
0x1507   :  { %v3535_v62 = vpack.c.bf16 %v3371_v4, %v3369_v15 }
0x1509   :  { %3536 = vmatpush1.bf16.msra.mxu0 %v3535_v62 }
0x150a   :  { %3538 = vmatprep.subr.bf16.mxu0 %v3537_v63 }
0x150d   :  { %3540 = vmatpush1.bf16.msra.mxu0 %v3539_v30 }
0x150e   :  { %3542 = vmatprep.subr.bf16.mxu0 %v3541_v6 }
0x1511   :  { %3544 = vmatpush1.bf16.msra.mxu0 %v3543_v12 }
0x155a   :  { %v1305_v47 = vpop.f32.mrb[12].mxu1 }
0x1568   :  { %v1093_v51 = vpop.permute.xlu1 %1092 }
0x1569   :  { %v1095_v52 = vadd.f32 %v1093_v51, %v1085_v14  ;;  %v1140_v14 = vrot.slane %v3385_v49, %v4023_v45 }
0x156b   :  { %3749 = vtanh.f32 %v1095_v52 }
0x156c   :  { %v755_v53 = vpop.permute.xlu1 %754 }
0x156d   :  { %757 = vst.msk [vmem:[#allocation2 + $0x4] sm:$0xc] %vm286_vm8, %v755_v53 }
0x1570   :  { %v990_v54 = vpop.permute.xlu1 %989 }
0x1571   :  { %992 = vst.msk [vmem:[#allocation2] sm:$0xc] %vm286_vm8, %v990_v54 }
0x1574   :  { %v284_v61 = vpop.permute.xlu1 %283 }
0x1575   :  { %v3750_v3 = vpop.eup %3749  ;;  %287 = vst.msk [vmem:[#allocation2 + $0xc] sm:$0xc] %vm286_vm8, %v284_v61 }
0x1576   :  { %1098 = vrot.lane.b32.xlu0 %v3750_v3, %s3876_s22 }
0x1578   :  { %v520_v31 = vpop.permute.xlu1 %519 }
0x1579   :  { %522 = vst.msk [vmem:[#allocation2 + $0x8] sm:$0xc] %vm286_vm8, %v520_v31 }
0x157a   :  { %872 = vst.msk [vmem:[#allocation2 + $0xa] sm:$0x3] %vm281_vm6, %v4171_v11  ;;  %873 = vrot.lane.b32.xlu0 %v4167_v9, %s3876_s22  ;;  %v3384_v9 = vld [vmem:[%s4826_s1 + $0xf8] sm:$0xff] }
0x157e   :  { %403 = vrot.lane.b32.xlu0 %v4087_v57, %s3876_s22  ;;  %v3382_v57 = vld [vmem:[%s4826_s1 + $0xe8] sm:$0xff] }
0x157f   :  { %v3545_v11 = vpack.c.bf16 %v3384_v9, %v3382_v57 }
0x1581   :  { %3546 = vmatprep.subr.bf16.mxu0 %v3545_v11 }
0x1582   :  { %3548 = vmatpush1.bf16.msra.mxu0 %v3547_v18 }
0x1583   :  { %3566 = vmatprep.subr.bf16.mxu0 %v4270_v23 }
0x15e8   :  { %v1099_v32 = vpop.permute.xlu0 %1098 }
0x15e9   :  { %v1101_v34 = vmul.f32 %v1099_v32, %v4197_v48 }
0x15eb   :  { %1103 = vrot.lane.b32.xlu1 %v1101_v34, %s3877_s23  ;;  %1107 = vrot.lane.b32.xlu0 %v1101_v34, %s3876_s22 }
0x15ec   :  { %v874_v39 = vpop.permute.xlu0 %873 }
0x15ed   :  { %876 = vst.msk [vmem:[#allocation2 + $0x2] sm:$0xc] %vm286_vm8, %v874_v39 }
0x15ef   :  { %637 = vrot.lane.b32.xlu0 %v4127_v38, %s3876_s22 }
0x15f0   :  { %v404_v40 = vpop.permute.xlu0 %403 }
0x15f1   :  { %406 = vst.msk [vmem:[#allocation2 + $0xa] sm:$0xc] %vm286_vm8, %v404_v40 }
0x15f2   :  { %988 = vst.msk [vmem:[#allocation2 + $0xc] sm:$0x3] %vm281_vm6, %v4186_v35 }
0x165d   :  { %v1104_v41 = vpop.permute.xlu1 %1103  ;;  %v1108_v38 = vpop.permute.xlu0 %1107 }
0x165e   :  { %1106 = vst.msk [vmem:[#allocation2 + $0xe] sm:$0x3] %vm281_vm6, %v1104_v41 }
0x165f   :  { %1110 = vst.msk [vmem:[#allocation2 - $0x2] sm:$0xc] %vm286_vm8, %v1108_v38 }
0x1661   :  { %v638_v44 = vpop.permute.xlu0 %637 }
0x1662   :  { %640 = vst.msk [vmem:[#allocation2 + $0x6] sm:$0xc] %vm286_vm8, %v638_v44 }
0x1663   :  { %753 = vst.msk [vmem:[#allocation2 + $0x8] sm:$0x3] %vm281_vm6, %v4150_v59  ;;  %v1307_v59 = vpop.f32.mrb[13].mxu1 }
0x1664   :  { %v1310_v48 = vsel %vm47_vm1, %v1305_v47, %v1307_v59 }
0x1666   :  { %v1111_v46 = vld [vmem:[#allocation2] sm:$0xff] }
0x1667   :  { %3386 = vmatmul.mubr.msk.f32.vlgmr.msra.gmra.mrb[8].mxu0 %vm50_vm0, %v1111_v46 }
0x1668   :  { %1219 = vmatprep.mubr.f32.mxu0 %v3874_v0  ;;  %3568 = vmatpush1.bf16.msra.mxu0 %v4272_v27 }
0x1669   :  { %3570 = vmatprep.subr.bf16.mxu0 %v4277_v22 }
0x166a   :  { %v1112_v35 = vld [vmem:[#allocation2 + $0x8] sm:$0xff] }
0x166b   :  { %3387 = vmatmul.mubr.msk.f32.gmra.mrb[10].mxu0 %vm50_vm0, %v1112_v35 }
0x166c   :  { %3572 = vmatpush1.bf16.msra.mxu0 %v4280_v19  ;;  %1538 = vmatprep.mubr.f32.mxu0 %v3874_v0 }
0x166d   :  { %3582 = vmatprep.subr.bf16.mxu0 %v4270_v23 }
0x173a   :  { %v1215_v51 = vpop.f32.mrb[8].mxu0 }
0x173b   :  { %v1217_v52 = vpop.f32.mrb[9].mxu0  ;;  %v1216_v53 = vadd.f32 %v1215_v51, %v1136_v50 }
0x173c   :  { %v1218_v54 = vadd.f32 %v1217_v52, %v1140_v14 }
0x173d   :  { %v1343_v56 = vrot.slane %v1216_v53, 2  ;;  %v1461_v4 = vrot.slane %v1216_v53, 4  ;;  %v1577_v61 = vrot.slane %v1216_v53, 6 }
0x173e   :  { %v1221_v55 = vpop.f32.mrb[10].mxu0  ;;  %v1696_v58 = vrot.slane %v1218_v54, 4  ;;  %v1815_v62 = vrot.slane %v1218_v54, 2  ;;  %v2049_v63 = vrot.slane %v1218_v54, 6 }
0x173f   :  { %v1222_v36 = vadd.f32 %v1221_v55, %v1136_v50  ;;  %v1223_v15 = vpop.f32.mrb[11].mxu0 }
0x1740   :  { %v1224_v60 = vadd.f32 %v1223_v15, %v1140_v14 }
0x1741   :  { %v4320_v1 = vsel %vm169_vm4, %v1222_v36, %v1696_v58  ;;  %v1813_v2 = vrot.slane %v1222_v36, 2  ;;  %v1931_v3 = vrot.slane %v1222_v36, 4  ;;  %v2047_v30 = vrot.slane %v1222_v36, 6 }
0x1742   :  { %v1227_v31 = vrot.slane %v1224_v60, 4  ;;  %v1345_v5 = vrot.slane %v1224_v60, 2  ;;  %v4323_v37 = vsel %vm169_vm4, %v1461_v4, %v1224_v60  ;;  %v1579_v6 = vrot.slane %v1224_v60, 6 }
0x1743   :  { %v4326_v7 = vsel %vm169_vm4, %v1813_v2, %v1815_v62  ;;  %v4329_v8 = vsel %vm169_vm4, %v1931_v3, %v1218_v54  ;;  %v4332_v12 = vsel %vm169_vm4, %v2047_v30, %v2049_v63 }
0x1744   :  { %v1229_v57 = vsel %vm169_vm4, %v1216_v53, %v1227_v31  ;;  %v1347_v9 = vsel %vm169_vm4, %v1343_v56, %v1345_v5  ;;  %v4337_v11 = vsel %vm169_vm4, %v1577_v61, %v1579_v6 }
0x1745   :  { %v1311_v10 = vadd.f32 %v1310_v48, %v1229_v57 }
0x1747   :  { %v1312_v17 = vmul.f32 %v1311_v10, %v4051_v16 }
0x1749   :  { %3751 = vtanh.f32 %v1312_v17 }
0x1753   :  { %v3752_v18 = vpop.eup %3751 }
0x1754   :  { %v1314_v20 = vmul.f32 %v3752_v18, %v4051_v16 }
0x1756   :  { %v1315_v21 = vadd.f32 %v1314_v20, %v4061_v24 }
0x1758   :  { %1318 = vrot.lane.b32.xlu0 %v1315_v21, %s3876_s22  ;;  %v1316_v28 = vmul.f32 0.0, %v1315_v21 }
0x17ca   :  { %v1319_v25 = vpop.permute.xlu0 %1318 }
0x17cb   :  { %v1321_v26 = vmul.f32 %v1319_v25, %v1315_v21 }
0x17cd   :  { %1323 = vrot.lane.b32.xlu1 %v1321_v26, %s3877_s23 }
0x183f   :  { %v1324_v29 = vpop.permute.xlu1 %1323 }
0x1840   :  { %v1326_v32 = vadd.f32 %v1324_v29, %v1316_v28 }
0x1842   :  { %3753 = vtanh.f32 %v1326_v32 }
0x184c   :  { %v3754_v33 = vpop.eup %3753 }
0x184d   :  { %1329 = vrot.lane.b32.xlu0 %v3754_v33, %s3876_s22 }
0x18bf   :  { %v1330_v13 = vpop.permute.xlu0 %1329 }
0x18c0   :  { %v4345_v34 = vmul.f32 %v1330_v13, %v1315_v21 }
0x18c2   :  { %1334 = vrot.lane.b32.xlu1 %v4345_v34, %s3877_s23 }
0x1934   :  { %v1335_v39 = vpop.permute.xlu1 %1334 }
0x1935   :  { %1337 = vst.msk [vmem:[#allocation2] sm:$0x3] %vm281_vm6, %v1335_v39  ;;  %3388 = vmatmul.mubr.msk.f32.vlgmr.msra.gmra.mrb[14].mxu1 %vm179_vm7, %v1335_v39 }
0x1936   :  { %3576 = vmatpush1.bf16.msra.mxu1 %v4272_v27  ;;  %1656 = vmatprep.mubr.f32.mxu1 %v3874_v0 }
0x1937   :  { %3578 = vmatprep.subr.bf16.mxu1 %v4277_v22 }
0x193a   :  { %3580 = vmatpush1.bf16.msra.mxu1 %v4280_v19 }
0x193b   :  { %3590 = vmatprep.subr.bf16.mxu1 %v4270_v23 }
0x1a08   :  { %v1424_v40 = vpop.f32.mrb[14].mxu1 }
0x1a09   :  { %v1426_v41 = vpop.f32.mrb[15].mxu1 }
0x1a0a   :  { %v1429_v38 = vsel %vm47_vm1, %v1424_v40, %v1426_v41 }
0x1a0b   :  { %v1430_v44 = vadd.f32 %v1429_v38, %v1347_v9 }
0x1a0d   :  { %v1431_v46 = vmul.f32 %v1430_v44, %v4051_v16 }
0x1a0f   :  { %3755 = vtanh.f32 %v1431_v46 }
0x1a19   :  { %v3756_v35 = vpop.eup %3755 }
0x1a1a   :  { %v1433_v47 = vmul.f32 %v3756_v35, %v4051_v16 }
0x1a1c   :  { %v1434_v59 = vadd.f32 %v1433_v47, %v4061_v24 }
0x1a1e   :  { %1437 = vrot.lane.b32.xlu0 %v1434_v59, %s3876_s22  ;;  %v1435_v50 = vmul.f32 %v1434_v59, %v1326_v32 }
0x1a90   :  { %v1438_v48 = vpop.permute.xlu0 %1437 }
0x1a91   :  { %v1440_v49 = vmul.f32 %v1438_v48, %v1434_v59 }
0x1a93   :  { %1442 = vrot.lane.b32.xlu1 %v1440_v49, %s3877_s23 }
0x1b05   :  { %v1443_v14 = vpop.permute.xlu1 %1442 }
0x1b06   :  { %v1445_v51 = vadd.f32 %v1443_v14, %v1435_v50 }
0x1b08   :  { %3757 = vtanh.f32 %v1445_v51 }
0x1b12   :  { %v3758_v52 = vpop.eup %3757 }
0x1b13   :  { %1448 = vrot.lane.b32.xlu0 %v3758_v52, %s3876_s22 }
0x1b85   :  { %v1449_v53 = vpop.permute.xlu0 %1448 }
0x1b86   :  { %v4364_v54 = vmul.f32 %v1449_v53, %v1434_v59 }
0x1b88   :  { %1453 = vrot.lane.b32.xlu1 %v4364_v54, %s3877_s23 }
0x1bfa   :  { %v1454_v55 = vpop.permute.xlu1 %1453 }
0x1bfb   :  { %1456 = vst.msk [vmem:[#allocation2 + $0x2] sm:$0x3] %vm281_vm6, %v1454_v55  ;;  %3389 = vmatmul.mubr.msk.f32.vlgmr.msra.gmra.mrb[12].mxu0 %vm179_vm7, %v1454_v55 }
0x1bfc   :  { %3584 = vmatpush1.bf16.msra.mxu0 %v4272_v27  ;;  %1773 = vmatprep.mubr.f32.mxu0 %v3874_v0 }
0x1bfd   :  { %3586 = vmatprep.subr.bf16.mxu0 %v4277_v22 }
0x1c00   :  { %3588 = vmatpush1.bf16.msra.mxu0 %v4280_v19 }
0x1c01   :  { %3598 = vmatprep.subr.bf16.mxu0 %v4270_v23 }
0x1cce   :  { %v1540_v36 = vpop.f32.mrb[12].mxu0 }
0x1ccf   :  { %v1542_v15 = vpop.f32.mrb[13].mxu0 }
0x1cd0   :  { %v1545_v56 = vsel %vm47_vm1, %v1540_v36, %v1542_v15 }
0x1cd1   :  { %v1546_v4 = vadd.f32 %v1545_v56, %v4323_v37 }
0x1cd3   :  { %v1547_v58 = vmul.f32 %v1546_v4, %v4051_v16 }
0x1cd5   :  { %3759 = vtanh.f32 %v1547_v58 }
0x1cdf   :  { %v3760_v60 = vpop.eup %3759 }
0x1ce0   :  { %v1549_v61 = vmul.f32 %v3760_v60, %v4051_v16 }
0x1ce2   :  { %v1550_v62 = vadd.f32 %v1549_v61, %v4061_v24 }
0x1ce4   :  { %1553 = vrot.lane.b32.xlu0 %v1550_v62, %s3876_s22  ;;  %v1551_v3 = vmul.f32 %v1550_v62, %v1445_v51 }
0x1d56   :  { %v1554_v63 = vpop.permute.xlu0 %1553 }
0x1d57   :  { %v1556_v2 = vmul.f32 %v1554_v63, %v1550_v62 }
0x1d59   :  { %1558 = vrot.lane.b32.xlu1 %v1556_v2, %s3877_s23 }
0x1dcb   :  { %v1559_v30 = vpop.permute.xlu1 %1558 }
0x1dcc   :  { %v1561_v31 = vadd.f32 %v1559_v30, %v1551_v3 }
0x1dce   :  { %3761 = vtanh.f32 %v1561_v31 }
0x1dd8   :  { %v3762_v5 = vpop.eup %3761 }
0x1dd9   :  { %1564 = vrot.lane.b32.xlu0 %v3762_v5, %s3876_s22 }
0x1e4b   :  { %v1565_v37 = vpop.permute.xlu0 %1564 }
0x1e4c   :  { %v4384_v6 = vmul.f32 %v1565_v37, %v1550_v62 }
0x1e4e   :  { %1569 = vrot.lane.b32.xlu1 %v4384_v6, %s3877_s23 }
0x1ec0   :  { %v1570_v57 = vpop.permute.xlu1 %1569 }
0x1ec1   :  { %1572 = vst.msk [vmem:[#allocation2 + $0x4] sm:$0x3] %vm281_vm6, %v1570_v57  ;;  %3390 = vmatmul.mubr.msk.f32.vlgmr.msra.gmra.mrb[16].mxu1 %vm179_vm7, %v1570_v57 }
0x1ec2   :  { %3592 = vmatpush1.bf16.msra.mxu1 %v4272_v27  ;;  %1892 = vmatprep.mubr.f32.mxu1 %v3874_v0 }
0x1ec3   :  { %3594 = vmatprep.subr.bf16.mxu1 %v4277_v22 }
0x1ec6   :  { %3596 = vmatpush1.bf16.msra.mxu1 %v4280_v19 }
0x1ec7   :  { %3606 = vmatprep.subr.bf16.mxu1 %v4270_v23 }
0x1f94   :  { %v1658_v9 = vpop.f32.mrb[16].mxu1 }
0x1f95   :  { %v1660_v10 = vpop.f32.mrb[17].mxu1 }
0x1f96   :  { %v1663_v17 = vsel %vm47_vm1, %v1658_v9, %v1660_v10 }
0x1f97   :  { %v1664_v18 = vadd.f32 %v1663_v17, %v4337_v11 }
0x1f99   :  { %v1665_v20 = vmul.f32 %v1664_v18, %v4051_v16 }
0x1f9b   :  { %3763 = vtanh.f32 %v1665_v20 }
0x1fa5   :  { %v3764_v21 = vpop.eup %3763 }
0x1fa6   :  { %v1667_v25 = vmul.f32 %v3764_v21, %v4051_v16 }
0x1fa8   :  { %v1668_v26 = vadd.f32 %v1667_v25, %v4061_v24 }
0x1faa   :  { %1671 = vrot.lane.b32.xlu0 %v1668_v26, %s3876_s22  ;;  %v1669_v23 = vmul.f32 %v1668_v26, %v1561_v31 }
0x201c   :  { %v1672_v28 = vpop.permute.xlu0 %1671 }
0x201d   :  { %v1674_v29 = vmul.f32 %v1672_v28, %v1668_v26 }
0x201f   :  { %1676 = vrot.lane.b32.xlu1 %v1674_v29, %s3877_s23 }
0x2091   :  { %v1677_v32 = vpop.permute.xlu1 %1676 }
0x2092   :  { %v1679_v33 = vadd.f32 %v1677_v32, %v1669_v23 }
0x2094   :  { %3765 = vtanh.f32 %v1679_v33 }
0x209e   :  { %v3766_v13 = vpop.eup %3765 }
0x209f   :  { %1682 = vrot.lane.b32.xlu0 %v3766_v13, %s3876_s22 }
0x2111   :  { %v1683_v11 = vpop.permute.xlu0 %1682 }
0x2112   :  { %v4404_v39 = vmul.f32 %v1683_v11, %v1668_v26 }
0x2114   :  { %1687 = vrot.lane.b32.xlu1 %v4404_v39, %s3877_s23 }
0x2186   :  { %v1688_v40 = vpop.permute.xlu1 %1687 }
0x2187   :  { %1690 = vst.msk [vmem:[#allocation2 + $0x6] sm:$0x3] %vm281_vm6, %v1688_v40  ;;  %3391 = vmatmul.mubr.msk.f32.vlgmr.msra.gmra.mrb[14].mxu0 %vm179_vm7, %v1688_v40 }
0x2188   :  { %3600 = vmatpush1.bf16.msra.mxu0 %v4272_v27  ;;  %2008 = vmatprep.mubr.f32.mxu0 %v3874_v0 }
0x2189   :  { %3602 = vmatprep.subr.bf16.mxu0 %v4277_v22 }
0x218c   :  { %3604 = vmatpush1.bf16.msra.mxu0 %v4280_v19 }
0x225a   :  { %v1775_v41 = vpop.f32.mrb[14].mxu0 }
0x225b   :  { %v1777_v38 = vpop.f32.mrb[15].mxu0 }
0x225c   :  { %v1780_v44 = vsel %vm47_vm1, %v1775_v41, %v1777_v38 }
0x225d   :  { %v1781_v46 = vadd.f32 %v1780_v44, %v4320_v1 }
0x225f   :  { %v1782_v35 = vmul.f32 %v1781_v46, %v4051_v16 }
0x2261   :  { %3767 = vtanh.f32 %v1782_v35 }
0x226b   :  { %v3768_v47 = vpop.eup %3767 }
0x226c   :  { %v1784_v59 = vmul.f32 %v3768_v47, %v4051_v16 }
0x226e   :  { %v1785_v48 = vadd.f32 %v1784_v59, %v4061_v24 }
0x2270   :  { %1788 = vrot.lane.b32.xlu0 %v1785_v48, %s3876_s22  ;;  %v1786_v14 = vmul.f32 %v1785_v48, %v1679_v33 }
0x22e2   :  { %v1789_v49 = vpop.permute.xlu0 %1788 }
0x22e3   :  { %v1791_v50 = vmul.f32 %v1789_v49, %v1785_v48 }
0x22e5   :  { %1793 = vrot.lane.b32.xlu1 %v1791_v50, %s3877_s23 }
0x2357   :  { %v1794_v51 = vpop.permute.xlu1 %1793 }
0x2358   :  { %v1796_v52 = vadd.f32 %v1794_v51, %v1786_v14 }
0x235a   :  { %3769 = vtanh.f32 %v1796_v52 }
0x2364   :  { %v3770_v53 = vpop.eup %3769 }
0x2365   :  { %1799 = vrot.lane.b32.xlu0 %v3770_v53, %s3876_s22 }
0x23d7   :  { %v1800_v1 = vpop.permute.xlu0 %1799 }
0x23d8   :  { %v4423_v55 = vmul.f32 %v1800_v1, %v1785_v48  ;;  %v3397_v1 = vld [vmem:[%s4826_s1 + $0x110] sm:$0xff] }
0x23da   :  { %1804 = vrot.lane.b32.xlu1 %v4423_v55, %s3877_s23 }
0x244c   :  { %v4427_v36 = vpop.permute.xlu1 %1804 }
0x244d   :  { %3392 = vmatmul.mubr.msk.f32.vlgmr.msra.gmra.mrb[18].mxu1 %vm179_vm7, %v4427_v36 }
0x244e   :  { %3608 = vmatpush1.bf16.msra.mxu1 %v4272_v27  ;;  %2126 = vmatprep.mubr.f32.mxu1 %v3874_v0 }
0x244f   :  { %3610 = vmatprep.subr.bf16.mxu1 %v4277_v22 }
0x2452   :  { %3612 = vmatpush1.bf16.msra.mxu1 %v4280_v19 }
0x2520   :  { %v1894_v15 = vpop.f32.mrb[18].mxu1 }
0x2521   :  { %v1896_v56 = vpop.f32.mrb[19].mxu1 }
0x2522   :  { %v1899_v4 = vsel %vm47_vm1, %v1894_v15, %v1896_v56  ;;  %v3402_v15 = vld [vmem:[%s4826_s1 + $0x138] sm:$0xff] }
0x2523   :  { %v1900_v58 = vadd.f32 %v1899_v4, %v4326_v7 }
0x2525   :  { %v1901_v60 = vmul.f32 %v1900_v58, %v4051_v16 }
0x2527   :  { %3771 = vtanh.f32 %v1901_v60  ;;  %v3399_v60 = vld [vmem:[%s4826_s1 + $0x120] sm:$0xff] }
0x2531   :  { %v3772_v61 = vpop.eup %3771 }
0x2532   :  { %v1903_v62 = vmul.f32 %v3772_v61, %v4051_v16  ;;  %v3401_v61 = vld [vmem:[%s4826_s1 + $0x130] sm:$0xff] }
0x2534   :  { %v1904_v27 = vadd.f32 %v1903_v62, %v4061_v24 }
0x2536   :  { %1907 = vrot.lane.b32.xlu0 %v1904_v27, %s3876_s22  ;;  %v1905_v19 = vmul.f32 %v1904_v27, %v1796_v52  ;;  %v3396_v52 = vld [vmem:[%s4826_s1 + $0x108] sm:$0xff] }
0x25a8   :  { %v1908_v22 = vpop.permute.xlu0 %1907 }
0x25a9   :  { %v1910_v63 = vmul.f32 %v1908_v22, %v1904_v27 }
0x25ab   :  { %1912 = vrot.lane.b32.xlu1 %v1910_v63, %s3877_s23  ;;  %v3404_v63 = vld [vmem:[%s4826_s1 + $0x148] sm:$0xff] }
0x261d   :  { %v1913_v2 = vpop.permute.xlu1 %1912 }
0x261e   :  { %v1915_v3 = vadd.f32 %v1913_v2, %v1905_v19  ;;  %v3406_v19 = vld [vmem:[%s4826_s1 + $0x158] sm:$0xff] }
0x261f   :  { %v3621_v2 = vpack.c.bf16 %v3406_v19, %v3404_v63 }
0x2620   :  { %3773 = vtanh.f32 %v1915_v3 }
0x262a   :  { %v3774_v30 = vpop.eup %3773 }
0x262b   :  { %1918 = vrot.lane.b32.xlu0 %v3774_v30, %s3876_s22  ;;  %v3405_v30 = vld [vmem:[%s4826_s1 + $0x150] sm:$0xff] }
0x269d   :  { %v1919_v7 = vpop.permute.xlu0 %1918 }
0x269e   :  { %v4444_v31 = vmul.f32 %v1919_v7, %v1904_v27  ;;  %v3619_v27 = vpack.c.bf16 %v3401_v61, %v3399_v60 }
0x26a0   :  { %1923 = vrot.lane.b32.xlu1 %v4444_v31, %s3877_s23 }
0x2712   :  { %v4448_v5 = vpop.permute.xlu1 %1923 }
0x2713   :  { %3393 = vmatmul.mubr.msk.f32.vlgmr.msra.gmra.mrb[16].mxu0 %vm179_vm7, %v4448_v5 }
0x2714   :  { %2267 = vmatprep.mubr.f32.mxu0 %v3874_v0 }
0x27e6   :  { %v2010_v37 = vpop.f32.mrb[16].mxu0 }
0x27e7   :  { %v2012_v57 = vpop.f32.mrb[17].mxu0 }
0x27e8   :  { %v2015_v9 = vsel %vm47_vm1, %v2010_v37, %v2012_v57  ;;  %v3407_v37 = vld [vmem:[%s4826_s1 + $0x160] sm:$0xff]  ;;  %v3409_v57 = vld [vmem:[%s4826_s1 + $0x170] sm:$0xff] }
0x27e9   :  { %v2016_v10 = vadd.f32 %v2015_v9, %v4329_v8  ;;  %v3627_v9 = vpack.c.bf16 %v3409_v57, %v3407_v37 }
0x27eb   :  { %v2017_v17 = vmul.f32 %v2016_v10, %v4051_v16  ;;  %v2286_v10 = vld [vmem:[#allocation3 + $0x88] sm:$0xff] }
0x27ed   :  { %3775 = vtanh.f32 %v2017_v17  ;;  %v2288_v17 = vld [vmem:[#allocation3 + $0x98] sm:$0xff] }
0x27f7   :  { %v3776_v18 = vpop.eup %3775 }
0x27f8   :  { %v2019_v20 = vmul.f32 %v3776_v18, %v4051_v16  ;;  %v4547_v18 = vpack.c.bf16 %v2288_v17, %v2286_v10 }
0x27fa   :  { %v2020_v21 = vadd.f32 %v2019_v20, %v4061_v24  ;;  %v2285_v20 = vld [vmem:[#allocation3 + $0x80] sm:$0xff]  ;;  %3630 = vmatprep.subr.bf16.mxu1 %v4547_v18 }
0x27fc   :  { %2023 = vrot.lane.b32.xlu0 %v2020_v21, %s3876_s22  ;;  %v2021_v28 = vmul.f32 %v2020_v21, %v1915_v3  ;;  %v3403_v3 = vld [vmem:[%s4826_s1 + $0x140] sm:$0xff] }
0x27fd   :  { %v3623_v7 = vpack.c.bf16 %v3405_v30, %v3403_v3 }
0x286e   :  { %v2024_v25 = vpop.permute.xlu0 %2023 }
0x286f   :  { %v2026_v26 = vmul.f32 %v2024_v25, %v2020_v21 }
0x2871   :  { %2028 = vrot.lane.b32.xlu1 %v2026_v26, %s3877_s23  ;;  %v2290_v26 = vld [vmem:[#allocation3 + $0xa8] sm:$0xff] }
0x28e3   :  { %v2029_v29 = vpop.permute.xlu1 %2028 }
0x28e4   :  { %v2031_v23 = vadd.f32 %v2029_v29, %v2021_v28  ;;  %v2292_v28 = vld [vmem:[#allocation3 + $0xb8] sm:$0xff] }
0x28e6   :  { %3777 = vtanh.f32 %v2031_v23 }
0x28f0   :  { %v3778_v32 = vpop.eup %3777 }
0x28f1   :  { %2034 = vrot.lane.b32.xlu0 %v3778_v32, %s3876_s22  ;;  %v2289_v32 = vld [vmem:[#allocation3 + $0xa0] sm:$0xff] }
0x2963   :  { %v2035_v8 = vpop.permute.xlu0 %2034 }
0x2964   :  { %v2037_v33 = vmul.f32 %v2035_v8, %v2020_v21  ;;  %v2287_v21 = vld [vmem:[#allocation3 + $0x90] sm:$0xff] }
0x2965   :  { %v4549_v25 = vpack.c.bf16 %v2287_v21, %v2285_v20  ;;  %v2291_v8 = vld [vmem:[#allocation3 + $0xb0] sm:$0xff] }
0x2966   :  { %2039 = vrot.lane.b32.xlu1 %v2037_v33, %s3877_s23 }
0x29d8   :  { %v4463_v13 = vpop.permute.xlu1 %2039 }
0x29d9   :  { %3394 = vmatmul.mubr.msk.f32.vlgmr.msra.gmra.mrb[20].mxu1 %vm179_vm7, %v4463_v13 }
0x29da   :  { %2357 = vmatprep.mubr.f32.mxu1 %v3874_v0  ;;  %3632 = vmatpush1.bf16.msra.mxu1 %v4549_v25 }
0x2aac   :  { %v2128_v11 = vpop.f32.mrb[20].mxu1 }
0x2aad   :  { %v2130_v40 = vpop.f32.mrb[21].mxu1 }
0x2aae   :  { %v2133_v41 = vsel %vm47_vm1, %v2128_v11, %v2130_v40  ;;  %v4557_v11 = vpack.c.bf16 %v2291_v8, %v2289_v32 }
0x2aaf   :  { %v2134_v38 = vadd.f32 %v2133_v41, %v4332_v12 }
0x2ab1   :  { %v2135_v44 = vmul.f32 %v2134_v38, %v4051_v16 }
0x2ab3   :  { %3779 = vtanh.f32 %v2135_v44 }
0x2abd   :  { %v3780_v46 = vpop.eup %3779 }
0x2abe   :  { %v2137_v35 = vmul.f32 %v3780_v46, %v4051_v16 }
0x2ac0   :  { %v4474_v47 = vadd.f32 %v2137_v35, %v4061_v24 }
0x2ac2   :  { %2141 = vrot.lane.b32.xlu0 %v4474_v47, %s3876_s22  ;;  %v2139_v12 = vmul.f32 %v4474_v47, %v2031_v23  ;;  %v4554_v23 = vpack.c.bf16 %v2292_v28, %v2290_v26 }
0x2ac4   :  { %3634 = vmatprep.subr.bf16.mxu1 %v4554_v23 }
0x2ac5   :  { %3636 = vmatpush1.bf16.msra.mxu1 %v4557_v11 }
0x2ac6   :  { %3638 = vmatprep.subr.bf16.mxu1 %v4547_v18 }
0x2ac8   :  { %2358 = vmatmul.mubr.f32.vlgmr.msra.gmra.mrb[22].mxu1 %v3874_v0 }
0x2ac9   :  { %3640 = vmatpush1.bf16.msra.mxu1 %v4549_v25  ;;  %2476 = vmatprep.mubr.f32.mxu1 %v3874_v0 }
0x2aca   :  { %3642 = vmatprep.subr.bf16.mxu1 %v4554_v23 }
0x2acd   :  { %3644 = vmatpush1.bf16.msra.mxu1 %v4557_v11 }
0x2ace   :  { %3654 = vmatprep.subr.bf16.mxu1 %v4547_v18 }
0x2b34   :  { %v2142_v59 = vpop.permute.xlu0 %2141 }
0x2b35   :  { %v2144_v48 = vmul.f32 %v2142_v59, %v4474_v47  ;;  %v3411_v59 = vld [vmem:[%s4828_s3 + $0x4] sm:$0x3] }
0x2b37   :  { %2146 = vrot.lane.b32.xlu1 %v2144_v48, %s3877_s23  ;;  %v2190_v48 = vrot.slane %v3411_v59, %v4017_v43 }
0x2b3b   :  { %1808 = vrot.lane.b32.xlu1 %v4423_v55, %s3876_s22  ;;  %v3400_v55 = vld [vmem:[%s4826_s1 + $0x128] sm:$0xff] }
0x2b3c   :  { %v3617_v58 = vpack.c.bf16 %v3402_v15, %v3400_v55 }
0x2b3f   :  { %2043 = vrot.lane.b32.xlu1 %v2037_v33, %s3876_s22 }
0x2b43   :  { %1338 = vrot.lane.b32.xlu1 %v4345_v34, %s3876_s22  ;;  %v3398_v34 = vld [vmem:[%s4826_s1 + $0x118] sm:$0xff] }
0x2b44   :  { %v3613_v53 = vpack.c.bf16 %v3398_v34, %v3396_v52 }
0x2b46   :  { %3614 = vmatprep.subr.bf16.mxu0 %v3613_v53 }
0x2b47   :  { %1573 = vrot.lane.b32.xlu1 %v4384_v6, %s3876_s22  ;;  %v3395_v6 = vld [vmem:[%s4826_s1 + $0x100] sm:$0xff] }
0x2b48   :  { %v3615_v4 = vpack.c.bf16 %v3397_v1, %v3395_v6 }
0x2b4a   :  { %3616 = vmatpush1.bf16.msra.mxu0 %v3615_v4 }
0x2b4b   :  { %3618 = vmatprep.subr.bf16.mxu0 %v3617_v58 }
0x2b4e   :  { %3620 = vmatpush1.bf16.msra.mxu0 %v3619_v27 }
0x2b4f   :  { %3622 = vmatprep.subr.bf16.mxu0 %v3621_v2 }
0x2b52   :  { %3624 = vmatpush1.bf16.msra.mxu0 %v3623_v7 }
0x2b9b   :  { %v2359_v35 = vpop.f32.mrb[22].mxu1 }
0x2ba9   :  { %v2147_v49 = vpop.permute.xlu1 %2146 }
0x2baa   :  { %v2149_v50 = vadd.f32 %v2147_v49, %v2139_v12  ;;  %v2194_v12 = vrot.slane %v3411_v59, %v4023_v45 }
0x2bac   :  { %3781 = vtanh.f32 %v2149_v50 }
0x2bad   :  { %v1809_v14 = vpop.permute.xlu1 %1808 }
0x2bae   :  { %1811 = vst.msk [vmem:[#allocation2 + $0x4] sm:$0xc] %vm286_vm8, %v1809_v14 }
0x2bb1   :  { %v2044_v51 = vpop.permute.xlu1 %2043 }
0x2bb2   :  { %2046 = vst.msk [vmem:[#allocation2] sm:$0xc] %vm286_vm8, %v2044_v51 }
0x2bb5   :  { %v1339_v56 = vpop.permute.xlu1 %1338 }
0x2bb6   :  { %v3782_v62 = vpop.eup %3781  ;;  %1341 = vst.msk [vmem:[#allocation2 + $0xc] sm:$0xc] %vm286_vm8, %v1339_v56 }
0x2bb7   :  { %2152 = vrot.lane.b32.xlu0 %v3782_v62, %s3876_s22 }
0x2bb9   :  { %v1574_v22 = vpop.permute.xlu1 %1573 }
0x2bba   :  { %1576 = vst.msk [vmem:[#allocation2 + $0x8] sm:$0xc] %vm286_vm8, %v1574_v22 }
0x2bbb   :  { %1926 = vst.msk [vmem:[#allocation2 + $0xa] sm:$0x3] %vm281_vm6, %v4448_v5  ;;  %1927 = vrot.lane.b32.xlu0 %v4444_v31, %s3876_s22  ;;  %v3410_v31 = vld [vmem:[%s4826_s1 + $0x178] sm:$0xff] }
0x2bbf   :  { %1457 = vrot.lane.b32.xlu0 %v4364_v54, %s3876_s22  ;;  %v3408_v54 = vld [vmem:[%s4826_s1 + $0x168] sm:$0xff] }
0x2bc0   :  { %v3625_v5 = vpack.c.bf16 %v3410_v31, %v3408_v54 }
0x2bc2   :  { %3626 = vmatprep.subr.bf16.mxu0 %v3625_v5 }
0x2bc3   :  { %3628 = vmatpush1.bf16.msra.mxu0 %v3627_v9 }
0x2bc4   :  { %3646 = vmatprep.subr.bf16.mxu0 %v4547_v18 }
0x2c29   :  { %v2153_v29 = vpop.permute.xlu0 %2152 }
0x2c2a   :  { %v2155_v33 = vmul.f32 %v2153_v29, %v4474_v47 }
0x2c2c   :  { %2157 = vrot.lane.b32.xlu1 %v2155_v33, %s3877_s23  ;;  %2161 = vrot.lane.b32.xlu0 %v2155_v33, %s3876_s22 }
0x2c2d   :  { %v1928_v40 = vpop.permute.xlu0 %1927 }
0x2c2e   :  { %1930 = vst.msk [vmem:[#allocation2 + $0x2] sm:$0xc] %vm286_vm8, %v1928_v40 }
0x2c30   :  { %1691 = vrot.lane.b32.xlu0 %v4404_v39, %s3876_s22 }
0x2c31   :  { %v1458_v41 = vpop.permute.xlu0 %1457 }
0x2c32   :  { %1460 = vst.msk [vmem:[#allocation2 + $0xa] sm:$0xc] %vm286_vm8, %v1458_v41 }
0x2c33   :  { %2042 = vst.msk [vmem:[#allocation2 + $0xc] sm:$0x3] %vm281_vm6, %v4463_v13 }
0x2c9e   :  { %v2158_v38 = vpop.permute.xlu1 %2157  ;;  %v2162_v39 = vpop.permute.xlu0 %2161 }
0x2c9f   :  { %2160 = vst.msk [vmem:[#allocation2 + $0xe] sm:$0x3] %vm281_vm6, %v2158_v38 }
0x2ca0   :  { %2164 = vst.msk [vmem:[#allocation2 - $0x2] sm:$0xc] %vm286_vm8, %v2162_v39 }
0x2ca2   :  { %v1692_v44 = vpop.permute.xlu0 %1691 }
0x2ca3   :  { %1694 = vst.msk [vmem:[#allocation2 + $0x6] sm:$0xc] %vm286_vm8, %v1692_v44 }
0x2ca4   :  { %1807 = vst.msk [vmem:[#allocation2 + $0x8] sm:$0x3] %vm281_vm6, %v4427_v36  ;;  %v2361_v36 = vpop.f32.mrb[23].mxu1 }
0x2ca5   :  { %v2364_v47 = vsel %vm47_vm1, %v2359_v35, %v2361_v36 }
0x2ca7   :  { %v2165_v46 = vld [vmem:[#allocation2] sm:$0xff] }
0x2ca8   :  { %3412 = vmatmul.mubr.msk.f32.vlgmr.msra.gmra.mrb[18].mxu0 %vm50_vm0, %v2165_v46 }
0x2ca9   :  { %2273 = vmatprep.mubr.f32.mxu0 %v3874_v0  ;;  %3648 = vmatpush1.bf16.msra.mxu0 %v4549_v25 }
0x2caa   :  { %3650 = vmatprep.subr.bf16.mxu0 %v4554_v23 }
0x2cab   :  { %v2166_v13 = vld [vmem:[#allocation2 + $0x8] sm:$0xff] }
0x2cac   :  { %3413 = vmatmul.mubr.msk.f32.gmra.mrb[20].mxu0 %vm50_vm0, %v2166_v13 }
0x2cad   :  { %3652 = vmatpush1.bf16.msra.mxu0 %v4557_v11  ;;  %2592 = vmatprep.mubr.f32.mxu0 %v3874_v0 }
0x2cae   :  { %3662 = vmatprep.subr.bf16.mxu0 %v4547_v18 }
0x2d7b   :  { %v2269_v49 = vpop.f32.mrb[18].mxu0 }
0x2d7c   :  { %v2271_v50 = vpop.f32.mrb[19].mxu0  ;;  %v2270_v14 = vadd.f32 %v2269_v49, %v2190_v48 }
0x2d7d   :  { %v2272_v51 = vadd.f32 %v2271_v50, %v2194_v12 }
0x2d7e   :  { %v2397_v53 = vrot.slane %v2270_v14, 2  ;;  %v2515_v1 = vrot.slane %v2270_v14, 4  ;;  %v2631_v56 = vrot.slane %v2270_v14, 6 }
0x2d7f   :  { %v2275_v52 = vpop.f32.mrb[20].mxu0  ;;  %v2750_v55 = vrot.slane %v2272_v51, 4  ;;  %v2869_v4 = vrot.slane %v2272_v51, 2  ;;  %v3103_v58 = vrot.slane %v2272_v51, 6 }
0x2d80   :  { %v2276_v34 = vadd.f32 %v2275_v52, %v2190_v48  ;;  %v2277_v6 = vpop.f32.mrb[21].mxu0 }
0x2d81   :  { %v2278_v15 = vadd.f32 %v2277_v6, %v2194_v12 }
0x2d82   :  { %v4597_v60 = vsel %vm169_vm4, %v2276_v34, %v2750_v55  ;;  %v2867_v43 = vrot.slane %v2276_v34, 2  ;;  %v2985_v61 = vrot.slane %v2276_v34, 4  ;;  %v3101_v45 = vrot.slane %v2276_v34, 6 }
0x2d83   :  { %v2281_v62 = vrot.slane %v2278_v15, 4  ;;  %v2399_v27 = vrot.slane %v2278_v15, 2  ;;  %v4600_v22 = vsel %vm169_vm4, %v2515_v1, %v2278_v15  ;;  %v2633_v63 = vrot.slane %v2278_v15, 6 }
0x2d84   :  { %v4603_v19 = vsel %vm169_vm4, %v2867_v43, %v2869_v4  ;;  %v4606_v2 = vsel %vm169_vm4, %v2985_v61, %v2272_v51  ;;  %v4609_v3 = vsel %vm169_vm4, %v3101_v45, %v3103_v58 }
0x2d85   :  { %v2283_v30 = vsel %vm169_vm4, %v2270_v14, %v2281_v62  ;;  %v2401_v7 = vsel %vm169_vm4, %v2397_v53, %v2399_v27  ;;  %v4614_v54 = vsel %vm169_vm4, %v2631_v56, %v2633_v63 }
0x2d86   :  { %v2365_v31 = vadd.f32 %v2364_v47, %v2283_v30 }
0x2d88   :  { %v2366_v5 = vmul.f32 %v2365_v31, %v4051_v16 }
0x2d8a   :  { %3783 = vtanh.f32 %v2366_v5 }
0x2d94   :  { %v3784_v37 = vpop.eup %3783 }
0x2d95   :  { %v2368_v57 = vmul.f32 %v3784_v37, %v4051_v16 }
0x2d97   :  { %v2369_v9 = vadd.f32 %v2368_v57, %v4061_v24 }
0x2d99   :  { %2372 = vrot.lane.b32.xlu0 %v2369_v9, %s3876_s22  ;;  %v2370_v20 = vmul.f32 0.0, %v2369_v9 }
0x2e0b   :  { %v2373_v10 = vpop.permute.xlu0 %2372 }
0x2e0c   :  { %v2375_v17 = vmul.f32 %v2373_v10, %v2369_v9 }
0x2e0e   :  { %2377 = vrot.lane.b32.xlu1 %v2375_v17, %s3877_s23 }
0x2e80   :  { %v2378_v21 = vpop.permute.xlu1 %2377 }
0x2e81   :  { %v2380_v26 = vadd.f32 %v2378_v21, %v2370_v20 }
0x2e83   :  { %3785 = vtanh.f32 %v2380_v26 }
0x2e8d   :  { %v3786_v28 = vpop.eup %3785 }
0x2e8e   :  { %2383 = vrot.lane.b32.xlu0 %v3786_v28, %s3876_s22 }
0x2f00   :  { %v2384_v29 = vpop.permute.xlu0 %2383 }
0x2f01   :  { %v4622_v32 = vmul.f32 %v2384_v29, %v2369_v9 }
0x2f03   :  { %2388 = vrot.lane.b32.xlu1 %v4622_v32, %s3877_s23 }
0x2f75   :  { %v2389_v8 = vpop.permute.xlu1 %2388 }
0x2f76   :  { %2391 = vst.msk [vmem:[#allocation2] sm:$0x3] %vm281_vm6, %v2389_v8  ;;  %3414 = vmatmul.mubr.msk.f32.vlgmr.msra.gmra.mrb[24].mxu1 %vm179_vm7, %v2389_v8 }
0x2f77   :  { %3656 = vmatpush1.bf16.msra.mxu1 %v4549_v25  ;;  %2710 = vmatprep.mubr.f32.mxu1 %v3874_v0 }
0x2f78   :  { %3658 = vmatprep.subr.bf16.mxu1 %v4554_v23 }
0x2f7b   :  { %3660 = vmatpush1.bf16.msra.mxu1 %v4557_v11 }
0x2f7c   :  { %3670 = vmatprep.subr.bf16.mxu1 %v4547_v18 }
0x3049   :  { %v2478_v33 = vpop.f32.mrb[24].mxu1 }
0x304a   :  { %v2480_v40 = vpop.f32.mrb[25].mxu1 }
0x304b   :  { %v2483_v41 = vsel %vm47_vm1, %v2478_v33, %v2480_v40 }
0x304c   :  { %v2484_v38 = vadd.f32 %v2483_v41, %v2401_v7 }
0x304e   :  { %v2485_v39 = vmul.f32 %v2484_v38, %v4051_v16 }
0x3050   :  { %3787 = vtanh.f32 %v2485_v39 }
0x305a   :  { %v3788_v44 = vpop.eup %3787 }
0x305b   :  { %v2487_v46 = vmul.f32 %v3788_v44, %v4051_v16 }
0x305d   :  { %v2488_v13 = vadd.f32 %v2487_v46, %v4061_v24 }
0x305f   :  { %2491 = vrot.lane.b32.xlu0 %v2488_v13, %s3876_s22  ;;  %v2489_v47 = vmul.f32 %v2488_v13, %v2380_v26 }
0x30d1   :  { %v2492_v35 = vpop.permute.xlu0 %2491 }
0x30d2   :  { %v2494_v36 = vmul.f32 %v2492_v35, %v2488_v13 }
0x30d4   :  { %2496 = vrot.lane.b32.xlu1 %v2494_v36, %s3877_s23 }
0x3146   :  { %v2497_v59 = vpop.permute.xlu1 %2496 }
0x3147   :  { %v2499_v48 = vadd.f32 %v2497_v59, %v2489_v47 }
0x3149   :  { %3789 = vtanh.f32 %v2499_v48 }
0x3153   :  { %v3790_v12 = vpop.eup %3789 }
0x3154   :  { %2502 = vrot.lane.b32.xlu0 %v3790_v12, %s3876_s22 }
0x31c6   :  { %v2503_v49 = vpop.permute.xlu0 %2502 }
0x31c7   :  { %v4641_v50 = vmul.f32 %v2503_v49, %v2488_v13 }
0x31c9   :  { %2507 = vrot.lane.b32.xlu1 %v4641_v50, %s3877_s23 }
0x323b   :  { %v2508_v14 = vpop.permute.xlu1 %2507 }
0x323c   :  { %2510 = vst.msk [vmem:[#allocation2 + $0x2] sm:$0x3] %vm281_vm6, %v2508_v14  ;;  %3415 = vmatmul.mubr.msk.f32.vlgmr.msra.gmra.mrb[22].mxu0 %vm179_vm7, %v2508_v14 }
0x323d   :  { %3664 = vmatpush1.bf16.msra.mxu0 %v4549_v25  ;;  %2827 = vmatprep.mubr.f32.mxu0 %v3874_v0 }
0x323e   :  { %3666 = vmatprep.subr.bf16.mxu0 %v4554_v23 }
0x3241   :  { %3668 = vmatpush1.bf16.msra.mxu0 %v4557_v11 }
0x3242   :  { %3678 = vmatprep.subr.bf16.mxu0 %v4547_v18 }
0x330f   :  { %v2594_v51 = vpop.f32.mrb[22].mxu0 }
0x3310   :  { %v2596_v52 = vpop.f32.mrb[23].mxu0 }
0x3311   :  { %v2599_v34 = vsel %vm47_vm1, %v2594_v51, %v2596_v52 }
0x3312   :  { %v2600_v6 = vadd.f32 %v2599_v34, %v4600_v22 }
0x3314   :  { %v2601_v53 = vmul.f32 %v2600_v6, %v4051_v16 }
0x3316   :  { %3791 = vtanh.f32 %v2601_v53 }
0x3320   :  { %v3792_v1 = vpop.eup %3791 }
0x3321   :  { %v2603_v55 = vmul.f32 %v3792_v1, %v4051_v16 }
0x3323   :  { %v2604_v15 = vadd.f32 %v2603_v55, %v4061_v24 }
0x3325   :  { %2607 = vrot.lane.b32.xlu0 %v2604_v15, %s3876_s22  ;;  %v2605_v58 = vmul.f32 %v2604_v15, %v2499_v48 }
0x3397   :  { %v2608_v56 = vpop.permute.xlu0 %2607 }
0x3398   :  { %v2610_v4 = vmul.f32 %v2608_v56, %v2604_v15 }
0x339a   :  { %2612 = vrot.lane.b32.xlu1 %v2610_v4, %s3877_s23 }
0x340c   :  { %v2613_v43 = vpop.permute.xlu1 %2612 }
0x340d   :  { %v2615_v61 = vadd.f32 %v2613_v43, %v2605_v58 }
0x340f   :  { %3793 = vtanh.f32 %v2615_v61 }
0x3419   :  { %v3794_v45 = vpop.eup %3793 }
0x341a   :  { %2618 = vrot.lane.b32.xlu0 %v3794_v45, %s3876_s22 }
0x348c   :  { %v2619_v62 = vpop.permute.xlu0 %2618 }
0x348d   :  { %v4661_v27 = vmul.f32 %v2619_v62, %v2604_v15 }
0x348f   :  { %2623 = vrot.lane.b32.xlu1 %v4661_v27, %s3877_s23 }
0x3501   :  { %v2624_v22 = vpop.permute.xlu1 %2623 }
0x3502   :  { %2626 = vst.msk [vmem:[#allocation2 + $0x4] sm:$0x3] %vm281_vm6, %v2624_v22  ;;  %3416 = vmatmul.mubr.msk.f32.vlgmr.msra.gmra.mrb[26].mxu1 %vm179_vm7, %v2624_v22 }
0x3503   :  { %3672 = vmatpush1.bf16.msra.mxu1 %v4549_v25  ;;  %2946 = vmatprep.mubr.f32.mxu1 %v3874_v0 }
0x3504   :  { %3674 = vmatprep.subr.bf16.mxu1 %v4554_v23 }
0x3507   :  { %3676 = vmatpush1.bf16.msra.mxu1 %v4557_v11 }
0x3508   :  { %3686 = vmatprep.subr.bf16.mxu1 %v4547_v18 }
0x35d5   :  { %v2712_v63 = vpop.f32.mrb[26].mxu1 }
0x35d6   :  { %v2714_v30 = vpop.f32.mrb[27].mxu1 }
0x35d7   :  { %v2717_v7 = vsel %vm47_vm1, %v2712_v63, %v2714_v30 }
0x35d8   :  { %v2718_v31 = vadd.f32 %v2717_v7, %v4614_v54 }
0x35da   :  { %v2719_v5 = vmul.f32 %v2718_v31, %v4051_v16 }
0x35dc   :  { %3795 = vtanh.f32 %v2719_v5 }
0x35e6   :  { %v3796_v37 = vpop.eup %3795 }
0x35e7   :  { %v2721_v57 = vmul.f32 %v3796_v37, %v4051_v16 }
0x35e9   :  { %v2722_v9 = vadd.f32 %v2721_v57, %v4061_v24 }
0x35eb   :  { %2725 = vrot.lane.b32.xlu0 %v2722_v9, %s3876_s22  ;;  %v2723_v18 = vmul.f32 %v2722_v9, %v2615_v61 }
0x365d   :  { %v2726_v10 = vpop.permute.xlu0 %2725 }
0x365e   :  { %v2728_v17 = vmul.f32 %v2726_v10, %v2722_v9 }
0x3660   :  { %2730 = vrot.lane.b32.xlu1 %v2728_v17, %s3877_s23 }
0x36d2   :  { %v2731_v20 = vpop.permute.xlu1 %2730 }
0x36d3   :  { %v2733_v21 = vadd.f32 %v2731_v20, %v2723_v18 }
0x36d5   :  { %3797 = vtanh.f32 %v2733_v21 }
0x36df   :  { %v3798_v26 = vpop.eup %3797 }
0x36e0   :  { %2736 = vrot.lane.b32.xlu0 %v3798_v26, %s3876_s22 }
0x3752   :  { %v2737_v54 = vpop.permute.xlu0 %2736 }
0x3753   :  { %v4681_v28 = vmul.f32 %v2737_v54, %v2722_v9 }
0x3755   :  { %2741 = vrot.lane.b32.xlu1 %v4681_v28, %s3877_s23 }
0x37c7   :  { %v2742_v29 = vpop.permute.xlu1 %2741 }
0x37c8   :  { %2744 = vst.msk [vmem:[#allocation2 + $0x6] sm:$0x3] %vm281_vm6, %v2742_v29  ;;  %3417 = vmatmul.mubr.msk.f32.vlgmr.msra.gmra.mrb[24].mxu0 %vm179_vm7, %v2742_v29 }
0x37c9   :  { %3680 = vmatpush1.bf16.msra.mxu0 %v4549_v25  ;;  %3062 = vmatprep.mubr.f32.mxu0 %v3874_v0 }
0x37ca   :  { %3682 = vmatprep.subr.bf16.mxu0 %v4554_v23 }
0x37cd   :  { %3684 = vmatpush1.bf16.msra.mxu0 %v4557_v11 }
0x389b   :  { %v2829_v8 = vpop.f32.mrb[24].mxu0 }
0x389c   :  { %v2831_v33 = vpop.f32.mrb[25].mxu0 }
0x389d   :  { %v2834_v40 = vsel %vm47_vm1, %v2829_v8, %v2831_v33 }
0x389e   :  { %v2835_v41 = vadd.f32 %v2834_v40, %v4597_v60 }
0x38a0   :  { %v2836_v38 = vmul.f32 %v2835_v41, %v4051_v16 }
0x38a2   :  { %3799 = vtanh.f32 %v2836_v38 }
0x38ac   :  { %v3800_v39 = vpop.eup %3799 }
0x38ad   :  { %v2838_v44 = vmul.f32 %v3800_v39, %v4051_v16 }
0x38af   :  { %v2839_v46 = vadd.f32 %v2838_v44, %v4061_v24 }
0x38b1   :  { %2842 = vrot.lane.b32.xlu0 %v2839_v46, %s3876_s22  ;;  %v2840_v36 = vmul.f32 %v2839_v46, %v2733_v21 }
0x3923   :  { %v2843_v13 = vpop.permute.xlu0 %2842 }
0x3924   :  { %v2845_v35 = vmul.f32 %v2843_v13, %v2839_v46  ;;  %v3223_v13 = vld [vmem:[%s4829_s4 + $0x10] sm:$0xff] }
0x3926   :  { %2847 = vrot.lane.b32.xlu1 %v2845_v35, %s3877_s23 }
0x3998   :  { %v2848_v47 = vpop.permute.xlu1 %2847 }
0x3999   :  { %v2850_v59 = vadd.f32 %v2848_v47, %v2840_v36  ;;  %v3224_v36 = vld [vmem:[%s4829_s4 + $0x18] sm:$0xff] }
0x399a   :  { %v3697_v47 = vpack.c.bf16 %v3224_v36, %v3223_v13 }
0x399b   :  { %3801 = vtanh.f32 %v2850_v59 }
0x39a5   :  { %v3802_v48 = vpop.eup %3801 }
0x39a6   :  { %2853 = vrot.lane.b32.xlu0 %v3802_v48, %s3876_s22  ;;  %v3225_v48 = vld [vmem:[%s4829_s4 + $0x20] sm:$0xff] }
0x3a18   :  { %v2854_v60 = vpop.permute.xlu0 %2853 }
0x3a19   :  { %v4700_v12 = vmul.f32 %v2854_v60, %v2839_v46  ;;  %v3222_v46 = vld [vmem:[%s4829_s4 + $0x8] sm:$0xff] }
0x3a1a   :  { %v3226_v60 = vld [vmem:[%s4829_s4 + $0x28] sm:$0xff] }
0x3a1b   :  { %2858 = vrot.lane.b32.xlu1 %v4700_v12, %s3877_s23 }
0x3a8d   :  { %v4704_v49 = vpop.permute.xlu1 %2858 }
0x3a8e   :  { %3418 = vmatmul.mubr.msk.f32.vlgmr.msra.gmra.mrb[28].mxu1 %vm179_vm7, %v4704_v49 }
0x3a8f   :  { %3688 = vmatpush1.bf16.msra.mxu1 %v4549_v25  ;;  %3180 = vmatprep.mubr.f32.mxu1 %v3874_v0 }
0x3a90   :  { %3690 = vmatprep.subr.bf16.mxu1 %v4554_v23 }
0x3a93   :  { %3692 = vmatpush1.bf16.msra.mxu1 %v4557_v11 }
0x3b61   :  { %v2948_v14 = vpop.f32.mrb[28].mxu1 }
0x3b62   :  { %v2950_v51 = vpop.f32.mrb[29].mxu1 }
0x3b63   :  { %v2953_v52 = vsel %vm47_vm1, %v2948_v14, %v2950_v51 }
0x3b64   :  { %v2954_v34 = vadd.f32 %v2953_v52, %v4603_v19 }
0x3b66   :  { %v2955_v6 = vmul.f32 %v2954_v34, %v4051_v16 }
0x3b68   :  { %3803 = vtanh.f32 %v2955_v6 }
0x3b72   :  { %v3804_v53 = vpop.eup %3803 }
0x3b73   :  { %v2957_v1 = vmul.f32 %v3804_v53, %v4051_v16 }
0x3b75   :  { %v2958_v25 = vadd.f32 %v2957_v1, %v4061_v24 }
0x3b77   :  { %2961 = vrot.lane.b32.xlu0 %v2958_v25, %s3876_s22  ;;  %v2959_v11 = vmul.f32 %v2958_v25, %v2850_v59 }
0x3be9   :  { %v2962_v0 = vpop.permute.xlu0 %2961 }
0x3bea   :  { %v2964_v23 = vmul.f32 %v2962_v0, %v2958_v25 }
0x3bec   :  { %2966 = vrot.lane.b32.xlu1 %v2964_v23, %s3877_s23 }
0x3c5e   :  { %v2967_v55 = vpop.permute.xlu1 %2966 }
0x3c5f   :  { %v2969_v15 = vadd.f32 %v2967_v55, %v2959_v11  ;;  %v3421_v11 = vld [vmem:[%s4830_s5] ss:$0 sm:$0xff]  ;;  %s3878_s5 = smov [#allocation6]  }
0x3c61   :  { %3805 = vtanh.f32 %v2969_v15 }
0x3c6b   :  { %v3806_v56 = vpop.eup %3805 }
0x3c6c   :  { %2972 = vrot.lane.b32.xlu0 %v3806_v56, %s3876_s22 }
0x3cde   :  { %v2973_v19 = vpop.permute.xlu0 %2972 }
0x3cdf   :  { %v4721_v4 = vmul.f32 %v2973_v19, %v2958_v25 }
0x3ce1   :  { %2977 = vrot.lane.b32.xlu1 %v4721_v4, %s3877_s23 }
0x3d53   :  { %v2978_v58 = vpop.permute.xlu1 %2977 }
0x3d54   :  { %3419 = vmatmul.mubr.msk.f32.vlgmr.msra.gmra.mrb[26].mxu0 %vm179_vm7, %v2978_v58 }
0x3e27   :  { %v3064_v43 = vpop.f32.mrb[26].mxu0 }
0x3e28   :  { %v3066_v61 = vpop.f32.mrb[27].mxu0 }
0x3e29   :  { %v3069_v45 = vsel %vm47_vm1, %v3064_v43, %v3066_v61 }
0x3e2a   :  { %v3070_v62 = vadd.f32 %v3069_v45, %v4606_v2 }
0x3e2c   :  { %v3071_v22 = vmul.f32 %v3070_v62, %v4051_v16 }
0x3e2e   :  { %3807 = vtanh.f32 %v3071_v22 }
0x3e38   :  { %v3808_v63 = vpop.eup %3807 }
0x3e39   :  { %v3073_v30 = vmul.f32 %v3808_v63, %v4051_v16 }
0x3e3b   :  { %v3074_v7 = vadd.f32 %v3073_v30, %v4061_v24 }
0x3e3d   :  { %3077 = vrot.lane.b32.xlu0 %v3074_v7, %s3876_s22  ;;  %v3075_v37 = vmul.f32 %v3074_v7, %v2969_v15 }
0x3eaf   :  { %v3078_v31 = vpop.permute.xlu0 %3077 }
0x3eb0   :  { %v3080_v5 = vmul.f32 %v3078_v31, %v3074_v7 }
0x3eb2   :  { %3082 = vrot.lane.b32.xlu1 %v3080_v5, %s3877_s23 }
0x3f24   :  { %v3083_v57 = vpop.permute.xlu1 %3082 }
0x3f25   :  { %v3085_v9 = vadd.f32 %v3083_v57, %v3075_v37 }
0x3f27   :  { %3809 = vtanh.f32 %v3085_v9 }
0x3f31   :  { %v3810_v10 = vpop.eup %3809 }
0x3f32   :  { %3088 = vrot.lane.b32.xlu0 %v3810_v10, %s3876_s22 }
0x3fa4   :  { %v3089_v2 = vpop.permute.xlu0 %3088 }
0x3fa5   :  { %v3091_v17 = vmul.f32 %v3089_v2, %v3074_v7 }
0x3fa7   :  { %3093 = vrot.lane.b32.xlu1 %v3091_v17, %s3877_s23 }
0x4019   :  { %v4736_v18 = vpop.permute.xlu1 %3093 }
0x401a   :  { %3420 = vmatmul.mubr.msk.f32.vlgmr.msra.gmra.mrb[30].mxu1 %vm179_vm7, %v4736_v18 }
0x40ed   :  { %v3182_v20 = vpop.f32.mrb[30].mxu1 }
0x40ee   :  { %v3184_v21 = vpop.f32.mrb[31].mxu1 }
0x40ef   :  { %v3187_v26 = vsel %vm47_vm1, %v3182_v20, %v3184_v21 }
0x40f0   :  { %v3188_v54 = vadd.f32 %v3187_v26, %v4609_v3 }
0x40f2   :  { %v3189_v29 = vmul.f32 %v3188_v54, %v4051_v16 }
0x40f4   :  { %3811 = vtanh.f32 %v3189_v29 }
0x40fe   :  { %v3812_v8 = vpop.eup %3811 }
0x40ff   :  { %v3191_v33 = vmul.f32 %v3812_v8, %v4051_v16 }
0x4101   :  { %v3192_v40 = vadd.f32 %v3191_v33, %v4061_v24 }
0x4103   :  { %3195 = vrot.lane.b32.xlu0 %v3192_v40, %s3876_s22  ;;  %v3193_v42 = vmul.f32 %v3192_v40, %v3085_v9 }
0x4175   :  { %v3196_v41 = vpop.permute.xlu0 %3195 }
0x4176   :  { %v3198_v38 = vmul.f32 %v3196_v41, %v3192_v40 }
0x4178   :  { %3200 = vrot.lane.b32.xlu1 %v3198_v38, %s3877_s23 }
0x417c   :  { %2392 = vrot.lane.b32.xlu1 %v4622_v32, %s3876_s22 }
0x4180   :  { %2627 = vrot.lane.b32.xlu1 %v4661_v27, %s3876_s22  ;;  %v3221_v27 = vld [vmem:[%s4829_s4] sm:$0xff] }
0x4181   :  { %v3693_v35 = vpack.c.bf16 %v3222_v46, %v3221_v27 }
0x4183   :  { %3694 = vmatprep.subr.bf16.mxu0 %v3693_v35 }
0x4184   :  { %2862 = vrot.lane.b32.xlu1 %v4700_v12, %s3876_s22  ;;  %3696 = vmatpush3.bf16.msra.mxu0 %v3693_v35  ;;  %v3701_v12 = vpack.c.bf16 %v3226_v60, %v3225_v48 }
0x4185   :  { %3698 = vmatprep.subr.bf16.mxu0 %v3697_v47 }
0x4188   :  { %3097 = vrot.lane.b32.xlu1 %v3091_v17, %s3876_s22  ;;  %3700 = vmatpush3.bf16.msra.mxu0 %v3697_v47 }
0x4189   :  { %3702 = vmatprep.subr.bf16.mxu0 %v3701_v12 }
0x418c   :  { %3704 = vmatpush3.bf16.msra.mxu0 %v3701_v12 }
0x41ea   :  { %v3201_v16 = vpop.permute.xlu1 %3200 }
0x41eb   :  { %v3203_v24 = vadd.f32 %v3201_v16, %v3193_v42 }
0x41ed   :  { %3813 = vtanh.f32 %v3203_v24 }
0x41ee   :  { %v2393_v3 = vpop.permute.xlu1 %2392 }
0x41ef   :  { %2395 = vst.msk [vmem:[#allocation2 + $0xc] sm:$0xc] %vm286_vm8, %v2393_v3 }
0x41f2   :  { %v2628_v39 = vpop.permute.xlu1 %2627 }
0x41f3   :  { %2630 = vst.msk [vmem:[#allocation2 + $0x8] sm:$0xc] %vm286_vm8, %v2628_v39 }
0x41f4   :  { %2980 = vst.msk [vmem:[#allocation2 + $0xa] sm:$0x3] %vm281_vm6, %v2978_v58 }
0x41f6   :  { %v2863_v32 = vpop.permute.xlu1 %2862 }
0x41f7   :  { %v3814_v44 = vpop.eup %3813  ;;  %2865 = vst.msk [vmem:[#allocation2 + $0x4] sm:$0xc] %vm286_vm8, %v2863_v32 }
0x41f8   :  { %3206 = vrot.lane.b32.xlu0 %v3814_v44, %s3876_s22 }
0x41fa   :  { %v3098_v59 = vpop.permute.xlu1 %3097 }
0x41fb   :  { %3100 = vst.msk [vmem:[#allocation2] sm:$0xc] %vm286_vm8, %v3098_v59 }
0x41fc   :  { %2511 = vrot.lane.b32.xlu0 %v4641_v50, %s3876_s22  ;;  %v3227_v50 = vld [vmem:[%s4829_s4 + $0x30] sm:$0xff] }
0x4200   :  { %2745 = vrot.lane.b32.xlu0 %v4681_v28, %s3876_s22  ;;  %v3228_v28 = vld [vmem:[%s4829_s4 + $0x38] sm:$0xff] }
0x4201   :  { %v3705_v14 = vpack.c.bf16 %v3228_v28, %v3227_v50 }
0x4203   :  { %3706 = vmatprep.subr.bf16.mxu0 %v3705_v14 }
0x4204   :  { %2981 = vrot.lane.b32.xlu0 %v4721_v4, %s3876_s22  ;;  %3708 = vmatpush3.bf16.msra.mxu0 %v3705_v14 }
0x426a   :  { %v3207_v51 = vpop.permute.xlu0 %3206 }
0x426b   :  { %v3209_v52 = vmul.f32 %v3207_v51, %v3192_v40 }
0x426d   :  { %3211 = vrot.lane.b32.xlu1 %v3209_v52, %s3877_s23  ;;  %3215 = vrot.lane.b32.xlu0 %v3209_v52, %s3876_s22  ;;  %s3348_s23 = sshll.u32 %s3878_s5, 4  ;;  %s3349_s23 = int_to_ptr.vmem [resolvable:$true] %s3348_s23 }
0x426e   :  { %v2512_v34 = vpop.permute.xlu0 %2511  ;;  %s3845_s10 = scalar_lea.vmem %s3349_s23, 256  ;;  %p3850_p9 = scmp.lt.s32.totalorder %s3349_s23, %s3349_s23 }
0x426f   :  { %2514 = vst.msk [vmem:[#allocation2 + $0xa] sm:$0xc] %vm286_vm8, %v2512_v34  ;;  %p3846_p8 = scmp.ne.s32.totalorder %s3349_s23, %s3845_s10  ;;  %p3851_p10 = scmp.lt.s32.totalorder %s3845_s10, %s3845_s10 }
0x4270   :  { %3096 = vst.msk [vmem:[#allocation2 + $0xc] sm:$0x3] %vm281_vm6, %v4736_v18 }
0x4271   :  { %p3852_p11 = por %p3851_p10, %p3850_p9 }
0x4272   :  { %v2746_v6 = vpop.permute.xlu0 %2745 }
0x4273   :  { %2748 = vst.msk [vmem:[#allocation2 + $0x6] sm:$0xc] %vm286_vm8, %v2746_v6  ;;  %p3853_p12 = pnand %p3852_p11, %p3846_p8 }
0x4274   :  { %2861 = vst.msk [vmem:[#allocation2 + $0x8] sm:$0x3] %vm281_vm6, %v4704_v49 }
0x4276   :  { %v2982_v53 = vpop.permute.xlu0 %2981 }
0x4277   :  { %2984 = vst.msk [vmem:[#allocation2 + $0x2] sm:$0xc] %vm286_vm8, %v2982_v53 }
0x42df   :  { %v3212_v1 = vpop.permute.xlu1 %3211  ;;  %v3216_v25 = vpop.permute.xlu0 %3215 }
0x42e0   :  { %3214 = vst.msk [vmem:[#allocation2 + $0xe] sm:$0x3] %vm281_vm6, %v3212_v1 }
0x42e1   :  { %3218 = vst.msk [vmem:[#allocation2 - $0x2] sm:$0xc] %vm286_vm8, %v3216_v25 }
0x42e7   :  { %v3220_v23 = vld [vmem:[#allocation2 + $0x8] sm:$0xff] }
0x42e8   :  { %v3219_v0 = vld [vmem:[#allocation2] sm:$0xff] }
0x42e9   :  { %3450 = vmatprep.mubr.msk.f32.mxu0 %vm50_vm0, %v3219_v0 }
0x42ea   :  { %3451 = vmatmul.mubr.msk.f32.vlgmr.msra.gmra.mrb[28].mxu0 %vm50_vm0, %v3220_v23 }
0x43bd   :  { %v3452_v49 = vpop.f32.mrb[28].mxu0 }
0x43be   :  { %v3314_v55 = vadd.f32 %v3452_v49, %v3421_v11  ;;  %v3308_v15 = vpop.f32.mrb[29].mxu0 }
0x43bf   :  { %v3309_v56 = vadd.f32 %v3421_v11, %v3308_v15 }
0x43c0   :  { %v3320_v19 = vsel %vm179_vm7, %v3314_v55, -inf }
0x43c1   :  { %3321 = vmax.xlane.f32.xlu1 %v3320_v19  ;;  %v3317_v4 = vsel %vm179_vm7, %v3309_v56, -inf }
0x43c2   :  { %3318 = vmax.xlane.f32.xlu0 %v3317_v4 }
0x444e   :  { %v3322_v58 = vpop.xlane.xlu1 %3321 }
0x444f   :  { %v3324_v43 = vsub.f32 %v3314_v55, %v3322_v58  ;;  %v3319_v61 = vpop.xlane.xlu0 %3318 }
0x4450   :  { %v3323_v45 = vsub.f32 %v3309_v56, %v3319_v61 }
0x4451   :  { %v3327_v62 = vmul.f32 1.442695, %v3324_v43 }
0x4452   :  { %v3325_v22 = vmul.f32 1.442695, %v3323_v45 }
0x4454   :  { %3815 = vpow2.f32 %v3325_v22 }
0x4455   :  { %3817 = vpow2.f32 %v3327_v62 }
0x445e   :  { %v3816_v63 = vpop.eup %3815 }
0x445f   :  { %v3329_v30 = vsel %vm179_vm7, %v3816_v63, 0.0  ;;  %v3818_v7 = vpop.eup %3817 }
0x4460   :  { %3330 = vadd.xlane.f32.xlu0 %v3329_v30  ;;  %v3332_v31 = vsel %vm179_vm7, %v3818_v7, 0.0 }
0x4464   :  { %3333 = vadd.xlane.f32.xlu0 %v3332_v31 }
0x44ed   :  { %v3331_v5 = vpop.xlane.xlu0 %3330 }
0x44ee   :  { %3819 = vlog2.f32 %v3331_v5 }
0x44f1   :  { %v3334_v37 = vpop.xlane.xlu0 %3333 }
0x44f2   :  { %3821 = vlog2.f32 %v3334_v37 }
0x44f8   :  { %v3820_v57 = vpop.eup %3819 }
0x44f9   :  { %v3336_v9 = vmul.f32 0.6931472, %v3820_v57 }
0x44fb   :  { %v3339_v10 = vsub.f32 %v3323_v45, %v3336_v9 }
0x44fc   :  { %v3822_v2 = vpop.eup %3821 }
0x44fd   :  { %3341 = vst.msk [vmem:[#allocation6] sm:$0xff] %vm179_vm7, %v3339_v10  ;;  %v3338_v17 = vmul.f32 0.6931472, %v3822_v2 }
0x44ff   :  { %v3340_v18 = vsub.f32 %v3324_v43, %v3338_v17 }
0x4501   :  { %3342 = vst.msk [vmem:[#allocation6 + $0x8] sm:$0xff] %vm179_vm7, %v3340_v18 }
0x4502   :  { %3856 = shalt.err (!%p3853_p12)
}
0x4503   :  { %s3857_s13 = scalar_lea.hbm %s4831_s6, 256 }
0x4504   :  { %p3858_p13 = scmp.ne.s32.totalorder %s4831_s6, %s3857_s13  ;;  %p3861_p0 = scmp.lt.u32.totalorder %s3857_s13, %s4831_s6 }
0x4506   :  { %p3863_p1 = pnand %p3861_p0, %p3858_p13 }
0x4508   :  { %3866 = shalt.err (!%p3863_p1)
}
0x4509   :  { %s3879_s1 = smov 128   ;;  %s3880_s0 = smov 8  }
0x450a   :  { %3354 = dma.vmem_to_hbm [thread:$0]  %s3349_s23, 256, %s4831_s6, [#allocation5], %s3879_s1, %s3879_s1, %s3880_s0  }
0x450b   :  { %3869 = dma.done.wait [#allocation5], 256  }
0x450c   :  { %3870 = vsyncadd [#allocation5], 4294967040 }
0x450d   :  { %3358 = vsyncpa [#allocation4], 1 }
0x450e   :  { %3359 = vsyncpa [#allocation5], 1 }

</bundles_post_ra>
